<compile_context>
chip_gen: v7x
topology: tpu7x:2x2x1
jax: 0.10.0
libtpu: 0.0.40
codegen_flags: <defaults>
</compile_context>

<pallas_src>
import functools

import jax
import jax.numpy as jnp
import numpy as np
from jax.experimental import pallas as pl
from jax.experimental.pallas import tpu as pltpu

EPS = 1e-5


def _resblock_kernel(x_ref, wv1_ref, wv2_ref, out_ref, pad_ref, *, H, C, L):
    """One image pair per grid step, pair packed along the lane axis.

    x_ref   : (1, H, L)          L = 2*W*C; lanes [0,W*C) = image 2n, [W*C,2*W*C) = image 2n+1
    wv*_ref : (3*(4C-1)+1, L)    row ky*(4C-1)+si = folded (BN-scaled, edge-masked) tap
                                 vector for vertical tap ky and lane shift si-(2C-1);
                                 last row = folded BN bias per lane
    out_ref : (1, H, L)
    pad_ref : (H+2, L+4C)        VMEM scratch: zero top/bottom halo rows and 2C-lane zero
                                 pads left/right; interior rewritten before each conv
    """
    S = 4 * C - 1          # number of distinct lane shifts of a 3x3 conv
    PADL = 2 * C           # left zero-pad lanes (>= 2C-1 needed)
    SW = L + 4 * C         # scratch row width
    BIAS = 3 * S           # bias row index in the weight table

    x_val = x_ref[0]       # (H, L) lane-dense; also the residual identity

    # Zero only halo rows and left/right pad lanes; the interior is fully rewritten below.
    # Kept per-step (NOT behind pl.when(first step)) so it stays correct when the pair axis
    # is sharded "parallel" across TensorCores.
    pad_ref[0:1, :] = jnp.zeros((1, SW), jnp.float32)
    pad_ref[H + 1:H + 2, :] = jnp.zeros((1, SW), jnp.float32)
    pad_ref[1:H + 1, 0:PADL] = jnp.zeros((H, PADL), jnp.float32)
    pad_ref[1:H + 1, PADL + L:SW] = jnp.zeros((H, SW - PADL - L), jnp.float32)

    def conv3x3_bn(wv_ref):
        # acc[h, l] = bias[l] + sum_{si,ky} pad[h+ky, PADL + (si-(2C-1)) + l] * wv[ky*S+si, l]
        # Pure VPU shift-MAC; each lane shift is materialized once (full H+2 rows) and the
        # three ky taps are row sub-slices of that slab.
        acc = jnp.zeros((H, L), jnp.float32) + wv_ref[BIAS:BIAS + 1, :]
        for si in range(S):
            c0 = si + PADL - (2 * C - 1)                # lane offset of this shift slot
            shifted = pad_ref[:, c0:c0 + L]             # (H+2, L): one cross-lane op
            for ky in range(3):
                r = ky * S + si
                acc = acc + shifted[ky:ky + H, :] * wv_ref[r:r + 1, :]
        return acc

    # ---- conv1 -> bn1 (folded, eval mode) -> relu ----
    pad_ref[1:H + 1, PADL:PADL + L] = x_val
    out1 = jnp.maximum(conv3x3_bn(wv1_ref), 0.0)
    # TODO(synk): training-mode branch (torch.rand gate + randn*1e-5 noise, batch-stat BN)
    # intentionally not implemented; this kernel reproduces eval-mode forward.

    # ---- conv2 -> bn2 (folded) -> +identity -> relu -> clamp -> NaN cleanup ----
    pad_ref[1:H + 1, PADL:PADL + L] = out1
    out2 = conv3x3_bn(wv2_ref) + x_val
    out2 = jnp.maximum(out2, 0.0)
    out2 = jnp.clip(out2, -100.0, 100.0)
    # After the clamp only NaN can survive (clip maps +/-Inf to +/-100), so one select
    # reproduces the reference nan_to_num(nan=0, posinf=1, neginf=-1).
    out2 = jnp.where(jnp.isnan(out2), 0.0, out2)
    out_ref[0] = out2.astype(out_ref.dtype)


def _fold_conv_bn(w, scale, bias, W, C, n_pack):
    """Fold a (3,3,C,C) HWIO conv weight + eval-mode BN into per-lane shift-MAC vectors.

    Returns (3*S+1, n_pack*W*C) f32, S = 4C-1.  Row ky*S + si, lane b*W*C + w*C + co holds
    scale[co] * w[ky, kx, ci, co] for the unique (kx, ci) with (kx-1)*C + ci - co == si-(2C-1)
    (zero if none), masked to zero for taps that read outside the image row (left/right SAME
    padding and the packed-image seam).  The final row is the folded BN bias per lane.
    """
    S = 4 * C - 1
    wf = w.astype(jnp.float32) * scale.astype(jnp.float32)[None, None, None, :]

    # Indicator T[kx, ci, co, si]: tap (kx, ci) lands in shift slot si for output channel co.
    kx = np.arange(3)[:, None, None, None]
    ci = np.arange(C)[None, :, None, None]
    co = np.arange(C)[None, None, :, None]
    si = np.arange(S)[None, None, None, :]
    T = ((kx - 1) * C + ci - co + (2 * C - 1) == si).astype(np.float32)   # (3, C, C, S)

    # Edge mask B[kx, w]: zero taps that would read past the image's left/right edge
    # (also guards the seam between the two lane-packed images).
    B = np.ones((3, W), np.float32)
    B[0, 0] = 0.0
    B[2, W - 1] = 0.0

    wv = jnp.einsum('ykic,kics,kw->yswc', wf, jnp.asarray(T), jnp.asarray(B))  # (3,S,W,C)
    wv = wv.reshape(3 * S, W * C)
    wv = jnp.tile(wv, (1, n_pack))                          # identical per packed image
    bias_lane = jnp.tile(bias.astype(jnp.float32), W * n_pack).reshape(1, n_pack * W * C)
    return jnp.concatenate([wv, bias_lane], axis=0)         # (3*S+1, n_pack*W*C)


def residual_block_forward(x, w1, w2,
                           gamma1, beta1, mean1, var1,
                           gamma2, beta2, mean2, var2,
                           eps=EPS):
    """x: (N, H, W, C) float32 NHWC. Conv weights: (3, 3, C, C) HWIO. Eval-mode forward."""
    n_orig, H, W, C = x.shape
    WC = W * C
    x = x.astype(jnp.float32)
    if n_orig % 2 == 1:                                     # pad to an even batch
        x = jnp.concatenate([x, jnp.zeros((1, H, W, C), jnp.float32)], axis=0)
    N = x.shape[0]
    NP = N // 2
    L = 2 * WC                                              # 128 for W=16, C=4: lane-dense
    S = 4 * C - 1

    # Fold eval-mode BatchNorm into the conv weight tables (scale) and the acc init (bias).
    inv1 = (gamma1 / jnp.sqrt(var1 + eps)).astype(jnp.float32)
    inv2 = (gamma2 / jnp.sqrt(var2 + eps)).astype(jnp.float32)
    bias1 = (beta1 - mean1 * inv1).astype(jnp.float32)
    bias2 = (beta2 - mean2 * inv2).astype(jnp.float32)
    wv1 = _fold_conv_bn(w1, inv1, bias1, W, C, n_pack=2)    # (3*S+1, L)
    wv2 = _fold_conv_bn(w2, inv2, bias2, W, C, n_pack=2)

    # Pack image pairs side by side along the lane axis (layout plumbing, done once in HBM).
    x_m = x.reshape(NP, 2, H, WC).transpose(0, 2, 1, 3).reshape(NP, H, L)

    # NOTE: for production sizes (large H*W*C) add a row-strip grid axis with a 1-row halo,
    # size strips for v7x's 64 MiB VMEM, and set vmem_limit_bytes explicitly; here per-step
    # residency is ~100 KiB so the defaults are fine.
    kernel = functools.partial(_resblock_kernel, H=H, C=C, L=L)
    out_m = pl.pallas_call(
        kernel,
        out_shape=jax.ShapeDtypeStruct((NP, H, L), jnp.float32),
        grid_spec=pltpu.PrefetchScalarGridSpec(
            num_scalar_prefetch=0,
            grid=(NP,),
            in_specs=[
                pl.BlockSpec((1, H, L), lambda n: (n, 0, 0)),         # packed image pair
                pl.BlockSpec((3 * S + 1, L), lambda n: (0, 0)),       # folded conv1+bn1
                pl.BlockSpec((3 * S + 1, L), lambda n: (0, 0)),       # folded conv2+bn2
            ],
            out_specs=pl.BlockSpec((1, H, L), lambda n: (n, 0, 0)),
            scratch_shapes=[pltpu.VMEM((H + 2, L + 4 * C), jnp.float32)],
        ),
        compiler_params=pltpu.CompilerParams(
            dimension_semantics=("parallel",)),   # pair axis shards across v7x's 2 TCs
    )(x_m, wv1, wv2)

    out = out_m.reshape(NP, H, 2, WC).transpose(0, 2, 1, 3).reshape(N, H, W, C)
    return out[:n_orig]


def _reference(x, w1, w2, gamma1, beta1, mean1, var1,
               gamma2, beta2, mean2, var2, eps=EPS):
    """Pure-JAX reference of the eval-mode forward (NHWC / HWIO)."""
    def conv(a, w):
        return jax.lax.conv_general_dilated(
            a, w, window_strides=(1, 1), padding="SAME",
            dimension_numbers=("NHWC", "HWIO", "NHWC"),
            precision=jax.lax.Precision.HIGHEST)

    out = conv(x, w1)
    out = (out - mean1) / jnp.sqrt(var1 + eps) * gamma1 + beta1
    out = jnp.maximum(out, 0.0)
    out = conv(out, w2)
    out = (out - mean2) / jnp.sqrt(var2 + eps) * gamma2 + beta2
    out = out + x
    out = jnp.maximum(out, 0.0)
    out = jnp.clip(out, -100.0, 100.0)
    return jnp.nan_to_num(out, nan=0.0, posinf=1.0, neginf=-1.0)


if __name__ == "__main__":
    # Small shapes consistent with ResidualBlock(num_channels=4), input (2, 4, 16, 16) NCHW.
    N, C, H, W = 2, 4, 16, 16

    key = jax.random.PRNGKey(0)
    keys = jax.random.split(key, 9)

    # Deterministic synthetic parameters (conv3x3 weights in HWIO layout).
    fan_in = C * 3 * 3
    bound = 1.0 / (fan_in ** 0.5)
    w1 = jax.random.uniform(keys[0], (3, 3, C, C), jnp.float32, -bound, bound)
    w2 = jax.random.uniform(keys[1], (3, 3, C, C), jnp.float32, -bound, bound)
    gamma1 = 1.0 + 0.1 * jax.random.normal(keys[2], (C,), jnp.float32)
    beta1 = 0.1 * jax.random.normal(keys[3], (C,), jnp.float32)
    mean1 = 0.05 * jax.random.normal(keys[4], (C,), jnp.float32)
    var1 = 0.5 + jax.random.uniform(keys[5], (C,), jnp.float32)
    gamma2 = 1.0 + 0.1 * jax.random.normal(keys[6], (C,), jnp.float32)
    beta2 = 0.1 * jax.random.normal(keys[7], (C,), jnp.float32)
    mean2 = jnp.linspace(-0.1, 0.1, C, dtype=jnp.float32)
    var2 = jnp.linspace(0.6, 1.4, C, dtype=jnp.float32)

    # Input: build as NCHW (PyTorch convention) then transpose to the kernel's NHWC layout.
    x_nchw = jax.random.normal(keys[8], (N, C, H, W), jnp.float32)
    x = jnp.transpose(x_nchw, (0, 2, 3, 1))  # NHWC

    out = residual_block_forward(x, w1, w2,
                                 gamma1, beta1, mean1, var1,
                                 gamma2, beta2, mean2, var2)
    out = jax.block_until_ready(out)

    ref = _reference(x, w1, w2, gamma1, beta1, mean1, var1,
                     gamma2, beta2, mean2, var2)
    assert out.shape == (N, H, W, C)
    assert jnp.allclose(out, ref, rtol=1e-3, atol=1e-3), \
        f"max abs err {jnp.max(jnp.abs(out - ref))}"

    print("KERNEL_OK")
</pallas_src>

<mosaic_0001>
module attributes {stable_mosaic.version = 11 : i64} {
  func.func @_resblock_kernel(%arg0: i32, %arg1: memref<1x16x128xf32, #tpu.memory_space<vmem>>, %arg2: memref<46x128xf32, #tpu.memory_space<vmem>>, %arg3: memref<46x128xf32, #tpu.memory_space<vmem>>, %arg4: memref<1x16x128xf32, #tpu.memory_space<vmem>>, %arg5: memref<18x144xf32, #tpu.memory_space<vmem>>) attributes {dimension_semantics = [#tpu.dimension_semantics<parallel>], iteration_bounds = array<i64: 1>, scalar_prefetch = 0 : i64, scratch_operands = 1 : i64, tpu.core_type = #tpu.core_type<tc>, window_params = [{transform_indices = @transform_0, window_bounds = array<i64: 1, 16, 128>}, {pipeline_mode = #tpu.pipeline_mode<synchronous>, transform_indices = @transform_1, window_bounds = array<i64: 46, 128>}, {pipeline_mode = #tpu.pipeline_mode<synchronous>, transform_indices = @transform_2, window_bounds = array<i64: 46, 128>}, {transform_indices = @transform_3, window_bounds = array<i64: 1, 16, 128>}]} {
    %c0 = arith.constant 0 : index
    %c0_0 = arith.constant 0 : index
    %c0_1 = arith.constant 0 : index
    %0 = vector.load %arg1[%c0, %c0_0, %c0_1] : memref<1x16x128xf32, #tpu.memory_space<vmem>>, vector<1x16x128xf32>
    %1 = vector.shape_cast %0 : vector<1x16x128xf32> to vector<16x128xf32>
    %cst = arith.constant 0.000000e+00 : f32
    %2 = vector.broadcast %cst : f32 to vector<1x144xf32>
    %c0_2 = arith.constant 0 : index
    %c0_3 = arith.constant 0 : index
    %3 = vector.load %arg5[%c0_2, %c0_3] : memref<18x144xf32, #tpu.memory_space<vmem>>, vector<1x144xf32>
    tpu.vector_store %arg5[%c0_2, %c0_3], %2 {strides = array<i32>} : memref<18x144xf32, #tpu.memory_space<vmem>>, vector<1x144xf32>,
    %cst_4 = arith.constant 0.000000e+00 : f32
    %4 = vector.broadcast %cst_4 : f32 to vector<1x144xf32>
    %c17 = arith.constant 17 : index
    %c0_5 = arith.constant 0 : index
    %5 = vector.load %arg5[%c17, %c0_5] : memref<18x144xf32, #tpu.memory_space<vmem>>, vector<1x144xf32>
    tpu.vector_store %arg5[%c17, %c0_5], %4 {strides = array<i32>} : memref<18x144xf32, #tpu.memory_space<vmem>>, vector<1x144xf32>,
    %cst_6 = arith.constant 0.000000e+00 : f32
    %6 = vector.broadcast %cst_6 : f32 to vector<16x8xf32>
    %c1 = arith.constant 1 : index
    %c0_7 = arith.constant 0 : index
    %7 = vector.load %arg5[%c1, %c0_7] : memref<18x144xf32, #tpu.memory_space<vmem>>, vector<16x8xf32>
    tpu.vector_store %arg5[%c1, %c0_7], %6 {strides = array<i32>} : memref<18x144xf32, #tpu.memory_space<vmem>>, vector<16x8xf32>,
    %cst_8 = arith.constant 0.000000e+00 : f32
    %8 = vector.broadcast %cst_8 : f32 to vector<16x8xf32>
    %c1_9 = arith.constant 1 : index
    %c136 = arith.constant 136 : index
    %9 = vector.load %arg5[%c1_9, %c136] : memref<18x144xf32, #tpu.memory_space<vmem>>, vector<16x8xf32>
    tpu.vector_store %arg5[%c1_9, %c136], %8 {strides = array<i32>} : memref<18x144xf32, #tpu.memory_space<vmem>>, vector<16x8xf32>,
    %c1_10 = arith.constant 1 : index
    %c8 = arith.constant 8 : index
    %10 = vector.load %arg5[%c1_10, %c8] : memref<18x144xf32, #tpu.memory_space<vmem>>, vector<16x128xf32>
    tpu.vector_store %arg5[%c1_10, %c8], %1 {strides = array<i32>} : memref<18x144xf32, #tpu.memory_space<vmem>>, vector<16x128xf32>,
    %cst_11 = arith.constant 0.000000e+00 : f32
    %11 = vector.broadcast %cst_11 : f32 to vector<16x128xf32>
    %c45 = arith.constant 45 : index
    %c0_12 = arith.constant 0 : index
    %12 = vector.load %arg2[%c45, %c0_12] : memref<46x128xf32, #tpu.memory_space<vmem>>, vector<1x128xf32>
    %13 = vector.broadcast %12 : vector<1x128xf32> to vector<16x128xf32>
    %14 = arith.addf %11, %13 : vector<16x128xf32>
    %c0_13 = arith.constant 0 : index
    %c1_14 = arith.constant 1 : index
    %15 = vector.load %arg5[%c0_13, %c1_14] : memref<18x144xf32, #tpu.memory_space<vmem>>, vector<18x128xf32>
    %16 = vector.extract_strided_slice %15 {offsets = [0, 0], sizes = [16, 128], strides = [1, 1]} : vector<18x128xf32> to vector<16x128xf32>
    %c0_15 = arith.constant 0 : index
    %c0_16 = arith.constant 0 : index
    %17 = vector.load %arg2[%c0_15, %c0_16] : memref<46x128xf32, #tpu.memory_space<vmem>>, vector<1x128xf32>
    %18 = vector.broadcast %17 : vector<1x128xf32> to vector<16x128xf32>
    %19 = arith.mulf %16, %18 : vector<16x128xf32>
    %20 = arith.addf %14, %19 : vector<16x128xf32>
    %21 = vector.extract_strided_slice %15 {offsets = [1, 0], sizes = [16, 128], strides = [1, 1]} : vector<18x128xf32> to vector<16x128xf32>
    %c15 = arith.constant 15 : index
    %c0_17 = arith.constant 0 : index
    %22 = vector.load %arg2[%c15, %c0_17] : memref<46x128xf32, #tpu.memory_space<vmem>>, vector<1x128xf32>
    %23 = vector.broadcast %22 : vector<1x128xf32> to vector<16x128xf32>
    %24 = arith.mulf %21, %23 : vector<16x128xf32>
    %25 = arith.addf %20, %24 : vector<16x128xf32>
    %26 = vector.extract_strided_slice %15 {offsets = [2, 0], sizes = [16, 128], strides = [1, 1]} : vector<18x128xf32> to vector<16x128xf32>
    %c30 = arith.constant 30 : index
    %c0_18 = arith.constant 0 : index
    %27 = vector.load %arg2[%c30, %c0_18] : memref<46x128xf32, #tpu.memory_space<vmem>>, vector<1x128xf32>
    %28 = vector.broadcast %27 : vector<1x128xf32> to vector<16x128xf32>
    %29 = arith.mulf %26, %28 : vector<16x128xf32>
    %30 = arith.addf %25, %29 : vector<16x128xf32>
    %c0_19 = arith.constant 0 : index
    %c2 = arith.constant 2 : index
    %31 = vector.load %arg5[%c0_19, %c2] : memref<18x144xf32, #tpu.memory_space<vmem>>, vector<18x128xf32>
    %32 = vector.extract_strided_slice %31 {offsets = [0, 0], sizes = [16, 128], strides = [1, 1]} : vector<18x128xf32> to vector<16x128xf32>
    %c1_20 = arith.constant 1 : index
    %c0_21 = arith.constant 0 : index
    %33 = vector.load %arg2[%c1_20, %c0_21] : memref<46x128xf32, #tpu.memory_space<vmem>>, vector<1x128xf32>
    %34 = vector.broadcast %33 : vector<1x128xf32> to vector<16x128xf32>
    %35 = arith.mulf %32, %34 : vector<16x128xf32>
    %36 = arith.addf %30, %35 : vector<16x128xf32>
    %37 = vector.extract_strided_slice %31 {offsets = [1, 0], sizes = [16, 128], strides = [1, 1]} : vector<18x128xf32> to vector<16x128xf32>
    %c16 = arith.constant 16 : index
    %c0_22 = arith.constant 0 : index
    %38 = vector.load %arg2[%c16, %c0_22] : memref<46x128xf32, #tpu.memory_space<vmem>>, vector<1x128xf32>
    %39 = vector.broadcast %38 : vector<1x128xf32> to vector<16x128xf32>
    %40 = arith.mulf %37, %39 : vector<16x128xf32>
    %41 = arith.addf %36, %40 : vector<16x128xf32>
    %42 = vector.extract_strided_slice %31 {offsets = [2, 0], sizes = [16, 128], strides = [1, 1]} : vector<18x128xf32> to vector<16x128xf32>
    %c31 = arith.constant 31 : index
    %c0_23 = arith.constant 0 : index
    %43 = vector.load %arg2[%c31, %c0_23] : memref<46x128xf32, #tpu.memory_space<vmem>>, vector<1x128xf32>
    %44 = vector.broadcast %43 : vector<1x128xf32> to vector<16x128xf32>
    %45 = arith.mulf %42, %44 : vector<16x128xf32>
    %46 = arith.addf %41, %45 : vector<16x128xf32>
    %c0_24 = arith.constant 0 : index
    %c3 = arith.constant 3 : index
    %47 = vector.load %arg5[%c0_24, %c3] : memref<18x144xf32, #tpu.memory_space<vmem>>, vector<18x128xf32>
    %48 = vector.extract_strided_slice %47 {offsets = [0, 0], sizes = [16, 128], strides = [1, 1]} : vector<18x128xf32> to vector<16x128xf32>
    %c2_25 = arith.constant 2 : index
    %c0_26 = arith.constant 0 : index
    %49 = vector.load %arg2[%c2_25, %c0_26] : memref<46x128xf32, #tpu.memory_space<vmem>>, vector<1x128xf32>
    %50 = vector.broadcast %49 : vector<1x128xf32> to vector<16x128xf32>
    %51 = arith.mulf %48, %50 : vector<16x128xf32>
    %52 = arith.addf %46, %51 : vector<16x128xf32>
    %53 = vector.extract_strided_slice %47 {offsets = [1, 0], sizes = [16, 128], strides = [1, 1]} : vector<18x128xf32> to vector<16x128xf32>
    %c17_27 = arith.constant 17 : index
    %c0_28 = arith.constant 0 : index
    %54 = vector.load %arg2[%c17_27, %c0_28] : memref<46x128xf32, #tpu.memory_space<vmem>>, vector<1x128xf32>
    %55 = vector.broadcast %54 : vector<1x128xf32> to vector<16x128xf32>
    %56 = arith.mulf %53, %55 : vector<16x128xf32>
    %57 = arith.addf %52, %56 : vector<16x128xf32>
    %58 = vector.extract_strided_slice %47 {offsets = [2, 0], sizes = [16, 128], strides = [1, 1]} : vector<18x128xf32> to vector<16x128xf32>
    %c32 = arith.constant 32 : index
    %c0_29 = arith.constant 0 : index
    %59 = vector.load %arg2[%c32, %c0_29] : memref<46x128xf32, #tpu.memory_space<vmem>>, vector<1x128xf32>
    %60 = vector.broadcast %59 : vector<1x128xf32> to vector<16x128xf32>
    %61 = arith.mulf %58, %60 : vector<16x128xf32>
    %62 = arith.addf %57, %61 : vector<16x128xf32>
    %c0_30 = arith.constant 0 : index
    %c4 = arith.constant 4 : index
    %63 = vector.load %arg5[%c0_30, %c4] : memref<18x144xf32, #tpu.memory_space<vmem>>, vector<18x128xf32>
    %64 = vector.extract_strided_slice %63 {offsets = [0, 0], sizes = [16, 128], strides = [1, 1]} : vector<18x128xf32> to vector<16x128xf32>
    %c3_31 = arith.constant 3 : index
    %c0_32 = arith.constant 0 : index
    %65 = vector.load %arg2[%c3_31, %c0_32] : memref<46x128xf32, #tpu.memory_space<vmem>>, vector<1x128xf32>
    %66 = vector.broadcast %65 : vector<1x128xf32> to vector<16x128xf32>
    %67 = arith.mulf %64, %66 : vector<16x128xf32>
    %68 = arith.addf %62, %67 : vector<16x128xf32>
    %69 = vector.extract_strided_slice %63 {offsets = [1, 0], sizes = [16, 128], strides = [1, 1]} : vector<18x128xf32> to vector<16x128xf32>
    %c18 = arith.constant 18 : index
    %c0_33 = arith.constant 0 : index
    %70 = vector.load %arg2[%c18, %c0_33] : memref<46x128xf32, #tpu.memory_space<vmem>>, vector<1x128xf32>
    %71 = vector.broadcast %70 : vector<1x128xf32> to vector<16x128xf32>
    %72 = arith.mulf %69, %71 : vector<16x128xf32>
    %73 = arith.addf %68, %72 : vector<16x128xf32>
    %74 = vector.extract_strided_slice %63 {offsets = [2, 0], sizes = [16, 128], strides = [1, 1]} : vector<18x128xf32> to vector<16x128xf32>
    %c33 = arith.constant 33 : index
    %c0_34 = arith.constant 0 : index
    %75 = vector.load %arg2[%c33, %c0_34] : memref<46x128xf32, #tpu.memory_space<vmem>>, vector<1x128xf32>
    %76 = vector.broadcast %75 : vector<1x128xf32> to vector<16x128xf32>
    %77 = arith.mulf %74, %76 : vector<16x128xf32>
    %78 = arith.addf %73, %77 : vector<16x128xf32>
    %c0_35 = arith.constant 0 : index
    %c5 = arith.constant 5 : index
    %79 = vector.load %arg5[%c0_35, %c5] : memref<18x144xf32, #tpu.memory_space<vmem>>, vector<18x128xf32>
    %80 = vector.extract_strided_slice %79 {offsets = [0, 0], sizes = [16, 128], strides = [1, 1]} : vector<18x128xf32> to vector<16x128xf32>
    %c4_36 = arith.constant 4 : index
    %c0_37 = arith.constant 0 : index
    %81 = vector.load %arg2[%c4_36, %c0_37] : memref<46x128xf32, #tpu.memory_space<vmem>>, vector<1x128xf32>
    %82 = vector.broadcast %81 : vector<1x128xf32> to vector<16x128xf32>
    %83 = arith.mulf %80, %82 : vector<16x128xf32>
    %84 = arith.addf %78, %83 : vector<16x128xf32>
    %85 = vector.extract_strided_slice %79 {offsets = [1, 0], sizes = [16, 128], strides = [1, 1]} : vector<18x128xf32> to vector<16x128xf32>
    %c19 = arith.constant 19 : index
    %c0_38 = arith.constant 0 : index
    %86 = vector.load %arg2[%c19, %c0_38] : memref<46x128xf32, #tpu.memory_space<vmem>>, vector<1x128xf32>
    %87 = vector.broadcast %86 : vector<1x128xf32> to vector<16x128xf32>
    %88 = arith.mulf %85, %87 : vector<16x128xf32>
    %89 = arith.addf %84, %88 : vector<16x128xf32>
    %90 = vector.extract_strided_slice %79 {offsets = [2, 0], sizes = [16, 128], strides = [1, 1]} : vector<18x128xf32> to vector<16x128xf32>
    %c34 = arith.constant 34 : index
    %c0_39 = arith.constant 0 : index
    %91 = vector.load %arg2[%c34, %c0_39] : memref<46x128xf32, #tpu.memory_space<vmem>>, vector<1x128xf32>
    %92 = vector.broadcast %91 : vector<1x128xf32> to vector<16x128xf32>
    %93 = arith.mulf %90, %92 : vector<16x128xf32>
    %94 = arith.addf %89, %93 : vector<16x128xf32>
    %c0_40 = arith.constant 0 : index
    %c6 = arith.constant 6 : index
    %95 = vector.load %arg5[%c0_40, %c6] : memref<18x144xf32, #tpu.memory_space<vmem>>, vector<18x128xf32>
    %96 = vector.extract_strided_slice %95 {offsets = [0, 0], sizes = [16, 128], strides = [1, 1]} : vector<18x128xf32> to vector<16x128xf32>
    %c5_41 = arith.constant 5 : index
    %c0_42 = arith.constant 0 : index
    %97 = vector.load %arg2[%c5_41, %c0_42] : memref<46x128xf32, #tpu.memory_space<vmem>>, vector<1x128xf32>
    %98 = vector.broadcast %97 : vector<1x128xf32> to vector<16x128xf32>
    %99 = arith.mulf %96, %98 : vector<16x128xf32>
    %100 = arith.addf %94, %99 : vector<16x128xf32>
    %101 = vector.extract_strided_slice %95 {offsets = [1, 0], sizes = [16, 128], strides = [1, 1]} : vector<18x128xf32> to vector<16x128xf32>
    %c20 = arith.constant 20 : index
    %c0_43 = arith.constant 0 : index
    %102 = vector.load %arg2[%c20, %c0_43] : memref<46x128xf32, #tpu.memory_space<vmem>>, vector<1x128xf32>
    %103 = vector.broadcast %102 : vector<1x128xf32> to vector<16x128xf32>
    %104 = arith.mulf %101, %103 : vector<16x128xf32>
    %105 = arith.addf %100, %104 : vector<16x128xf32>
    %106 = vector.extract_strided_slice %95 {offsets = [2, 0], sizes = [16, 128], strides = [1, 1]} : vector<18x128xf32> to vector<16x128xf32>
    %c35 = arith.constant 35 : index
    %c0_44 = arith.constant 0 : index
    %107 = vector.load %arg2[%c35, %c0_44] : memref<46x128xf32, #tpu.memory_space<vmem>>, vector<1x128xf32>
    %108 = vector.broadcast %107 : vector<1x128xf32> to vector<16x128xf32>
    %109 = arith.mulf %106, %108 : vector<16x128xf32>
    %110 = arith.addf %105, %109 : vector<16x128xf32>
    %c0_45 = arith.constant 0 : index
    %c7 = arith.constant 7 : index
    %111 = vector.load %arg5[%c0_45, %c7] : memref<18x144xf32, #tpu.memory_space<vmem>>, vector<18x128xf32>
    %112 = vector.extract_strided_slice %111 {offsets = [0, 0], sizes = [16, 128], strides = [1, 1]} : vector<18x128xf32> to vector<16x128xf32>
    %c6_46 = arith.constant 6 : index
    %c0_47 = arith.constant 0 : index
    %113 = vector.load %arg2[%c6_46, %c0_47] : memref<46x128xf32, #tpu.memory_space<vmem>>, vector<1x128xf32>
    %114 = vector.broadcast %113 : vector<1x128xf32> to vector<16x128xf32>
    %115 = arith.mulf %112, %114 : vector<16x128xf32>
    %116 = arith.addf %110, %115 : vector<16x128xf32>
    %117 = vector.extract_strided_slice %111 {offsets = [1, 0], sizes = [16, 128], strides = [1, 1]} : vector<18x128xf32> to vector<16x128xf32>
    %c21 = arith.constant 21 : index
    %c0_48 = arith.constant 0 : index
    %118 = vector.load %arg2[%c21, %c0_48] : memref<46x128xf32, #tpu.memory_space<vmem>>, vector<1x128xf32>
    %119 = vector.broadcast %118 : vector<1x128xf32> to vector<16x128xf32>
    %120 = arith.mulf %117, %119 : vector<16x128xf32>
    %121 = arith.addf %116, %120 : vector<16x128xf32>
    %122 = vector.extract_strided_slice %111 {offsets = [2, 0], sizes = [16, 128], strides = [1, 1]} : vector<18x128xf32> to vector<16x128xf32>
    %c36 = arith.constant 36 : index
    %c0_49 = arith.constant 0 : index
    %123 = vector.load %arg2[%c36, %c0_49] : memref<46x128xf32, #tpu.memory_space<vmem>>, vector<1x128xf32>
    %124 = vector.broadcast %123 : vector<1x128xf32> to vector<16x128xf32>
    %125 = arith.mulf %122, %124 : vector<16x128xf32>
    %126 = arith.addf %121, %125 : vector<16x128xf32>
    %c0_50 = arith.constant 0 : index
    %c8_51 = arith.constant 8 : index
    %127 = vector.load %arg5[%c0_50, %c8_51] : memref<18x144xf32, #tpu.memory_space<vmem>>, vector<18x128xf32>
    %128 = vector.extract_strided_slice %127 {offsets = [0, 0], sizes = [16, 128], strides = [1, 1]} : vector<18x128xf32> to vector<16x128xf32>
    %c7_52 = arith.constant 7 : index
    %c0_53 = arith.constant 0 : index
    %129 = vector.load %arg2[%c7_52, %c0_53] : memref<46x128xf32, #tpu.memory_space<vmem>>, vector<1x128xf32>
    %130 = vector.broadcast %129 : vector<1x128xf32> to vector<16x128xf32>
    %131 = arith.mulf %128, %130 : vector<16x128xf32>
    %132 = arith.addf %126, %131 : vector<16x128xf32>
    %133 = vector.extract_strided_slice %127 {offsets = [1, 0], sizes = [16, 128], strides = [1, 1]} : vector<18x128xf32> to vector<16x128xf32>
    %c22 = arith.constant 22 : index
    %c0_54 = arith.constant 0 : index
    %134 = vector.load %arg2[%c22, %c0_54] : memref<46x128xf32, #tpu.memory_space<vmem>>, vector<1x128xf32>
    %135 = vector.broadcast %134 : vector<1x128xf32> to vector<16x128xf32>
    %136 = arith.mulf %133, %135 : vector<16x128xf32>
    %137 = arith.addf %132, %136 : vector<16x128xf32>
    %138 = vector.extract_strided_slice %127 {offsets = [2, 0], sizes = [16, 128], strides = [1, 1]} : vector<18x128xf32> to vector<16x128xf32>
    %c37 = arith.constant 37 : index
    %c0_55 = arith.constant 0 : index
    %139 = vector.load %arg2[%c37, %c0_55] : memref<46x128xf32, #tpu.memory_space<vmem>>, vector<1x128xf32>
    %140 = vector.broadcast %139 : vector<1x128xf32> to vector<16x128xf32>
    %141 = arith.mulf %138, %140 : vector<16x128xf32>
    %142 = arith.addf %137, %141 : vector<16x128xf32>
    %c0_56 = arith.constant 0 : index
    %c9 = arith.constant 9 : index
    %143 = vector.load %arg5[%c0_56, %c9] : memref<18x144xf32, #tpu.memory_space<vmem>>, vector<18x128xf32>
    %144 = vector.extract_strided_slice %143 {offsets = [0, 0], sizes = [16, 128], strides = [1, 1]} : vector<18x128xf32> to vector<16x128xf32>
    %c8_57 = arith.constant 8 : index
    %c0_58 = arith.constant 0 : index
    %145 = vector.load %arg2[%c8_57, %c0_58] : memref<46x128xf32, #tpu.memory_space<vmem>>, vector<1x128xf32>
    %146 = vector.broadcast %145 : vector<1x128xf32> to vector<16x128xf32>
    %147 = arith.mulf %144, %146 : vector<16x128xf32>
    %148 = arith.addf %142, %147 : vector<16x128xf32>
    %149 = vector.extract_strided_slice %143 {offsets = [1, 0], sizes = [16, 128], strides = [1, 1]} : vector<18x128xf32> to vector<16x128xf32>
    %c23 = arith.constant 23 : index
    %c0_59 = arith.constant 0 : index
    %150 = vector.load %arg2[%c23, %c0_59] : memref<46x128xf32, #tpu.memory_space<vmem>>, vector<1x128xf32>
    %151 = vector.broadcast %150 : vector<1x128xf32> to vector<16x128xf32>
    %152 = arith.mulf %149, %151 : vector<16x128xf32>
    %153 = arith.addf %148, %152 : vector<16x128xf32>
    %154 = vector.extract_strided_slice %143 {offsets = [2, 0], sizes = [16, 128], strides = [1, 1]} : vector<18x128xf32> to vector<16x128xf32>
    %c38 = arith.constant 38 : index
    %c0_60 = arith.constant 0 : index
    %155 = vector.load %arg2[%c38, %c0_60] : memref<46x128xf32, #tpu.memory_space<vmem>>, vector<1x128xf32>
    %156 = vector.broadcast %155 : vector<1x128xf32> to vector<16x128xf32>
    %157 = arith.mulf %154, %156 : vector<16x128xf32>
    %158 = arith.addf %153, %157 : vector<16x128xf32>
    %c0_61 = arith.constant 0 : index
    %c10 = arith.constant 10 : index
    %159 = vector.load %arg5[%c0_61, %c10] : memref<18x144xf32, #tpu.memory_space<vmem>>, vector<18x128xf32>
    %160 = vector.extract_strided_slice %159 {offsets = [0, 0], sizes = [16, 128], strides = [1, 1]} : vector<18x128xf32> to vector<16x128xf32>
    %c9_62 = arith.constant 9 : index
    %c0_63 = arith.constant 0 : index
    %161 = vector.load %arg2[%c9_62, %c0_63] : memref<46x128xf32, #tpu.memory_space<vmem>>, vector<1x128xf32>
    %162 = vector.broadcast %161 : vector<1x128xf32> to vector<16x128xf32>
    %163 = arith.mulf %160, %162 : vector<16x128xf32>
    %164 = arith.addf %158, %163 : vector<16x128xf32>
    %165 = vector.extract_strided_slice %159 {offsets = [1, 0], sizes = [16, 128], strides = [1, 1]} : vector<18x128xf32> to vector<16x128xf32>
    %c24 = arith.constant 24 : index
    %c0_64 = arith.constant 0 : index
    %166 = vector.load %arg2[%c24, %c0_64] : memref<46x128xf32, #tpu.memory_space<vmem>>, vector<1x128xf32>
    %167 = vector.broadcast %166 : vector<1x128xf32> to vector<16x128xf32>
    %168 = arith.mulf %165, %167 : vector<16x128xf32>
    %169 = arith.addf %164, %168 : vector<16x128xf32>
    %170 = vector.extract_strided_slice %159 {offsets = [2, 0], sizes = [16, 128], strides = [1, 1]} : vector<18x128xf32> to vector<16x128xf32>
    %c39 = arith.constant 39 : index
    %c0_65 = arith.constant 0 : index
    %171 = vector.load %arg2[%c39, %c0_65] : memref<46x128xf32, #tpu.memory_space<vmem>>, vector<1x128xf32>
    %172 = vector.broadcast %171 : vector<1x128xf32> to vector<16x128xf32>
    %173 = arith.mulf %170, %172 : vector<16x128xf32>
    %174 = arith.addf %169, %173 : vector<16x128xf32>
    %c0_66 = arith.constant 0 : index
    %c11 = arith.constant 11 : index
    %175 = vector.load %arg5[%c0_66, %c11] : memref<18x144xf32, #tpu.memory_space<vmem>>, vector<18x128xf32>
    %176 = vector.extract_strided_slice %175 {offsets = [0, 0], sizes = [16, 128], strides = [1, 1]} : vector<18x128xf32> to vector<16x128xf32>
    %c10_67 = arith.constant 10 : index
    %c0_68 = arith.constant 0 : index
    %177 = vector.load %arg2[%c10_67, %c0_68] : memref<46x128xf32, #tpu.memory_space<vmem>>, vector<1x128xf32>
    %178 = vector.broadcast %177 : vector<1x128xf32> to vector<16x128xf32>
    %179 = arith.mulf %176, %178 : vector<16x128xf32>
    %180 = arith.addf %174, %179 : vector<16x128xf32>
    %181 = vector.extract_strided_slice %175 {offsets = [1, 0], sizes = [16, 128], strides = [1, 1]} : vector<18x128xf32> to vector<16x128xf32>
    %c25 = arith.constant 25 : index
    %c0_69 = arith.constant 0 : index
    %182 = vector.load %arg2[%c25, %c0_69] : memref<46x128xf32, #tpu.memory_space<vmem>>, vector<1x128xf32>
    %183 = vector.broadcast %182 : vector<1x128xf32> to vector<16x128xf32>
    %184 = arith.mulf %181, %183 : vector<16x128xf32>
    %185 = arith.addf %180, %184 : vector<16x128xf32>
    %186 = vector.extract_strided_slice %175 {offsets = [2, 0], sizes = [16, 128], strides = [1, 1]} : vector<18x128xf32> to vector<16x128xf32>
    %c40 = arith.constant 40 : index
    %c0_70 = arith.constant 0 : index
    %187 = vector.load %arg2[%c40, %c0_70] : memref<46x128xf32, #tpu.memory_space<vmem>>, vector<1x128xf32>
    %188 = vector.broadcast %187 : vector<1x128xf32> to vector<16x128xf32>
    %189 = arith.mulf %186, %188 : vector<16x128xf32>
    %190 = arith.addf %185, %189 : vector<16x128xf32>
    %c0_71 = arith.constant 0 : index
    %c12 = arith.constant 12 : index
    %191 = vector.load %arg5[%c0_71, %c12] : memref<18x144xf32, #tpu.memory_space<vmem>>, vector<18x128xf32>
    %192 = vector.extract_strided_slice %191 {offsets = [0, 0], sizes = [16, 128], strides = [1, 1]} : vector<18x128xf32> to vector<16x128xf32>
    %c11_72 = arith.constant 11 : index
    %c0_73 = arith.constant 0 : index
    %193 = vector.load %arg2[%c11_72, %c0_73] : memref<46x128xf32, #tpu.memory_space<vmem>>, vector<1x128xf32>
    %194 = vector.broadcast %193 : vector<1x128xf32> to vector<16x128xf32>
    %195 = arith.mulf %192, %194 : vector<16x128xf32>
    %196 = arith.addf %190, %195 : vector<16x128xf32>
    %197 = vector.extract_strided_slice %191 {offsets = [1, 0], sizes = [16, 128], strides = [1, 1]} : vector<18x128xf32> to vector<16x128xf32>
    %c26 = arith.constant 26 : index
    %c0_74 = arith.constant 0 : index
    %198 = vector.load %arg2[%c26, %c0_74] : memref<46x128xf32, #tpu.memory_space<vmem>>, vector<1x128xf32>
    %199 = vector.broadcast %198 : vector<1x128xf32> to vector<16x128xf32>
    %200 = arith.mulf %197, %199 : vector<16x128xf32>
    %201 = arith.addf %196, %200 : vector<16x128xf32>
    %202 = vector.extract_strided_slice %191 {offsets = [2, 0], sizes = [16, 128], strides = [1, 1]} : vector<18x128xf32> to vector<16x128xf32>
    %c41 = arith.constant 41 : index
    %c0_75 = arith.constant 0 : index
    %203 = vector.load %arg2[%c41, %c0_75] : memref<46x128xf32, #tpu.memory_space<vmem>>, vector<1x128xf32>
    %204 = vector.broadcast %203 : vector<1x128xf32> to vector<16x128xf32>
    %205 = arith.mulf %202, %204 : vector<16x128xf32>
    %206 = arith.addf %201, %205 : vector<16x128xf32>
    %c0_76 = arith.constant 0 : index
    %c13 = arith.constant 13 : index
    %207 = vector.load %arg5[%c0_76, %c13] : memref<18x144xf32, #tpu.memory_space<vmem>>, vector<18x128xf32>
    %208 = vector.extract_strided_slice %207 {offsets = [0, 0], sizes = [16, 128], strides = [1, 1]} : vector<18x128xf32> to vector<16x128xf32>
    %c12_77 = arith.constant 12 : index
    %c0_78 = arith.constant 0 : index
    %209 = vector.load %arg2[%c12_77, %c0_78] : memref<46x128xf32, #tpu.memory_space<vmem>>, vector<1x128xf32>
    %210 = vector.broadcast %209 : vector<1x128xf32> to vector<16x128xf32>
    %211 = arith.mulf %208, %210 : vector<16x128xf32>
    %212 = arith.addf %206, %211 : vector<16x128xf32>
    %213 = vector.extract_strided_slice %207 {offsets = [1, 0], sizes = [16, 128], strides = [1, 1]} : vector<18x128xf32> to vector<16x128xf32>
    %c27 = arith.constant 27 : index
    %c0_79 = arith.constant 0 : index
    %214 = vector.load %arg2[%c27, %c0_79] : memref<46x128xf32, #tpu.memory_space<vmem>>, vector<1x128xf32>
    %215 = vector.broadcast %214 : vector<1x128xf32> to vector<16x128xf32>
    %216 = arith.mulf %213, %215 : vector<16x128xf32>
    %217 = arith.addf %212, %216 : vector<16x128xf32>
    %218 = vector.extract_strided_slice %207 {offsets = [2, 0], sizes = [16, 128], strides = [1, 1]} : vector<18x128xf32> to vector<16x128xf32>
    %c42 = arith.constant 42 : index
    %c0_80 = arith.constant 0 : index
    %219 = vector.load %arg2[%c42, %c0_80] : memref<46x128xf32, #tpu.memory_space<vmem>>, vector<1x128xf32>
    %220 = vector.broadcast %219 : vector<1x128xf32> to vector<16x128xf32>
    %221 = arith.mulf %218, %220 : vector<16x128xf32>
    %222 = arith.addf %217, %221 : vector<16x128xf32>
    %c0_81 = arith.constant 0 : index
    %c14 = arith.constant 14 : index
    %223 = vector.load %arg5[%c0_81, %c14] : memref<18x144xf32, #tpu.memory_space<vmem>>, vector<18x128xf32>
    %224 = vector.extract_strided_slice %223 {offsets = [0, 0], sizes = [16, 128], strides = [1, 1]} : vector<18x128xf32> to vector<16x128xf32>
    %c13_82 = arith.constant 13 : index
    %c0_83 = arith.constant 0 : index
    %225 = vector.load %arg2[%c13_82, %c0_83] : memref<46x128xf32, #tpu.memory_space<vmem>>, vector<1x128xf32>
    %226 = vector.broadcast %225 : vector<1x128xf32> to vector<16x128xf32>
    %227 = arith.mulf %224, %226 : vector<16x128xf32>
    %228 = arith.addf %222, %227 : vector<16x128xf32>
    %229 = vector.extract_strided_slice %223 {offsets = [1, 0], sizes = [16, 128], strides = [1, 1]} : vector<18x128xf32> to vector<16x128xf32>
    %c28 = arith.constant 28 : index
    %c0_84 = arith.constant 0 : index
    %230 = vector.load %arg2[%c28, %c0_84] : memref<46x128xf32, #tpu.memory_space<vmem>>, vector<1x128xf32>
    %231 = vector.broadcast %230 : vector<1x128xf32> to vector<16x128xf32>
    %232 = arith.mulf %229, %231 : vector<16x128xf32>
    %233 = arith.addf %228, %232 : vector<16x128xf32>
    %234 = vector.extract_strided_slice %223 {offsets = [2, 0], sizes = [16, 128], strides = [1, 1]} : vector<18x128xf32> to vector<16x128xf32>
    %c43 = arith.constant 43 : index
    %c0_85 = arith.constant 0 : index
    %235 = vector.load %arg2[%c43, %c0_85] : memref<46x128xf32, #tpu.memory_space<vmem>>, vector<1x128xf32>
    %236 = vector.broadcast %235 : vector<1x128xf32> to vector<16x128xf32>
    %237 = arith.mulf %234, %236 : vector<16x128xf32>
    %238 = arith.addf %233, %237 : vector<16x128xf32>
    %c0_86 = arith.constant 0 : index
    %c15_87 = arith.constant 15 : index
    %239 = vector.load %arg5[%c0_86, %c15_87] : memref<18x144xf32, #tpu.memory_space<vmem>>, vector<18x128xf32>
    %240 = vector.extract_strided_slice %239 {offsets = [0, 0], sizes = [16, 128], strides = [1, 1]} : vector<18x128xf32> to vector<16x128xf32>
    %c14_88 = arith.constant 14 : index
    %c0_89 = arith.constant 0 : index
    %241 = vector.load %arg2[%c14_88, %c0_89] : memref<46x128xf32, #tpu.memory_space<vmem>>, vector<1x128xf32>
    %242 = vector.broadcast %241 : vector<1x128xf32> to vector<16x128xf32>
    %243 = arith.mulf %240, %242 : vector<16x128xf32>
    %244 = arith.addf %238, %243 : vector<16x128xf32>
    %245 = vector.extract_strided_slice %239 {offsets = [1, 0], sizes = [16, 128], strides = [1, 1]} : vector<18x128xf32> to vector<16x128xf32>
    %c29 = arith.constant 29 : index
    %c0_90 = arith.constant 0 : index
    %246 = vector.load %arg2[%c29, %c0_90] : memref<46x128xf32, #tpu.memory_space<vmem>>, vector<1x128xf32>
    %247 = vector.broadcast %246 : vector<1x128xf32> to vector<16x128xf32>
    %248 = arith.mulf %245, %247 : vector<16x128xf32>
    %249 = arith.addf %244, %248 : vector<16x128xf32>
    %250 = vector.extract_strided_slice %239 {offsets = [2, 0], sizes = [16, 128], strides = [1, 1]} : vector<18x128xf32> to vector<16x128xf32>
    %c44 = arith.constant 44 : index
    %c0_91 = arith.constant 0 : index
    %251 = vector.load %arg2[%c44, %c0_91] : memref<46x128xf32, #tpu.memory_space<vmem>>, vector<1x128xf32>
    %252 = vector.broadcast %251 : vector<1x128xf32> to vector<16x128xf32>
    %253 = arith.mulf %250, %252 : vector<16x128xf32>
    %254 = arith.addf %249, %253 : vector<16x128xf32>
    %cst_92 = arith.constant 0.000000e+00 : f32
    %255 = vector.broadcast %cst_92 : f32 to vector<16x128xf32>
    %256 = arith.maximumf %254, %255 : vector<16x128xf32>
    %c1_93 = arith.constant 1 : index
    %c8_94 = arith.constant 8 : index
    %257 = vector.load %arg5[%c1_93, %c8_94] : memref<18x144xf32, #tpu.memory_space<vmem>>, vector<16x128xf32>
    tpu.vector_store %arg5[%c1_93, %c8_94], %256 {strides = array<i32>} : memref<18x144xf32, #tpu.memory_space<vmem>>, vector<16x128xf32>,
    %cst_95 = arith.constant 0.000000e+00 : f32
    %258 = vector.broadcast %cst_95 : f32 to vector<16x128xf32>
    %c45_96 = arith.constant 45 : index
    %c0_97 = arith.constant 0 : index
    %259 = vector.load %arg3[%c45_96, %c0_97] : memref<46x128xf32, #tpu.memory_space<vmem>>, vector<1x128xf32>
    %260 = vector.broadcast %259 : vector<1x128xf32> to vector<16x128xf32>
    %261 = arith.addf %258, %260 : vector<16x128xf32>
    %c0_98 = arith.constant 0 : index
    %c1_99 = arith.constant 1 : index
    %262 = vector.load %arg5[%c0_98, %c1_99] : memref<18x144xf32, #tpu.memory_space<vmem>>, vector<18x128xf32>
    %263 = vector.extract_strided_slice %262 {offsets = [0, 0], sizes = [16, 128], strides = [1, 1]} : vector<18x128xf32> to vector<16x128xf32>
    %c0_100 = arith.constant 0 : index
    %c0_101 = arith.constant 0 : index
    %264 = vector.load %arg3[%c0_100, %c0_101] : memref<46x128xf32, #tpu.memory_space<vmem>>, vector<1x128xf32>
    %265 = vector.broadcast %264 : vector<1x128xf32> to vector<16x128xf32>
    %266 = arith.mulf %263, %265 : vector<16x128xf32>
    %267 = arith.addf %261, %266 : vector<16x128xf32>
    %268 = vector.extract_strided_slice %262 {offsets = [1, 0], sizes = [16, 128], strides = [1, 1]} : vector<18x128xf32> to vector<16x128xf32>
    %c15_102 = arith.constant 15 : index
    %c0_103 = arith.constant 0 : index
    %269 = vector.load %arg3[%c15_102, %c0_103] : memref<46x128xf32, #tpu.memory_space<vmem>>, vector<1x128xf32>
    %270 = vector.broadcast %269 : vector<1x128xf32> to vector<16x128xf32>
    %271 = arith.mulf %268, %270 : vector<16x128xf32>
    %272 = arith.addf %267, %271 : vector<16x128xf32>
    %273 = vector.extract_strided_slice %262 {offsets = [2, 0], sizes = [16, 128], strides = [1, 1]} : vector<18x128xf32> to vector<16x128xf32>
    %c30_104 = arith.constant 30 : index
    %c0_105 = arith.constant 0 : index
    %274 = vector.load %arg3[%c30_104, %c0_105] : memref<46x128xf32, #tpu.memory_space<vmem>>, vector<1x128xf32>
    %275 = vector.broadcast %274 : vector<1x128xf32> to vector<16x128xf32>
    %276 = arith.mulf %273, %275 : vector<16x128xf32>
    %277 = arith.addf %272, %276 : vector<16x128xf32>
    %c0_106 = arith.constant 0 : index
    %c2_107 = arith.constant 2 : index
    %278 = vector.load %arg5[%c0_106, %c2_107] : memref<18x144xf32, #tpu.memory_space<vmem>>, vector<18x128xf32>
    %279 = vector.extract_strided_slice %278 {offsets = [0, 0], sizes = [16, 128], strides = [1, 1]} : vector<18x128xf32> to vector<16x128xf32>
    %c1_108 = arith.constant 1 : index
    %c0_109 = arith.constant 0 : index
    %280 = vector.load %arg3[%c1_108, %c0_109] : memref<46x128xf32, #tpu.memory_space<vmem>>, vector<1x128xf32>
    %281 = vector.broadcast %280 : vector<1x128xf32> to vector<16x128xf32>
    %282 = arith.mulf %279, %281 : vector<16x128xf32>
    %283 = arith.addf %277, %282 : vector<16x128xf32>
    %284 = vector.extract_strided_slice %278 {offsets = [1, 0], sizes = [16, 128], strides = [1, 1]} : vector<18x128xf32> to vector<16x128xf32>
    %c16_110 = arith.constant 16 : index
    %c0_111 = arith.constant 0 : index
    %285 = vector.load %arg3[%c16_110, %c0_111] : memref<46x128xf32, #tpu.memory_space<vmem>>, vector<1x128xf32>
    %286 = vector.broadcast %285 : vector<1x128xf32> to vector<16x128xf32>
    %287 = arith.mulf %284, %286 : vector<16x128xf32>
    %288 = arith.addf %283, %287 : vector<16x128xf32>
    %289 = vector.extract_strided_slice %278 {offsets = [2, 0], sizes = [16, 128], strides = [1, 1]} : vector<18x128xf32> to vector<16x128xf32>
    %c31_112 = arith.constant 31 : index
    %c0_113 = arith.constant 0 : index
    %290 = vector.load %arg3[%c31_112, %c0_113] : memref<46x128xf32, #tpu.memory_space<vmem>>, vector<1x128xf32>
    %291 = vector.broadcast %290 : vector<1x128xf32> to vector<16x128xf32>
    %292 = arith.mulf %289, %291 : vector<16x128xf32>
    %293 = arith.addf %288, %292 : vector<16x128xf32>
    %c0_114 = arith.constant 0 : index
    %c3_115 = arith.constant 3 : index
    %294 = vector.load %arg5[%c0_114, %c3_115] : memref<18x144xf32, #tpu.memory_space<vmem>>, vector<18x128xf32>
    %295 = vector.extract_strided_slice %294 {offsets = [0, 0], sizes = [16, 128], strides = [1, 1]} : vector<18x128xf32> to vector<16x128xf32>
    %c2_116 = arith.constant 2 : index
    %c0_117 = arith.constant 0 : index
    %296 = vector.load %arg3[%c2_116, %c0_117] : memref<46x128xf32, #tpu.memory_space<vmem>>, vector<1x128xf32>
    %297 = vector.broadcast %296 : vector<1x128xf32> to vector<16x128xf32>
    %298 = arith.mulf %295, %297 : vector<16x128xf32>
    %299 = arith.addf %293, %298 : vector<16x128xf32>
    %300 = vector.extract_strided_slice %294 {offsets = [1, 0], sizes = [16, 128], strides = [1, 1]} : vector<18x128xf32> to vector<16x128xf32>
    %c17_118 = arith.constant 17 : index
    %c0_119 = arith.constant 0 : index
    %301 = vector.load %arg3[%c17_118, %c0_119] : memref<46x128xf32, #tpu.memory_space<vmem>>, vector<1x128xf32>
    %302 = vector.broadcast %301 : vector<1x128xf32> to vector<16x128xf32>
    %303 = arith.mulf %300, %302 : vector<16x128xf32>
    %304 = arith.addf %299, %303 : vector<16x128xf32>
    %305 = vector.extract_strided_slice %294 {offsets = [2, 0], sizes = [16, 128], strides = [1, 1]} : vector<18x128xf32> to vector<16x128xf32>
    %c32_120 = arith.constant 32 : index
    %c0_121 = arith.constant 0 : index
    %306 = vector.load %arg3[%c32_120, %c0_121] : memref<46x128xf32, #tpu.memory_space<vmem>>, vector<1x128xf32>
    %307 = vector.broadcast %306 : vector<1x128xf32> to vector<16x128xf32>
    %308 = arith.mulf %305, %307 : vector<16x128xf32>
    %309 = arith.addf %304, %308 : vector<16x128xf32>
    %c0_122 = arith.constant 0 : index
    %c4_123 = arith.constant 4 : index
    %310 = vector.load %arg5[%c0_122, %c4_123] : memref<18x144xf32, #tpu.memory_space<vmem>>, vector<18x128xf32>
    %311 = vector.extract_strided_slice %310 {offsets = [0, 0], sizes = [16, 128], strides = [1, 1]} : vector<18x128xf32> to vector<16x128xf32>
    %c3_124 = arith.constant 3 : index
    %c0_125 = arith.constant 0 : index
    %312 = vector.load %arg3[%c3_124, %c0_125] : memref<46x128xf32, #tpu.memory_space<vmem>>, vector<1x128xf32>
    %313 = vector.broadcast %312 : vector<1x128xf32> to vector<16x128xf32>
    %314 = arith.mulf %311, %313 : vector<16x128xf32>
    %315 = arith.addf %309, %314 : vector<16x128xf32>
    %316 = vector.extract_strided_slice %310 {offsets = [1, 0], sizes = [16, 128], strides = [1, 1]} : vector<18x128xf32> to vector<16x128xf32>
    %c18_126 = arith.constant 18 : index
    %c0_127 = arith.constant 0 : index
    %317 = vector.load %arg3[%c18_126, %c0_127] : memref<46x128xf32, #tpu.memory_space<vmem>>, vector<1x128xf32>
    %318 = vector.broadcast %317 : vector<1x128xf32> to vector<16x128xf32>
    %319 = arith.mulf %316, %318 : vector<16x128xf32>
    %320 = arith.addf %315, %319 : vector<16x128xf32>
    %321 = vector.extract_strided_slice %310 {offsets = [2, 0], sizes = [16, 128], strides = [1, 1]} : vector<18x128xf32> to vector<16x128xf32>
    %c33_128 = arith.constant 33 : index
    %c0_129 = arith.constant 0 : index
    %322 = vector.load %arg3[%c33_128, %c0_129] : memref<46x128xf32, #tpu.memory_space<vmem>>, vector<1x128xf32>
    %323 = vector.broadcast %322 : vector<1x128xf32> to vector<16x128xf32>
    %324 = arith.mulf %321, %323 : vector<16x128xf32>
    %325 = arith.addf %320, %324 : vector<16x128xf32>
    %c0_130 = arith.constant 0 : index
    %c5_131 = arith.constant 5 : index
    %326 = vector.load %arg5[%c0_130, %c5_131] : memref<18x144xf32, #tpu.memory_space<vmem>>, vector<18x128xf32>
    %327 = vector.extract_strided_slice %326 {offsets = [0, 0], sizes = [16, 128], strides = [1, 1]} : vector<18x128xf32> to vector<16x128xf32>
    %c4_132 = arith.constant 4 : index
    %c0_133 = arith.constant 0 : index
    %328 = vector.load %arg3[%c4_132, %c0_133] : memref<46x128xf32, #tpu.memory_space<vmem>>, vector<1x128xf32>
    %329 = vector.broadcast %328 : vector<1x128xf32> to vector<16x128xf32>
    %330 = arith.mulf %327, %329 : vector<16x128xf32>
    %331 = arith.addf %325, %330 : vector<16x128xf32>
    %332 = vector.extract_strided_slice %326 {offsets = [1, 0], sizes = [16, 128], strides = [1, 1]} : vector<18x128xf32> to vector<16x128xf32>
    %c19_134 = arith.constant 19 : index
    %c0_135 = arith.constant 0 : index
    %333 = vector.load %arg3[%c19_134, %c0_135] : memref<46x128xf32, #tpu.memory_space<vmem>>, vector<1x128xf32>
    %334 = vector.broadcast %333 : vector<1x128xf32> to vector<16x128xf32>
    %335 = arith.mulf %332, %334 : vector<16x128xf32>
    %336 = arith.addf %331, %335 : vector<16x128xf32>
    %337 = vector.extract_strided_slice %326 {offsets = [2, 0], sizes = [16, 128], strides = [1, 1]} : vector<18x128xf32> to vector<16x128xf32>
    %c34_136 = arith.constant 34 : index
    %c0_137 = arith.constant 0 : index
    %338 = vector.load %arg3[%c34_136, %c0_137] : memref<46x128xf32, #tpu.memory_space<vmem>>, vector<1x128xf32>
    %339 = vector.broadcast %338 : vector<1x128xf32> to vector<16x128xf32>
    %340 = arith.mulf %337, %339 : vector<16x128xf32>
    %341 = arith.addf %336, %340 : vector<16x128xf32>
    %c0_138 = arith.constant 0 : index
    %c6_139 = arith.constant 6 : index
    %342 = vector.load %arg5[%c0_138, %c6_139] : memref<18x144xf32, #tpu.memory_space<vmem>>, vector<18x128xf32>
    %343 = vector.extract_strided_slice %342 {offsets = [0, 0], sizes = [16, 128], strides = [1, 1]} : vector<18x128xf32> to vector<16x128xf32>
    %c5_140 = arith.constant 5 : index
    %c0_141 = arith.constant 0 : index
    %344 = vector.load %arg3[%c5_140, %c0_141] : memref<46x128xf32, #tpu.memory_space<vmem>>, vector<1x128xf32>
    %345 = vector.broadcast %344 : vector<1x128xf32> to vector<16x128xf32>
    %346 = arith.mulf %343, %345 : vector<16x128xf32>
    %347 = arith.addf %341, %346 : vector<16x128xf32>
    %348 = vector.extract_strided_slice %342 {offsets = [1, 0], sizes = [16, 128], strides = [1, 1]} : vector<18x128xf32> to vector<16x128xf32>
    %c20_142 = arith.constant 20 : index
    %c0_143 = arith.constant 0 : index
    %349 = vector.load %arg3[%c20_142, %c0_143] : memref<46x128xf32, #tpu.memory_space<vmem>>, vector<1x128xf32>
    %350 = vector.broadcast %349 : vector<1x128xf32> to vector<16x128xf32>
    %351 = arith.mulf %348, %350 : vector<16x128xf32>
    %352 = arith.addf %347, %351 : vector<16x128xf32>
    %353 = vector.extract_strided_slice %342 {offsets = [2, 0], sizes = [16, 128], strides = [1, 1]} : vector<18x128xf32> to vector<16x128xf32>
    %c35_144 = arith.constant 35 : index
    %c0_145 = arith.constant 0 : index
    %354 = vector.load %arg3[%c35_144, %c0_145] : memref<46x128xf32, #tpu.memory_space<vmem>>, vector<1x128xf32>
    %355 = vector.broadcast %354 : vector<1x128xf32> to vector<16x128xf32>
    %356 = arith.mulf %353, %355 : vector<16x128xf32>
    %357 = arith.addf %352, %356 : vector<16x128xf32>
    %c0_146 = arith.constant 0 : index
    %c7_147 = arith.constant 7 : index
    %358 = vector.load %arg5[%c0_146, %c7_147] : memref<18x144xf32, #tpu.memory_space<vmem>>, vector<18x128xf32>
    %359 = vector.extract_strided_slice %358 {offsets = [0, 0], sizes = [16, 128], strides = [1, 1]} : vector<18x128xf32> to vector<16x128xf32>
    %c6_148 = arith.constant 6 : index
    %c0_149 = arith.constant 0 : index
    %360 = vector.load %arg3[%c6_148, %c0_149] : memref<46x128xf32, #tpu.memory_space<vmem>>, vector<1x128xf32>
    %361 = vector.broadcast %360 : vector<1x128xf32> to vector<16x128xf32>
    %362 = arith.mulf %359, %361 : vector<16x128xf32>
    %363 = arith.addf %357, %362 : vector<16x128xf32>
    %364 = vector.extract_strided_slice %358 {offsets = [1, 0], sizes = [16, 128], strides = [1, 1]} : vector<18x128xf32> to vector<16x128xf32>
    %c21_150 = arith.constant 21 : index
    %c0_151 = arith.constant 0 : index
    %365 = vector.load %arg3[%c21_150, %c0_151] : memref<46x128xf32, #tpu.memory_space<vmem>>, vector<1x128xf32>
    %366 = vector.broadcast %365 : vector<1x128xf32> to vector<16x128xf32>
    %367 = arith.mulf %364, %366 : vector<16x128xf32>
    %368 = arith.addf %363, %367 : vector<16x128xf32>
    %369 = vector.extract_strided_slice %358 {offsets = [2, 0], sizes = [16, 128], strides = [1, 1]} : vector<18x128xf32> to vector<16x128xf32>
    %c36_152 = arith.constant 36 : index
    %c0_153 = arith.constant 0 : index
    %370 = vector.load %arg3[%c36_152, %c0_153] : memref<46x128xf32, #tpu.memory_space<vmem>>, vector<1x128xf32>
    %371 = vector.broadcast %370 : vector<1x128xf32> to vector<16x128xf32>
    %372 = arith.mulf %369, %371 : vector<16x128xf32>
    %373 = arith.addf %368, %372 : vector<16x128xf32>
    %c0_154 = arith.constant 0 : index
    %c8_155 = arith.constant 8 : index
    %374 = vector.load %arg5[%c0_154, %c8_155] : memref<18x144xf32, #tpu.memory_space<vmem>>, vector<18x128xf32>
    %375 = vector.extract_strided_slice %374 {offsets = [0, 0], sizes = [16, 128], strides = [1, 1]} : vector<18x128xf32> to vector<16x128xf32>
    %c7_156 = arith.constant 7 : index
    %c0_157 = arith.constant 0 : index
    %376 = vector.load %arg3[%c7_156, %c0_157] : memref<46x128xf32, #tpu.memory_space<vmem>>, vector<1x128xf32>
    %377 = vector.broadcast %376 : vector<1x128xf32> to vector<16x128xf32>
    %378 = arith.mulf %375, %377 : vector<16x128xf32>
    %379 = arith.addf %373, %378 : vector<16x128xf32>
    %380 = vector.extract_strided_slice %374 {offsets = [1, 0], sizes = [16, 128], strides = [1, 1]} : vector<18x128xf32> to vector<16x128xf32>
    %c22_158 = arith.constant 22 : index
    %c0_159 = arith.constant 0 : index
    %381 = vector.load %arg3[%c22_158, %c0_159] : memref<46x128xf32, #tpu.memory_space<vmem>>, vector<1x128xf32>
    %382 = vector.broadcast %381 : vector<1x128xf32> to vector<16x128xf32>
    %383 = arith.mulf %380, %382 : vector<16x128xf32>
    %384 = arith.addf %379, %383 : vector<16x128xf32>
    %385 = vector.extract_strided_slice %374 {offsets = [2, 0], sizes = [16, 128], strides = [1, 1]} : vector<18x128xf32> to vector<16x128xf32>
    %c37_160 = arith.constant 37 : index
    %c0_161 = arith.constant 0 : index
    %386 = vector.load %arg3[%c37_160, %c0_161] : memref<46x128xf32, #tpu.memory_space<vmem>>, vector<1x128xf32>
    %387 = vector.broadcast %386 : vector<1x128xf32> to vector<16x128xf32>
    %388 = arith.mulf %385, %387 : vector<16x128xf32>
    %389 = arith.addf %384, %388 : vector<16x128xf32>
    %c0_162 = arith.constant 0 : index
    %c9_163 = arith.constant 9 : index
    %390 = vector.load %arg5[%c0_162, %c9_163] : memref<18x144xf32, #tpu.memory_space<vmem>>, vector<18x128xf32>
    %391 = vector.extract_strided_slice %390 {offsets = [0, 0], sizes = [16, 128], strides = [1, 1]} : vector<18x128xf32> to vector<16x128xf32>
    %c8_164 = arith.constant 8 : index
    %c0_165 = arith.constant 0 : index
    %392 = vector.load %arg3[%c8_164, %c0_165] : memref<46x128xf32, #tpu.memory_space<vmem>>, vector<1x128xf32>
    %393 = vector.broadcast %392 : vector<1x128xf32> to vector<16x128xf32>
    %394 = arith.mulf %391, %393 : vector<16x128xf32>
    %395 = arith.addf %389, %394 : vector<16x128xf32>
    %396 = vector.extract_strided_slice %390 {offsets = [1, 0], sizes = [16, 128], strides = [1, 1]} : vector<18x128xf32> to vector<16x128xf32>
    %c23_166 = arith.constant 23 : index
    %c0_167 = arith.constant 0 : index
    %397 = vector.load %arg3[%c23_166, %c0_167] : memref<46x128xf32, #tpu.memory_space<vmem>>, vector<1x128xf32>
    %398 = vector.broadcast %397 : vector<1x128xf32> to vector<16x128xf32>
    %399 = arith.mulf %396, %398 : vector<16x128xf32>
    %400 = arith.addf %395, %399 : vector<16x128xf32>
    %401 = vector.extract_strided_slice %390 {offsets = [2, 0], sizes = [16, 128], strides = [1, 1]} : vector<18x128xf32> to vector<16x128xf32>
    %c38_168 = arith.constant 38 : index
    %c0_169 = arith.constant 0 : index
    %402 = vector.load %arg3[%c38_168, %c0_169] : memref<46x128xf32, #tpu.memory_space<vmem>>, vector<1x128xf32>
    %403 = vector.broadcast %402 : vector<1x128xf32> to vector<16x128xf32>
    %404 = arith.mulf %401, %403 : vector<16x128xf32>
    %405 = arith.addf %400, %404 : vector<16x128xf32>
    %c0_170 = arith.constant 0 : index
    %c10_171 = arith.constant 10 : index
    %406 = vector.load %arg5[%c0_170, %c10_171] : memref<18x144xf32, #tpu.memory_space<vmem>>, vector<18x128xf32>
    %407 = vector.extract_strided_slice %406 {offsets = [0, 0], sizes = [16, 128], strides = [1, 1]} : vector<18x128xf32> to vector<16x128xf32>
    %c9_172 = arith.constant 9 : index
    %c0_173 = arith.constant 0 : index
    %408 = vector.load %arg3[%c9_172, %c0_173] : memref<46x128xf32, #tpu.memory_space<vmem>>, vector<1x128xf32>
    %409 = vector.broadcast %408 : vector<1x128xf32> to vector<16x128xf32>
    %410 = arith.mulf %407, %409 : vector<16x128xf32>
    %411 = arith.addf %405, %410 : vector<16x128xf32>
    %412 = vector.extract_strided_slice %406 {offsets = [1, 0], sizes = [16, 128], strides = [1, 1]} : vector<18x128xf32> to vector<16x128xf32>
    %c24_174 = arith.constant 24 : index
    %c0_175 = arith.constant 0 : index
    %413 = vector.load %arg3[%c24_174, %c0_175] : memref<46x128xf32, #tpu.memory_space<vmem>>, vector<1x128xf32>
    %414 = vector.broadcast %413 : vector<1x128xf32> to vector<16x128xf32>
    %415 = arith.mulf %412, %414 : vector<16x128xf32>
    %416 = arith.addf %411, %415 : vector<16x128xf32>
    %417 = vector.extract_strided_slice %406 {offsets = [2, 0], sizes = [16, 128], strides = [1, 1]} : vector<18x128xf32> to vector<16x128xf32>
    %c39_176 = arith.constant 39 : index
    %c0_177 = arith.constant 0 : index
    %418 = vector.load %arg3[%c39_176, %c0_177] : memref<46x128xf32, #tpu.memory_space<vmem>>, vector<1x128xf32>
    %419 = vector.broadcast %418 : vector<1x128xf32> to vector<16x128xf32>
    %420 = arith.mulf %417, %419 : vector<16x128xf32>
    %421 = arith.addf %416, %420 : vector<16x128xf32>
    %c0_178 = arith.constant 0 : index
    %c11_179 = arith.constant 11 : index
    %422 = vector.load %arg5[%c0_178, %c11_179] : memref<18x144xf32, #tpu.memory_space<vmem>>, vector<18x128xf32>
    %423 = vector.extract_strided_slice %422 {offsets = [0, 0], sizes = [16, 128], strides = [1, 1]} : vector<18x128xf32> to vector<16x128xf32>
    %c10_180 = arith.constant 10 : index
    %c0_181 = arith.constant 0 : index
    %424 = vector.load %arg3[%c10_180, %c0_181] : memref<46x128xf32, #tpu.memory_space<vmem>>, vector<1x128xf32>
    %425 = vector.broadcast %424 : vector<1x128xf32> to vector<16x128xf32>
    %426 = arith.mulf %423, %425 : vector<16x128xf32>
    %427 = arith.addf %421, %426 : vector<16x128xf32>
    %428 = vector.extract_strided_slice %422 {offsets = [1, 0], sizes = [16, 128], strides = [1, 1]} : vector<18x128xf32> to vector<16x128xf32>
    %c25_182 = arith.constant 25 : index
    %c0_183 = arith.constant 0 : index
    %429 = vector.load %arg3[%c25_182, %c0_183] : memref<46x128xf32, #tpu.memory_space<vmem>>, vector<1x128xf32>
    %430 = vector.broadcast %429 : vector<1x128xf32> to vector<16x128xf32>
    %431 = arith.mulf %428, %430 : vector<16x128xf32>
    %432 = arith.addf %427, %431 : vector<16x128xf32>
    %433 = vector.extract_strided_slice %422 {offsets = [2, 0], sizes = [16, 128], strides = [1, 1]} : vector<18x128xf32> to vector<16x128xf32>
    %c40_184 = arith.constant 40 : index
    %c0_185 = arith.constant 0 : index
    %434 = vector.load %arg3[%c40_184, %c0_185] : memref<46x128xf32, #tpu.memory_space<vmem>>, vector<1x128xf32>
    %435 = vector.broadcast %434 : vector<1x128xf32> to vector<16x128xf32>
    %436 = arith.mulf %433, %435 : vector<16x128xf32>
    %437 = arith.addf %432, %436 : vector<16x128xf32>
    %c0_186 = arith.constant 0 : index
    %c12_187 = arith.constant 12 : index
    %438 = vector.load %arg5[%c0_186, %c12_187] : memref<18x144xf32, #tpu.memory_space<vmem>>, vector<18x128xf32>
    %439 = vector.extract_strided_slice %438 {offsets = [0, 0], sizes = [16, 128], strides = [1, 1]} : vector<18x128xf32> to vector<16x128xf32>
    %c11_188 = arith.constant 11 : index
    %c0_189 = arith.constant 0 : index
    %440 = vector.load %arg3[%c11_188, %c0_189] : memref<46x128xf32, #tpu.memory_space<vmem>>, vector<1x128xf32>
    %441 = vector.broadcast %440 : vector<1x128xf32> to vector<16x128xf32>
    %442 = arith.mulf %439, %441 : vector<16x128xf32>
    %443 = arith.addf %437, %442 : vector<16x128xf32>
    %444 = vector.extract_strided_slice %438 {offsets = [1, 0], sizes = [16, 128], strides = [1, 1]} : vector<18x128xf32> to vector<16x128xf32>
    %c26_190 = arith.constant 26 : index
    %c0_191 = arith.constant 0 : index
    %445 = vector.load %arg3[%c26_190, %c0_191] : memref<46x128xf32, #tpu.memory_space<vmem>>, vector<1x128xf32>
    %446 = vector.broadcast %445 : vector<1x128xf32> to vector<16x128xf32>
    %447 = arith.mulf %444, %446 : vector<16x128xf32>
    %448 = arith.addf %443, %447 : vector<16x128xf32>
    %449 = vector.extract_strided_slice %438 {offsets = [2, 0], sizes = [16, 128], strides = [1, 1]} : vector<18x128xf32> to vector<16x128xf32>
    %c41_192 = arith.constant 41 : index
    %c0_193 = arith.constant 0 : index
    %450 = vector.load %arg3[%c41_192, %c0_193] : memref<46x128xf32, #tpu.memory_space<vmem>>, vector<1x128xf32>
    %451 = vector.broadcast %450 : vector<1x128xf32> to vector<16x128xf32>
    %452 = arith.mulf %449, %451 : vector<16x128xf32>
    %453 = arith.addf %448, %452 : vector<16x128xf32>
    %c0_194 = arith.constant 0 : index
    %c13_195 = arith.constant 13 : index
    %454 = vector.load %arg5[%c0_194, %c13_195] : memref<18x144xf32, #tpu.memory_space<vmem>>, vector<18x128xf32>
    %455 = vector.extract_strided_slice %454 {offsets = [0, 0], sizes = [16, 128], strides = [1, 1]} : vector<18x128xf32> to vector<16x128xf32>
    %c12_196 = arith.constant 12 : index
    %c0_197 = arith.constant 0 : index
    %456 = vector.load %arg3[%c12_196, %c0_197] : memref<46x128xf32, #tpu.memory_space<vmem>>, vector<1x128xf32>
    %457 = vector.broadcast %456 : vector<1x128xf32> to vector<16x128xf32>
    %458 = arith.mulf %455, %457 : vector<16x128xf32>
    %459 = arith.addf %453, %458 : vector<16x128xf32>
    %460 = vector.extract_strided_slice %454 {offsets = [1, 0], sizes = [16, 128], strides = [1, 1]} : vector<18x128xf32> to vector<16x128xf32>
    %c27_198 = arith.constant 27 : index
    %c0_199 = arith.constant 0 : index
    %461 = vector.load %arg3[%c27_198, %c0_199] : memref<46x128xf32, #tpu.memory_space<vmem>>, vector<1x128xf32>
    %462 = vector.broadcast %461 : vector<1x128xf32> to vector<16x128xf32>
    %463 = arith.mulf %460, %462 : vector<16x128xf32>
    %464 = arith.addf %459, %463 : vector<16x128xf32>
    %465 = vector.extract_strided_slice %454 {offsets = [2, 0], sizes = [16, 128], strides = [1, 1]} : vector<18x128xf32> to vector<16x128xf32>
    %c42_200 = arith.constant 42 : index
    %c0_201 = arith.constant 0 : index
    %466 = vector.load %arg3[%c42_200, %c0_201] : memref<46x128xf32, #tpu.memory_space<vmem>>, vector<1x128xf32>
    %467 = vector.broadcast %466 : vector<1x128xf32> to vector<16x128xf32>
    %468 = arith.mulf %465, %467 : vector<16x128xf32>
    %469 = arith.addf %464, %468 : vector<16x128xf32>
    %c0_202 = arith.constant 0 : index
    %c14_203 = arith.constant 14 : index
    %470 = vector.load %arg5[%c0_202, %c14_203] : memref<18x144xf32, #tpu.memory_space<vmem>>, vector<18x128xf32>
    %471 = vector.extract_strided_slice %470 {offsets = [0, 0], sizes = [16, 128], strides = [1, 1]} : vector<18x128xf32> to vector<16x128xf32>
    %c13_204 = arith.constant 13 : index
    %c0_205 = arith.constant 0 : index
    %472 = vector.load %arg3[%c13_204, %c0_205] : memref<46x128xf32, #tpu.memory_space<vmem>>, vector<1x128xf32>
    %473 = vector.broadcast %472 : vector<1x128xf32> to vector<16x128xf32>
    %474 = arith.mulf %471, %473 : vector<16x128xf32>
    %475 = arith.addf %469, %474 : vector<16x128xf32>
    %476 = vector.extract_strided_slice %470 {offsets = [1, 0], sizes = [16, 128], strides = [1, 1]} : vector<18x128xf32> to vector<16x128xf32>
    %c28_206 = arith.constant 28 : index
    %c0_207 = arith.constant 0 : index
    %477 = vector.load %arg3[%c28_206, %c0_207] : memref<46x128xf32, #tpu.memory_space<vmem>>, vector<1x128xf32>
    %478 = vector.broadcast %477 : vector<1x128xf32> to vector<16x128xf32>
    %479 = arith.mulf %476, %478 : vector<16x128xf32>
    %480 = arith.addf %475, %479 : vector<16x128xf32>
    %481 = vector.extract_strided_slice %470 {offsets = [2, 0], sizes = [16, 128], strides = [1, 1]} : vector<18x128xf32> to vector<16x128xf32>
    %c43_208 = arith.constant 43 : index
    %c0_209 = arith.constant 0 : index
    %482 = vector.load %arg3[%c43_208, %c0_209] : memref<46x128xf32, #tpu.memory_space<vmem>>, vector<1x128xf32>
    %483 = vector.broadcast %482 : vector<1x128xf32> to vector<16x128xf32>
    %484 = arith.mulf %481, %483 : vector<16x128xf32>
    %485 = arith.addf %480, %484 : vector<16x128xf32>
    %c0_210 = arith.constant 0 : index
    %c15_211 = arith.constant 15 : index
    %486 = vector.load %arg5[%c0_210, %c15_211] : memref<18x144xf32, #tpu.memory_space<vmem>>, vector<18x128xf32>
    %487 = vector.extract_strided_slice %486 {offsets = [0, 0], sizes = [16, 128], strides = [1, 1]} : vector<18x128xf32> to vector<16x128xf32>
    %c14_212 = arith.constant 14 : index
    %c0_213 = arith.constant 0 : index
    %488 = vector.load %arg3[%c14_212, %c0_213] : memref<46x128xf32, #tpu.memory_space<vmem>>, vector<1x128xf32>
    %489 = vector.broadcast %488 : vector<1x128xf32> to vector<16x128xf32>
    %490 = arith.mulf %487, %489 : vector<16x128xf32>
    %491 = arith.addf %485, %490 : vector<16x128xf32>
    %492 = vector.extract_strided_slice %486 {offsets = [1, 0], sizes = [16, 128], strides = [1, 1]} : vector<18x128xf32> to vector<16x128xf32>
    %c29_214 = arith.constant 29 : index
    %c0_215 = arith.constant 0 : index
    %493 = vector.load %arg3[%c29_214, %c0_215] : memref<46x128xf32, #tpu.memory_space<vmem>>, vector<1x128xf32>
    %494 = vector.broadcast %493 : vector<1x128xf32> to vector<16x128xf32>
    %495 = arith.mulf %492, %494 : vector<16x128xf32>
    %496 = arith.addf %491, %495 : vector<16x128xf32>
    %497 = vector.extract_strided_slice %486 {offsets = [2, 0], sizes = [16, 128], strides = [1, 1]} : vector<18x128xf32> to vector<16x128xf32>
    %c44_216 = arith.constant 44 : index
    %c0_217 = arith.constant 0 : index
    %498 = vector.load %arg3[%c44_216, %c0_217] : memref<46x128xf32, #tpu.memory_space<vmem>>, vector<1x128xf32>
    %499 = vector.broadcast %498 : vector<1x128xf32> to vector<16x128xf32>
    %500 = arith.mulf %497, %499 : vector<16x128xf32>
    %501 = arith.addf %496, %500 : vector<16x128xf32>
    %502 = arith.addf %501, %1 : vector<16x128xf32>
    %cst_218 = arith.constant 0.000000e+00 : f32
    %503 = vector.broadcast %cst_218 : f32 to vector<16x128xf32>
    %504 = arith.maximumf %502, %503 : vector<16x128xf32>
    %cst_219 = arith.constant -1.000000e+02 : f32
    %cst_220 = arith.constant 1.000000e+02 : f32
    %505 = vector.broadcast %cst_219 : f32 to vector<16x128xf32>
    %506 = arith.maximumf %505, %504 : vector<16x128xf32>
    %507 = vector.broadcast %cst_220 : f32 to vector<16x128xf32>
    %508 = arith.minimumf %507, %506 : vector<16x128xf32>
    %509 = arith.cmpf one, %508, %508 : vector<16x128xf32>
    %cst_221 = arith.constant 0.000000e+00 : f32
    %510 = vector.broadcast %cst_221 : f32 to vector<16x128xf32>
    %511 = arith.select %509, %510, %508 : vector<16x128xi1>, vector<16x128xf32>
    %c0_222 = arith.constant 0 : index
    %c0_223 = arith.constant 0 : index
    %c0_224 = arith.constant 0 : index
    %512 = vector.load %arg4[%c0_222, %c0_223, %c0_224] : memref<1x16x128xf32, #tpu.memory_space<vmem>>, vector<1x16x128xf32>
    %513 = vector.shape_cast %512 : vector<1x16x128xf32> to vector<16x128xf32>
    %514 = vector.shape_cast %511 : vector<16x128xf32> to vector<1x16x128xf32>
    tpu.vector_store %arg4[%c0_222, %c0_223, %c0_224], %514 {strides = array<i32>} : memref<1x16x128xf32, #tpu.memory_space<vmem>>, vector<1x16x128xf32>,
    return
  }
  func.func @transform_0(%arg0: i32) -> (i32, i32, i32) {
    %c0_i32 = arith.constant 0 : i32
    %c0_i32_0 = arith.constant 0 : i32
    %c0_i32_1 = arith.constant 0 : i32
    return %arg0, %c0_i32, %c0_i32_0 : i32, i32, i32
  }
  func.func @transform_1(%arg0: i32) -> (i32, i32) {
    %c0_i32 = arith.constant 0 : i32
    %c0_i32_0 = arith.constant 0 : i32
    %c0_i32_1 = arith.constant 0 : i32
    return %c0_i32, %c0_i32_0 : i32, i32
  }
  func.func @transform_2(%arg0: i32) -> (i32, i32) {
    %c0_i32 = arith.constant 0 : i32
    %c0_i32_0 = arith.constant 0 : i32
    %c0_i32_1 = arith.constant 0 : i32
    return %c0_i32, %c0_i32_0 : i32, i32
  }
  func.func @transform_3(%arg0: i32) -> (i32, i32, i32) {
    %c0_i32 = arith.constant 0 : i32
    %c0_i32_0 = arith.constant 0 : i32
    %c0_i32_1 = arith.constant 0 : i32
    return %arg0, %c0_i32, %c0_i32_0 : i32, i32, i32
  }
}

</mosaic_0001>

<bundles_post_ra>
// kernel: tpu_custom_call.1
= control target key start
LH: loop header
LB: loop body
LE: loop exit
PB: predicated region body
PF: predicated region fallthrough
CT: control target
= control target key end

     0   :  { %8 = vsyncpa [#allocation4], 0  ;;  %s6494_s0 = inlined_call_operand.hbm [shape: f32[1,16,128], index: 0, kind: input, shape index: {}]   ;;  %s6495_s1 = inlined_call_operand.hbm [shape: f32[46,128], index: 1, kind: input, shape index: {}]   ;;  %s6496_s2 = inlined_call_operand.hbm [shape: f32[46,128], index: 2, kind: input, shape index: {}]   ;;  %s6497_s3 = inlined_call_operand.hbm [shape: f32[1,16,128], index: 3, kind: output, shape index: {}]  }
   0x1   :  { %9 = vsyncpa [#allocation7], 0 }
   0x2   :  { %10 = vsyncpa [#allocation5], 0  ;;  %s4072_s12 = smov [#allocation6]   ;;  %s4073_s14 = smov [#allocation3]  }
   0x3   :  { %s28_s13 = sshll.u32 %s4072_s12, 4  ;;  %s16_s15 = sshll.u32 %s4073_s14, 4  ;;  %s29_s13 = int_to_ptr.vmem [resolvable:$true] %s28_s13  ;;  %s4128_s15 = int_to_ptr.vmem [resolvable:$true] %s16_s15 }
   0x4   :  { %s3978_s18 = scalar_lea.hbm %s6495_s1, 768 }
   0x5   :  { %p3979_p0 = scmp.ne.s32.totalorder %s6495_s1, %s3978_s18  ;;  %p3982_p1 = scmp.lt.u32.totalorder %s3978_s18, %s6495_s1 }
   0x7   :  { %p3984_p2 = pnand %p3982_p1, %p3979_p0 }
   0x9   :  { %3987 = shalt.err (!%p3984_p2)
}
   0xa   :  { %s3988_s23 = scalar_lea.vmem %s29_s13, 768  ;;  %p3993_p4 = scmp.lt.s32.totalorder %s29_s13, %s29_s13 }
   0xb   :  { %p3989_p3 = scmp.ne.s32.totalorder %s29_s13, %s3988_s23  ;;  %p3994_p5 = scmp.lt.s32.totalorder %s3988_s23, %s3988_s23 }
   0xd   :  { %p3995_p6 = por %p3994_p5, %p3993_p4 }
   0xf   :  { %p3996_p7 = pnand %p3995_p6, %p3989_p3 }
  0x11   :  { %3999 = shalt.err (!%p3996_p7)
}
  0x12   :  { %s6498_s24 = smov 128   ;;  %s4075_s25 = smov 8  }
  0x13   :  { %34 = dma.hbm_to_vmem [thread:$0]  %s6495_s1, 768, %s29_s13, [#allocation7], %s6498_s24, %s6498_s24, %s4075_s25  }
  0x14   :  { %s4000_s30 = scalar_lea.hbm %s6494_s0, 256 }
  0x15   :  { %p4001_p8 = scmp.ne.s32.totalorder %s6494_s0, %s4000_s30  ;;  %p4004_p9 = scmp.lt.u32.totalorder %s4000_s30, %s6494_s0 }
  0x17   :  { %p4006_p10 = pnand %p4004_p9, %p4001_p8 }
  0x19   :  { %4009 = shalt.err (!%p4006_p10)
}
  0x1a   :  { %s4010_s8 = scalar_lea.vmem %s4128_s15, 256  ;;  %p4015_p12 = scmp.lt.s32.totalorder %s4128_s15, %s4128_s15 }
  0x1b   :  { %p4011_p11 = scmp.ne.s32.totalorder %s4128_s15, %s4010_s8  ;;  %p4016_p13 = scmp.lt.s32.totalorder %s4010_s8, %s4010_s8 }
  0x1d   :  { %p4017_p0 = por %p4016_p13, %p4015_p12 }
  0x1f   :  { %p4018_p1 = pnand %p4017_p0, %p4011_p11 }
  0x21   :  { %4021 = shalt.err (!%p4018_p1)
}
  0x22   :  { %22 = dma.hbm_to_vmem [thread:$0]  %s6494_s0, 256, %s4128_s15, [#allocation4], %s6498_s24, %s6498_s24, %s4075_s25  }
  0x23   :  { %s4076_s10 = smov [#allocation8]   ;;  %s4022_s14 = scalar_lea.hbm %s6496_s2, 768 }
  0x24   :  { %s40_s11 = sshll.u32 %s4076_s10, 4  ;;  %p4023_p2 = scmp.ne.s32.totalorder %s6496_s2, %s4022_s14  ;;  %s41_s11 = int_to_ptr.vmem [resolvable:$true] %s40_s11 }
  0x25   :  { %p4026_p3 = scmp.lt.u32.totalorder %s4022_s14, %s6496_s2 }
  0x27   :  { %p4028_p4 = pnand %p4026_p3, %p4023_p2 }
  0x29   :  { %4031 = shalt.err (!%p4028_p4)
}
  0x2a   :  { %s4032_s20 = scalar_lea.vmem %s41_s11, 768  ;;  %p4037_p6 = scmp.lt.s32.totalorder %s41_s11, %s41_s11 }
  0x2b   :  { %p4033_p5 = scmp.ne.s32.totalorder %s41_s11, %s4032_s20  ;;  %p4038_p7 = scmp.lt.s32.totalorder %s4032_s20, %s4032_s20 }
  0x2d   :  { %p4039_p8 = por %p4038_p7, %p4037_p6 }
  0x2f   :  { %p4040_p9 = pnand %p4039_p8, %p4033_p5 }
  0x31   :  { %4043 = shalt.err (!%p4040_p9)
}
  0x32   :  { %46 = dma.hbm_to_vmem [thread:$0]  %s6496_s2, 768, %s41_s11, [#allocation7], %s6498_s24, %s6498_s24, %s4075_s25  }
  0x33   :  { %4066 = dma.done.wait [#allocation4], 256  }
  0x34   :  { %4067 = vsyncadd [#allocation4], 4294967040 }
  0x35   :  { %4068 = dma.done.wait [#allocation7], 1536  }
  0x36   :  { %4069 = vsyncadd [#allocation7], 4294965760  ;;  %v58_v0 = vlaneseq  ;;  %vm67_vm0 = vcmask 64513   ;;  %vm73_vm1 = vcmask 130113   ;;  %vm71_vm2 = vcmask 57344   ;;  %s4078_s2 = smov 1  }
  0x37   :  { %v4077_v1 = vmov 0.0   ;;  %vm77_vm4 = vcmask 122944   ;;  %vm69_vm5 = vcmask 64512   ;;  %vm75_vm6 = vcmask 130112   ;;  %v3830_v2 = vld [vmem:[#allocation6 + $0xf] ss:$0 sm:$0xff] }
  0x38   :  { %vm60_vm3 = vcmp.lt.s32.totalorder %v58_v0, 144  ;;  %68 = vst.msk [vmem:[#allocation2] sm:$0xfe] %vm67_vm0, %v4077_v1  ;;  %v3829_v3 = vld [vmem:[#allocation6] ss:$0 sm:$0xff]  ;;  %153 = vrot.lane.b32.xlu0 %v3830_v2, %s4078_s2  ;;  %v56_v4 = vld [vmem:[#allocation3] sm:$0xff] }
  0x39   :  { %74 = vst.msk [vmem:[#allocation2 + $0x8] sm:$0xfe] %vm73_vm1, %v4077_v1  ;;  %121 = vrot.lane.b32.xlu1 %v3829_v3, %s4078_s2  ;;  %v57_v5 = vld [vmem:[#allocation3 + $0x8] sm:$0xff]  ;;  %v82_v7 = vrot.slane %v56_v4, 7  ;;  %vm81_vm7 = vcmask 1040384   ;;  %s4079_s21 = smov 2  }
  0x3a   :  { %72 = vst.msk [vmem:[#allocation2 + $0x20] sm:$0x1] %vm71_vm2, %v4077_v1  ;;  %v3831_v6 = vld [vmem:[#allocation6 + $0x1e] ss:$0 sm:$0xff]  ;;  %v83_v8 = vrot.slane %v57_v5, 7  ;;  %s4080_s22 = smov 3  }
  0x3b   :  { %62 = vst.msk [vmem:[#allocation2] ss:$8 sm:$0x3] %vm60_vm3, %v4077_v1  ;;  %65 = vst.msk [vmem:[#allocation2 + $0x21] ss:$8 sm:$0x3] %vm60_vm3, %v4077_v1 }
  0x3c   :  { %78 = vst.msk [vmem:[#allocation2 + $0x28] sm:$0x1] %vm77_vm4, %v4077_v1  ;;  %85 = vrot.lane.b32.xlu0 %v82_v7, %s4075_s25  ;;  %v84_v9 = vsel %vm81_vm7, %v82_v7, %v83_v8  ;;  %v3833_v10 = vld [vmem:[#allocation6 + $0x10] ss:$0 sm:$0xff]  ;;  %v3832_v11 = vld [vmem:[#allocation6 + $0x1] ss:$0 sm:$0xff] }
  0x3d   :  { %70 = vst.msk [vmem:[#allocation2 + $0x10] sm:$0xff] %vm69_vm5, %v4077_v1  ;;  %199 = vrot.lane.b32.xlu1 %v3831_v6, %s4078_s2  ;;  %v3835_v12 = vld [vmem:[#allocation6 + $0x2] ss:$0 sm:$0xff]  ;;  %v3834_v13 = vld [vmem:[#allocation6 + $0x1f] ss:$0 sm:$0xff]  ;;  %s4081_s23 = smov 4  }
  0x3e   :  { %76 = vst.msk [vmem:[#allocation2 + $0x18] sm:$0xff] %vm75_vm6, %v4077_v1  ;;  %v3837_v14 = vld [vmem:[#allocation6 + $0x20] ss:$0 sm:$0xff]  ;;  %v3836_v15 = vld [vmem:[#allocation6 + $0x11] ss:$0 sm:$0xff]  ;;  %s4082_s26 = smov 5  }
  0x3f   :  { %v3839_v16 = vld [vmem:[#allocation6 + $0x12] ss:$0 sm:$0xff]  ;;  %v3838_v17 = vld [vmem:[#allocation6 + $0x3] ss:$0 sm:$0xff]  ;;  %v3841_v18 = vld [vmem:[#allocation6 + $0x4] ss:$0 sm:$0xff] }
  0x40   :  { %87 = vrot.lane.b32.xlu0 %v84_v9, %s4075_s25  ;;  %v3840_v19 = vld [vmem:[#allocation6 + $0x21] ss:$0 sm:$0xff]  ;;  %v3842_v20 = vld [vmem:[#allocation6 + $0x13] ss:$0 sm:$0xff]  ;;  %vm94_vm8 = vcmask 1047617   ;;  %vm100_vm9 = vcmask 1040448  }
  0x41   :  { %89 = vrot.lane.b32.xlu1 %v83_v8, %s4075_s25  ;;  %vm97_vm10 = vcmask 1047616   ;;  %s4083_s27 = smov 127   ;;  %s4084_s28 = smov 126   ;;  %vm168_vm11 = vcmask 1046528   ;;  %vm214_vm12 = vcmask 1045504   ;;  %vm140_vm13 = vcmask 1039360  }
  0x42   :  { %s4085_s29 = smov 125   ;;  %s4086_s30 = smov 124   ;;  %vm264_vm14 = vcmask 1031168   ;;  %vm386_vm15 = vcmask 1022976   ;;  %vm508_vm1 = vcmask 1014784   ;;  %vm6499_vm3 = vcmask 1006592  }
  0x43   :  { %s4087_s4 = smov 123   ;;  %s4088_s5 = smov 6   ;;  %vm6500_vm4 = vcmask 998400   ;;  %vm6501_vm6 = vcmask 990208  }
  0x44   :  { %245 = vrot.lane.b32.xlu0 %v3832_v11, %s4079_s21  ;;  %s4089_s6 = smov 122   ;;  %s4090_s7 = smov 7  }
  0x45   :  { %277 = vrot.lane.b32.xlu1 %v3833_v10, %s4079_s21  ;;  %s4091_s8 = smov 121   ;;  %s4092_s1 = smov 120  }
  0x46   :  { %s4093_s9 = smov 9   ;;  %s4094_s10 = smov 119  }
  0x47   :  { %s4095_s11 = smov 10   ;;  %s4096_s12 = smov 118  }
  0x48   :  { %322 = vrot.lane.b32.xlu0 %v3834_v13, %s4079_s21  ;;  %s4097_s13 = smov 11   ;;  %s4098_s14 = smov 117  }
  0x49   :  { %367 = vrot.lane.b32.xlu1 %v3835_v12, %s4080_s22  ;;  %s4099_s16 = smov 12   ;;  %s4100_s17 = smov 116  }
  0x4a   :  { %s4101_s18 = smov 13   ;;  %s4102_s19 = smov 115  }
  0x4b   :  { %s4103_s20 = smov 14   ;;  %s4104_s0 = smov 114  }
  0x4c   :  { %399 = vrot.lane.b32.xlu0 %v3836_v15, %s4080_s22  ;;  %s4105_s15 = smov 15   ;;  %s4106_s24 = smov 113  }
  0x4d   :  { %444 = vrot.lane.b32.xlu1 %v3837_v14, %s4080_s22 }
  0x50   :  { %489 = vrot.lane.b32.xlu0 %v3838_v17, %s4081_s23 }
  0x51   :  { %521 = vrot.lane.b32.xlu1 %v3839_v16, %s4081_s23 }
  0x54   :  { %566 = vrot.lane.b32.xlu0 %v3840_v19, %s4081_s23 }
  0x55   :  { %611 = vrot.lane.b32.xlu1 %v3841_v18, %s4082_s26 }
  0x58   :  { %643 = vrot.lane.b32.xlu0 %v3842_v20, %s4082_s26 }
  0xaa   :  { %v4201_v21 = vpop.permute.xlu0 %153 }
  0xab   :  { %v122_v22 = vpop.permute.xlu1 %121 }
  0xae   :  { %v86_v24 = vpop.permute.xlu0 %85 }
  0xaf   :  { %v4203_v23 = vpop.permute.xlu1 %199  ;;  %95 = vst.msk [vmem:[#allocation2] sm:$0xfe] %vm94_vm8, %v86_v24 }
  0xb0   :  { %96 = vst.msk [vmem:[#allocation2 + $0x8] sm:$0xfe] %vm67_vm0, %v86_v24 }
  0xb2   :  { %v88_v26 = vpop.permute.xlu0 %87 }
  0xb3   :  { %v90_v25 = vpop.permute.xlu1 %89  ;;  %98 = vst.msk [vmem:[#allocation2 + $0x10] sm:$0xff] %vm97_vm10, %v88_v26 }
  0xb4   :  { %101 = vst.msk [vmem:[#allocation2 + $0x20] sm:$0x1] %vm100_vm9, %v90_v25 }
  0xb5   :  { %102 = vst.msk [vmem:[#allocation2 + $0x28] sm:$0x1] %vm71_vm2, %v90_v25 }
  0xb6   :  { %99 = vst.msk [vmem:[#allocation2 + $0x18] sm:$0xff] %vm69_vm5, %v88_v26  ;;  %v4211_v27 = vld [vmem:[#allocation2] sm:$0xff]  ;;  %v246_v30 = vpop.permute.xlu0 %245 }
  0xb7   :  { %v4213_v28 = vld [vmem:[#allocation2 + $0x8] sm:$0xff]  ;;  %v4215_v29 = vpop.permute.xlu1 %277  ;;  %v124_v32 = vmul.f32 %v122_v22, %v4211_v27  ;;  %v248_v36 = vmul.f32 %v246_v30, %v4211_v27  ;;  %v156_v63 = vmul.f32 %v4201_v21, %v4211_v27  ;;  %v202_v14 = vmul.f32 %v4203_v23, %v4211_v27 }
  0xb8   :  { %v125_v31 = vmul.f32 %v122_v22, %v4213_v28  ;;  %v249_v35 = vmul.f32 %v246_v30, %v4213_v28  ;;  %v157_v62 = vmul.f32 %v4201_v21, %v4213_v28  ;;  %v203_v15 = vmul.f32 %v4203_v23, %v4213_v28 }
  0xb9   :  { %132 = vrot.lane.b32.xlu0 %v124_v32, %s4083_s27  ;;  %v169_v7 = vrot.slane %v156_v63, 1 }
  0xba   :  { %134 = vrot.lane.b32.xlu1 %v125_v31, %s4083_s27  ;;  %v4221_v34 = vpop.permute.xlu0 %322  ;;  %v4243_v48 = vld [vmem:[#allocation2 + $0x10] sm:$0xff]  ;;  %v172_v6 = vrot.slane %v157_v62, 1  ;;  %v218_v24 = vrot.slane %v203_v15, 2 }
  0xbb   :  { %v368_v33 = vpop.permute.xlu1 %367  ;;  %v126_v50 = vmul.f32 %v122_v22, %v4243_v48  ;;  %v250_v53 = vmul.f32 %v246_v30, %v4243_v48  ;;  %v158_v59 = vmul.f32 %v4201_v21, %v4243_v48  ;;  %v4267_v60 = vld [vmem:[#allocation2 + $0x20] sm:$0x3]  ;;  %v204_v8 = vmul.f32 %v4203_v23, %v4243_v48 }
  0xbc   :  { %v370_v39 = vmul.f32 %v368_v33, %v4211_v27  ;;  %v371_v40 = vmul.f32 %v368_v33, %v4213_v28  ;;  %v372_v54 = vmul.f32 %v368_v33, %v4243_v48  ;;  %v4269_v61 = vld [vmem:[#allocation2 + $0x28] sm:$0x3]  ;;  %v160_v5 = vmul.f32 %v4201_v21, %v4267_v60 }
  0xbd   :  { %258 = vrot.lane.b32.xlu0 %v249_v35, %s4084_s28  ;;  %v4245_v49 = vld [vmem:[#allocation2 + $0x18] sm:$0xff]  ;;  %v170_v3 = vrot.slane %v158_v59, 1  ;;  %v161_v4 = vmul.f32 %v4201_v21, %v4269_v61  ;;  %v216_v16 = vrot.slane %v204_v8, 2  ;;  %v206_v20 = vmul.f32 %v4203_v23, %v4267_v60 }
  0xbe   :  { %256 = vrot.lane.b32.xlu1 %v248_v36, %s4084_s28  ;;  %v4229_v38 = vpop.permute.xlu0 %399  ;;  %v127_v51 = vmul.f32 %v122_v22, %v4245_v49  ;;  %v251_v52 = vmul.f32 %v246_v30, %v4245_v49  ;;  %v373_v55 = vmul.f32 %v368_v33, %v4245_v49  ;;  %v159_v58 = vmul.f32 %v4201_v21, %v4245_v49 }
  0xbf   :  { %v4227_v37 = vpop.permute.xlu1 %444  ;;  %v205_v9 = vmul.f32 %v4203_v23, %v4245_v49  ;;  %v171_v11 = vsel %vm168_vm11, %v169_v7, %v170_v3  ;;  %v177_v12 = vrot.slane %v161_v4, 1  ;;  %v175_v13 = vrot.slane %v160_v5, 1 }
  0xc0   :  { %v173_v2 = vrot.slane %v159_v58, 1  ;;  %v207_v21 = vmul.f32 %v4203_v23, %v4269_v61  ;;  %v215_v22 = vrot.slane %v202_v14, 2  ;;  %v282_v26 = vmul.f32 %v4215_v29, %v4243_v48 }
  0xc1   :  { %378 = vrot.lane.b32.xlu0 %v370_v39, %s4085_s29  ;;  %v219_v17 = vrot.slane %v205_v9, 2  ;;  %v176_v19 = vsel %vm168_vm11, %v170_v3, %v175_v13  ;;  %v221_v31 = vrot.slane %v206_v20, 2  ;;  %v283_v33 = vmul.f32 %v4215_v29, %v4245_v49 }
  0xc2   :  { %380 = vrot.lane.b32.xlu1 %v371_v40, %s4085_s29  ;;  %v490_v42 = vpop.permute.xlu0 %489  ;;  %v174_v10 = vsel %vm168_vm11, %v172_v6, %v173_v2  ;;  %v178_v18 = vsel %vm168_vm11, %v173_v2, %v177_v12  ;;  %v217_v25 = vsel %vm214_vm12, %v215_v22, %v216_v16  ;;  %v223_v32 = vrot.slane %v207_v21, 2 }
  0xc3   :  { %v4235_v41 = vpop.permute.xlu1 %521  ;;  %v493_v43 = vmul.f32 %v490_v42, %v4213_v28  ;;  %v492_v44 = vmul.f32 %v490_v42, %v4211_v27  ;;  %v495_v56 = vmul.f32 %v490_v42, %v4245_v49  ;;  %v494_v57 = vmul.f32 %v490_v42, %v4243_v48 }
  0xc4   :  { %v220_v30 = vsel %vm214_vm12, %v218_v24, %v219_v17  ;;  %v280_v23 = vmul.f32 %v4215_v29, %v4211_v27  ;;  %v281_v35 = vmul.f32 %v4215_v29, %v4213_v28  ;;  %v293_v36 = vrot.slane %v282_v26, 1 }
  0xc5   :  { %502 = vrot.lane.b32.xlu0 %v493_v43, %s4086_s30  ;;  %v284_v39 = vmul.f32 %v4215_v29, %v4267_v60  ;;  %v222_v40 = vsel %vm214_vm12, %v216_v16, %v221_v31  ;;  %v224_v42 = vsel %vm214_vm12, %v219_v17, %v223_v32  ;;  %v296_v43 = vrot.slane %v283_v33, 1 }
  0xc6   :  { %500 = vrot.lane.b32.xlu1 %v492_v44, %s4086_s30  ;;  %v285_v44 = vmul.f32 %v4215_v29, %v4269_v61  ;;  %v325_v29 = vmul.f32 %v4221_v34, %v4211_v27  ;;  %v330_v59 = vmul.f32 %v4221_v34, %v4269_v61  ;;  %v403_v4 = vmul.f32 %v4229_v38, %v4213_v28 }
  0xc7   :  { %v612_v45 = vpop.permute.xlu1 %611  ;;  %v405_v5 = vmul.f32 %v4229_v38, %v4245_v49  ;;  %v402_v8 = vmul.f32 %v4229_v38, %v4211_v27  ;;  %v407_v12 = vmul.f32 %v4229_v38, %v4269_v61  ;;  %v406_v16 = vmul.f32 %v4229_v38, %v4267_v60 }
  0xc8   :  { %v614_v46 = vmul.f32 %v612_v45, %v4211_v27  ;;  %v615_v47 = vmul.f32 %v612_v45, %v4213_v28  ;;  %v616_v0 = vmul.f32 %v612_v45, %v4243_v48  ;;  %v617_v1 = vmul.f32 %v612_v45, %v4245_v49 }
  0xc9   :  { %v292_v45 = vrot.slane %v280_v23, 1  ;;  %v337_v63 = vrot.slane %v325_v29, 2  ;;  %v345_v3 = vrot.slane %v330_v59, 2  ;;  %v414_v14 = vrot.slane %v402_v8, 1 }
  0xca   :  { %622 = vrot.lane.b32.xlu0 %v614_v46, %s4087_s4  ;;  %624 = vrot.lane.b32.xlu1 %v615_v47, %s4087_s4  ;;  %v295_v46 = vrot.slane %v281_v35, 1  ;;  %v449_v20 = vmul.f32 %v4227_v37, %v4243_v48  ;;  %v420_v22 = vrot.slane %v406_v16, 1  ;;  %v448_v24 = vmul.f32 %v4227_v37, %v4213_v28 }
  0xcb   :  { %v294_v47 = vsel %vm168_vm11, %v292_v45, %v293_v36  ;;  %v451_v31 = vmul.f32 %v4227_v37, %v4267_v60  ;;  %v452_v35 = vmul.f32 %v4227_v37, %v4269_v61  ;;  %v525_v45 = vmul.f32 %v4235_v41, %v4213_v28 }
  0xcc   :  { %v462_v33 = vrot.slane %v448_v24, 2 }
  0xce   :  { %136 = vrot.lane.b32.xlu0 %v126_v50, %s4083_s27  ;;  %138 = vrot.lane.b32.xlu1 %v127_v51, %s4083_s27  ;;  %v298_v50 = vrot.slane %v284_v39, 1  ;;  %v326_v51 = vmul.f32 %v4221_v34, %v4213_v28  ;;  %v465_v39 = vrot.slane %v451_v31, 2 }
  0xd2   :  { %262 = vrot.lane.b32.xlu0 %v251_v52, %s4084_s28  ;;  %260 = vrot.lane.b32.xlu1 %v250_v53, %s4084_s28  ;;  %v328_v52 = vmul.f32 %v4221_v34, %v4245_v49  ;;  %v297_v53 = vsel %vm168_vm11, %v295_v46, %v296_v43 }
  0xd4   :  { %v341_v58 = vrot.slane %v328_v52, 2  ;;  %v567_v52 = vpop.permute.xlu0 %566 }
  0xd5   :  { %v572_v59 = vmul.f32 %v567_v52, %v4245_v49 }
  0xd6   :  { %382 = vrot.lane.b32.xlu0 %v372_v54, %s4085_s29  ;;  %384 = vrot.lane.b32.xlu1 %v373_v55, %s4085_s29  ;;  %v300_v54 = vrot.slane %v285_v44, 1  ;;  %v327_v55 = vmul.f32 %v4221_v34, %v4243_v48  ;;  %v346_v9 = vsel %vm214_vm12, %v341_v58, %v345_v3  ;;  %v467_v44 = vrot.slane %v452_v35, 2 }
  0xd7   :  { %v585_v3 = vrot.slane %v572_v59, 2 }
  0xd8   :  { %v301_v62 = vsel %vm168_vm11, %v296_v43, %v300_v54  ;;  %v539_v54 = vrot.slane %v525_v45, 1 }
  0xda   :  { %506 = vrot.lane.b32.xlu0 %v495_v56, %s4086_s30  ;;  %504 = vrot.lane.b32.xlu1 %v494_v57, %s4086_s30  ;;  %v299_v56 = vsel %vm168_vm11, %v293_v36, %v298_v50  ;;  %v340_v57 = vrot.slane %v326_v51, 2  ;;  %v528_v51 = vmul.f32 %v4235_v41, %v4267_v60 }
  0xdc   :  { %v342_v2 = vsel %vm214_vm12, %v340_v57, %v341_v58  ;;  %v542_v57 = vrot.slane %v528_v51, 1  ;;  %v570_v58 = vmul.f32 %v567_v52, %v4213_v28 }
  0xde   :  { %626 = vrot.lane.b32.xlu0 %v616_v0, %s4087_s4  ;;  %628 = vrot.lane.b32.xlu1 %v617_v1, %s4087_s4  ;;  %v338_v0 = vrot.slane %v327_v55, 2  ;;  %v329_v1 = vmul.f32 %v4221_v34, %v4267_v60  ;;  %v404_v34 = vmul.f32 %v4229_v38, %v4243_v48  ;;  %v450_v38 = vmul.f32 %v4227_v37, %v4245_v49 }
  0xdf   :  { %v529_v55 = vmul.f32 %v4235_v41, %v4269_v61 }
  0xe0   :  { %v339_v6 = vsel %vm214_vm12, %v337_v63, %v338_v0  ;;  %v343_v7 = vrot.slane %v329_v1, 2  ;;  %v415_v15 = vrot.slane %v404_v34, 1  ;;  %v463_v23 = vrot.slane %v450_v38, 2 }
  0xe1   :  { %v544_v63 = vrot.slane %v529_v55, 1  ;;  %v571_v1 = vmul.f32 %v567_v52, %v4243_v48  ;;  %v573_v34 = vmul.f32 %v567_v52, %v4267_v60 }
  0xe2   :  { %181 = vrot.lane.b32.xlu0 %v174_v10, %s4083_s27  ;;  %179 = vrot.lane.b32.xlu1 %v171_v11, %s4083_s27  ;;  %v417_v10 = vrot.slane %v403_v4, 1  ;;  %v418_v11 = vrot.slane %v405_v5, 1  ;;  %v344_v13 = vsel %vm214_vm12, %v338_v0, %v343_v7  ;;  %v416_v21 = vsel %vm168_vm11, %v414_v14, %v415_v15  ;;  %v644_v5 = vpop.permute.xlu0 %643 }
  0xe3   :  { %v421_v32 = vsel %vm168_vm11, %v415_v15, %v420_v22  ;;  %v464_v43 = vsel %vm214_vm12, %v462_v33, %v463_v23  ;;  %v569_v0 = vmul.f32 %v567_v52, %v4211_v27  ;;  %v574_v4 = vmul.f32 %v567_v52, %v4269_v61 }
  0xe4   :  { %v419_v17 = vsel %vm168_vm11, %v417_v10, %v418_v11  ;;  %v582_v8 = vrot.slane %v571_v1, 2  ;;  %v647_v10 = vmul.f32 %v644_v5, %v4213_v28  ;;  %v587_v15 = vrot.slane %v573_v34, 2 }
  0xe5   :  { %v581_v7 = vrot.slane %v569_v0, 2  ;;  %v648_v16 = vmul.f32 %v644_v5, %v4243_v48  ;;  %v651_v24 = vmul.f32 %v644_v5, %v4269_v61  ;;  %v650_v38 = vmul.f32 %v644_v5, %v4267_v60 }
  0xe6   :  { %185 = vrot.lane.b32.xlu0 %v178_v18, %s4083_s27  ;;  %183 = vrot.lane.b32.xlu1 %v176_v19, %s4083_s27  ;;  %v422_v18 = vrot.slane %v407_v12, 1  ;;  %v447_v19 = vmul.f32 %v4227_v37, %v4211_v27  ;;  %v527_v37 = vmul.f32 %v4235_v41, %v4245_v49  ;;  %v646_v12 = vmul.f32 %v644_v5, %v4211_v27 }
  0xe7   :  { %v583_v14 = vsel %vm214_vm12, %v581_v7, %v582_v8  ;;  %v659_v22 = vrot.slane %v648_v16, 1  ;;  %v664_v31 = vrot.slane %v650_v38, 1 }
  0xe8   :  { %v459_v26 = vrot.slane %v447_v19, 2  ;;  %v540_v29 = vrot.slane %v527_v37, 1 }
  0xe9   :  { %v665_v33 = vsel %vm168_vm11, %v659_v22, %v664_v31 }
  0xea   :  { %225 = vrot.lane.b32.xlu0 %v217_v25, %s4083_s27  ;;  %227 = vrot.lane.b32.xlu1 %v220_v30, %s4083_s27  ;;  %v423_v25 = vsel %vm168_vm11, %v418_v11, %v422_v18  ;;  %v460_v30 = vrot.slane %v449_v20, 2  ;;  %v649_v11 = vmul.f32 %v644_v5, %v4245_v49  ;;  %v661_v18 = vrot.slane %v647_v10, 1 }
  0xeb   :  { %v658_v20 = vrot.slane %v646_v12, 1 }
  0xec   :  { %v461_v36 = vsel %vm214_vm12, %v459_v26, %v460_v30  ;;  %v466_v46 = vsel %vm214_vm12, %v460_v30, %v465_v39  ;;  %v662_v19 = vrot.slane %v649_v11, 1  ;;  %v666_v30 = vrot.slane %v651_v24, 1 }
  0xed   :  { %v660_v26 = vsel %vm168_vm11, %v658_v20, %v659_v22 }
  0xee   :  { %229 = vrot.lane.b32.xlu0 %v222_v40, %s4083_s27  ;;  %231 = vrot.lane.b32.xlu1 %v224_v42, %s4083_s27  ;;  %v524_v40 = vmul.f32 %v4235_v41, %v4211_v27  ;;  %v526_v42 = vmul.f32 %v4235_v41, %v4243_v48 }
  0xf0   :  { %v537_v50 = vrot.slane %v526_v42, 1 }
  0xf2   :  { %302 = vrot.lane.b32.xlu0 %v294_v47, %s4084_s28  ;;  %304 = vrot.lane.b32.xlu1 %v297_v53, %s4084_s28  ;;  %v536_v47 = vrot.slane %v524_v40, 1  ;;  %v468_v53 = vsel %vm214_vm12, %v463_v23, %v467_v44  ;;  %v543_v41 = vsel %vm168_vm11, %v537_v50, %v542_v57  ;;  %v3843_v23 = vld [vmem:[#allocation6 + $0x22] ss:$0 sm:$0xff] }
  0xf6   :  { %306 = vrot.lane.b32.xlu0 %v299_v56, %s4084_s28  ;;  %308 = vrot.lane.b32.xlu1 %v301_v62, %s4084_s28  ;;  %v538_v56 = vsel %vm168_vm11, %v536_v47, %v537_v50  ;;  %v541_v62 = vsel %vm168_vm11, %v539_v54, %v540_v29 }
  0xfa   :  { %349 = vrot.lane.b32.xlu0 %v342_v2, %s4084_s28  ;;  %347 = vrot.lane.b32.xlu1 %v339_v6, %s4084_s28  ;;  %v584_v2 = vrot.slane %v570_v58, 2  ;;  %v545_v6 = vsel %vm168_vm11, %v540_v29, %v544_v63 }
  0xfe   :  { %353 = vrot.lane.b32.xlu0 %v346_v9, %s4084_s28  ;;  %351 = vrot.lane.b32.xlu1 %v344_v13, %s4084_s28  ;;  %v589_v9 = vrot.slane %v574_v4, 2  ;;  %v586_v13 = vsel %vm214_vm12, %v584_v2, %v585_v3 }
 0x102   :  { %426 = vrot.lane.b32.xlu0 %v419_v17, %s4085_s29  ;;  %424 = vrot.lane.b32.xlu1 %v416_v21, %s4085_s29  ;;  %v590_v17 = vsel %vm214_vm12, %v585_v3, %v589_v9  ;;  %v588_v21 = vsel %vm214_vm12, %v582_v8, %v587_v15 }
 0x106   :  { %430 = vrot.lane.b32.xlu0 %v423_v25, %s4085_s29  ;;  %428 = vrot.lane.b32.xlu1 %v421_v32, %s4085_s29  ;;  %v663_v25 = vsel %vm168_vm11, %v661_v18, %v662_v19  ;;  %v667_v32 = vsel %vm168_vm11, %v662_v19, %v666_v30 }
 0x10a   :  { %469 = vrot.lane.b32.xlu0 %v461_v36, %s4085_s29  ;;  %471 = vrot.lane.b32.xlu1 %v464_v43, %s4085_s29 }
 0x10e   :  { %473 = vrot.lane.b32.xlu0 %v466_v46, %s4085_s29  ;;  %475 = vrot.lane.b32.xlu1 %v468_v53, %s4085_s29 }
 0x112   :  { %546 = vrot.lane.b32.xlu0 %v538_v56, %s4086_s30  ;;  %548 = vrot.lane.b32.xlu1 %v541_v62, %s4086_s30 }
 0x116   :  { %550 = vrot.lane.b32.xlu0 %v543_v41, %s4086_s30  ;;  %552 = vrot.lane.b32.xlu1 %v545_v6, %s4086_s30 }
 0x11a   :  { %593 = vrot.lane.b32.xlu0 %v586_v13, %s4086_s30  ;;  %591 = vrot.lane.b32.xlu1 %v583_v14, %s4086_s30 }
 0x11e   :  { %597 = vrot.lane.b32.xlu0 %v590_v17, %s4086_s30  ;;  %595 = vrot.lane.b32.xlu1 %v588_v21, %s4086_s30 }
 0x122   :  { %670 = vrot.lane.b32.xlu0 %v663_v25, %s4087_s4  ;;  %668 = vrot.lane.b32.xlu1 %v660_v26, %s4087_s4 }
 0x126   :  { %674 = vrot.lane.b32.xlu0 %v667_v32, %s4087_s4  ;;  %672 = vrot.lane.b32.xlu1 %v665_v33, %s4087_s4  ;;  %v3844_v32 = vld [vmem:[#allocation6 + $0x5] ss:$0 sm:$0xff] }
 0x12a   :  { %688 = vrot.lane.b32.xlu1 %v3843_v23, %s4082_s26 }
 0x12b   :  { %v4476_v55 = vpop.permute.xlu0 %132 }
 0x12c   :  { %v4442_v35 = vpop.permute.xlu1 %134 }
 0x12f   :  { %v4480_v57 = vpop.permute.xlu0 %258 }
 0x130   :  { %v4444_v36 = vpop.permute.xlu1 %256 }
 0x133   :  { %v4486_v62 = vpop.permute.xlu0 %378 }
 0x134   :  { %v4446_v39 = vpop.permute.xlu1 %380 }
 0x137   :  { %v4490_v0 = vpop.permute.xlu0 %502 }
 0x138   :  { %v4448_v40 = vpop.permute.xlu1 %500 }
 0x13c   :  { %v4450_v42 = vpop.permute.xlu1 %624  ;;  %v4496_v2 = vpop.permute.xlu0 %622 }
 0x13d   :  { %6513 = vst [vmem:[#allocation13_spill] sm:$0xff] %v4450_v42  ;;  %6516 = vst [vmem:[#allocation16_spill] sm:$0xff] %v4496_v2 }
 0x140   :  { %v4452_v43 = vpop.permute.xlu1 %138  ;;  %v4500_v4 = vpop.permute.xlu0 %136 }
 0x144   :  { %v4454_v44 = vpop.permute.xlu1 %260  ;;  %v4506_v7 = vpop.permute.xlu0 %262 }
 0x148   :  { %v4456_v45 = vpop.permute.xlu1 %384  ;;  %v4510_v34 = vpop.permute.xlu0 %382 }
 0x14c   :  { %v4458_v37 = vpop.permute.xlu1 %504  ;;  %v4518_v15 = vpop.permute.xlu0 %506 }
 0x14d   :  { %6514 = vst [vmem:[#allocation14_spill] sm:$0xff] %v4458_v37  ;;  %6522 = vst [vmem:[#allocation22_spill] sm:$0xff] %v4518_v15 }
 0x150   :  { %v4460_v46 = vpop.permute.xlu1 %628  ;;  %v4526_v26 = vpop.permute.xlu0 %626 }
 0x151   :  { %6515 = vst [vmem:[#allocation15_spill] sm:$0xff] %v4460_v46  ;;  %6523 = vst [vmem:[#allocation23_spill] sm:$0xff] %v4526_v26 }
 0x154   :  { %v4462_v47 = vpop.permute.xlu1 %179  ;;  %v4532_v33 = vpop.permute.xlu0 %181 }
 0x158   :  { %v4464_v50 = vpop.permute.xlu1 %183  ;;  %v4535_v23 = vpop.permute.xlu0 %185 }
 0x15c   :  { %v4466_v51 = vpop.permute.xlu1 %227 }
 0x160   :  { %v4468_v52 = vpop.permute.xlu1 %231 }
 0x164   :  { %v4470_v53 = vpop.permute.xlu1 %304 }
 0x168   :  { %v4472_v54 = vpop.permute.xlu1 %308 }
 0x16c   :  { %v4474_v29 = vpop.permute.xlu1 %347 }
 0x170   :  { %v4478_v56 = vpop.permute.xlu1 %351 }
 0x174   :  { %v4482_v58 = vpop.permute.xlu1 %424 }
 0x178   :  { %v4484_v59 = vpop.permute.xlu1 %428 }
 0x17c   :  { %v4488_v63 = vpop.permute.xlu1 %471 }
 0x180   :  { %v4492_v1 = vpop.permute.xlu1 %475 }
 0x184   :  { %v4494_v41 = vpop.permute.xlu1 %548 }
 0x188   :  { %v4498_v3 = vpop.permute.xlu1 %552 }
 0x189   :  { %6517 = vst [vmem:[#allocation17_spill] sm:$0xff] %v4498_v3 }
 0x18c   :  { %v4502_v5 = vpop.permute.xlu1 %591 }
 0x18d   :  { %6518 = vst [vmem:[#allocation18_spill] sm:$0xff] %v4502_v5 }
 0x190   :  { %v4504_v6 = vpop.permute.xlu1 %595 }
 0x191   :  { %6519 = vst [vmem:[#allocation19_spill] sm:$0xff] %v4504_v6 }
 0x194   :  { %v4508_v8 = vpop.permute.xlu1 %668 }
 0x195   :  { %6520 = vst [vmem:[#allocation20_spill] sm:$0xff] %v4508_v8 }
 0x198   :  { %v4512_v9 = vpop.permute.xlu1 %672 }
 0x199   :  { %6521 = vst [vmem:[#allocation21_spill] sm:$0xff] %v4512_v9 }
 0x19c   :  { %v689_v10 = vpop.permute.xlu1 %688 }
 0x19d   :  { %v692_v11 = vmul.f32 %v689_v10, %v4213_v28  ;;  %v694_v12 = vmul.f32 %v689_v10, %v4245_v49  ;;  %v691_v13 = vmul.f32 %v689_v10, %v4211_v27  ;;  %v693_v14 = vmul.f32 %v689_v10, %v4243_v48 }
 0x19e   :  { %v696_v16 = vmul.f32 %v689_v10, %v4269_v61  ;;  %v695_v17 = vmul.f32 %v689_v10, %v4267_v60  ;;  %v4537_v10 = vpop.permute.xlu0 %225 }
 0x19f   :  { %v706_v18 = vrot.slane %v692_v11, 2  ;;  %v707_v19 = vrot.slane %v694_v12, 2  ;;  %v703_v20 = vrot.slane %v691_v13, 2  ;;  %v704_v21 = vrot.slane %v693_v14, 2 }
 0x1a0   :  { %v711_v38 = vrot.slane %v696_v16, 2  ;;  %v709_v25 = vrot.slane %v695_v17, 2 }
 0x1a1   :  { %v708_v22 = vsel %vm214_vm12, %v706_v18, %v707_v19  ;;  %v705_v24 = vsel %vm214_vm12, %v703_v20, %v704_v21 }
 0x1a2   :  { %715 = vrot.lane.b32.xlu1 %v708_v22, %s4087_s4  ;;  %713 = vrot.lane.b32.xlu0 %v705_v24, %s4087_s4  ;;  %v712_v30 = vsel %vm214_vm12, %v707_v19, %v711_v38  ;;  %v710_v31 = vsel %vm214_vm12, %v704_v21, %v709_v25  ;;  %v4539_v11 = vpop.permute.xlu0 %229 }
 0x1a6   :  { %719 = vrot.lane.b32.xlu1 %v712_v30, %s4087_s4  ;;  %717 = vrot.lane.b32.xlu0 %v710_v31, %s4087_s4  ;;  %v4541_v12 = vpop.permute.xlu0 %302 }
 0x1aa   :  { %733 = vrot.lane.b32.xlu0 %v3844_v32, %s4088_s5  ;;  %v4543_v13 = vpop.permute.xlu0 %306 }
 0x1ae   :  { %v4545_v14 = vpop.permute.xlu0 %349 }
 0x1b2   :  { %v4547_v16 = vpop.permute.xlu0 %353 }
 0x1b6   :  { %v4549_v17 = vpop.permute.xlu0 %426 }
 0x1ba   :  { %v4551_v18 = vpop.permute.xlu0 %430 }
 0x1be   :  { %v4553_v19 = vpop.permute.xlu0 %469 }
 0x1c2   :  { %v4555_v20 = vpop.permute.xlu0 %473 }
 0x1c6   :  { %v4557_v21 = vpop.permute.xlu0 %546 }
 0x1ca   :  { %v4559_v22 = vpop.permute.xlu0 %550 }
 0x1cb   :  { %6524 = vst [vmem:[#allocation24_spill] sm:$0xff] %v4559_v22 }
 0x1ce   :  { %v4561_v24 = vpop.permute.xlu0 %593 }
 0x1d2   :  { %v4563_v38 = vpop.permute.xlu0 %597 }
 0x1d3   :  { %6525 = vst [vmem:[#allocation25_spill] sm:$0xff] %v4563_v38 }
 0x1d6   :  { %v4565_v25 = vpop.permute.xlu0 %670 }
 0x1d7   :  { %6526 = vst [vmem:[#allocation26_spill] sm:$0xff] %v4565_v25 }
 0x1da   :  { %v4567_v30 = vpop.permute.xlu0 %674 }
 0x1db   :  { %6527 = vst [vmem:[#allocation27_spill] sm:$0xff] %v4567_v30  ;;  %v3845_v30 = vld [vmem:[#allocation6 + $0x14] ss:$0 sm:$0xff] }
 0x214   :  { %v4569_v31 = vpop.permute.xlu0 %713 }
 0x215   :  { %6528 = vst [vmem:[#allocation28_spill] sm:$0xff] %v4569_v31 }
 0x218   :  { %v4571_v32 = vpop.permute.xlu0 %717 }
 0x219   :  { %6529 = vst [vmem:[#allocation29_spill] sm:$0xff] %v4571_v32  ;;  %v4582_v32 = vpop.permute.xlu1 %715 }
 0x21a   :  { %6530 = vst [vmem:[#allocation30_spill] sm:$0xff] %v4582_v32 }
 0x21c   :  { %v734_v9 = vpop.permute.xlu0 %733 }
 0x21d   :  { %v737_v26 = vmul.f32 %v734_v9, %v4213_v28  ;;  %v736_v46 = vmul.f32 %v734_v9, %v4211_v27  ;;  %v739_v8 = vmul.f32 %v734_v9, %v4245_v49  ;;  %v738_v25 = vmul.f32 %v734_v9, %v4243_v48  ;;  %v4584_v31 = vpop.permute.xlu1 %719 }
 0x21e   :  { %6531 = vst [vmem:[#allocation31_spill] sm:$0xff] %v4584_v31 }
 0x21f   :  { %746 = vrot.lane.b32.xlu0 %v737_v26, %s4089_s6  ;;  %744 = vrot.lane.b32.xlu1 %v736_v46, %s4089_s6 }
 0x223   :  { %750 = vrot.lane.b32.xlu0 %v739_v8, %s4089_s6  ;;  %748 = vrot.lane.b32.xlu1 %v738_v25, %s4089_s6 }
 0x227   :  { %765 = vrot.lane.b32.xlu1 %v3845_v30, %s4088_s5 }
 0x291   :  { %v4586_v2 = vpop.permute.xlu1 %744 }
 0x292   :  { %6532 = vst [vmem:[#allocation32_spill] sm:$0xff] %v4586_v2 }
 0x295   :  { %v4588_v26 = vpop.permute.xlu1 %748 }
 0x296   :  { %6533 = vst [vmem:[#allocation33_spill] sm:$0xff] %v4588_v26 }
 0x299   :  { %v766_v46 = vpop.permute.xlu1 %765 }
 0x29a   :  { %v769_v42 = vmul.f32 %v766_v46, %v4213_v28  ;;  %v771_v9 = vmul.f32 %v766_v46, %v4245_v49  ;;  %v768_v8 = vmul.f32 %v766_v46, %v4211_v27  ;;  %v770_v25 = vmul.f32 %v766_v46, %v4243_v48 }
 0x29b   :  { %v773_v6 = vmul.f32 %v766_v46, %v4269_v61  ;;  %v772_v30 = vmul.f32 %v766_v46, %v4267_v60 }
 0x29c   :  { %v783_v32 = vrot.slane %v769_v42, 1  ;;  %v784_v38 = vrot.slane %v771_v9, 1  ;;  %v780_v31 = vrot.slane %v768_v8, 1  ;;  %v781_v22 = vrot.slane %v770_v25, 1  ;;  %v3846_v42 = vld [vmem:[#allocation6 + $0x23] ss:$0 sm:$0xff] }
 0x29d   :  { %v788_v3 = vrot.slane %v773_v6, 1  ;;  %v786_v37 = vrot.slane %v772_v30, 1 }
 0x29e   :  { %v785_v2 = vsel %vm168_vm11, %v783_v32, %v784_v38  ;;  %v782_v26 = vsel %vm168_vm11, %v780_v31, %v781_v22  ;;  %v4605_v32 = vpop.permute.xlu0 %746 }
 0x29f   :  { %792 = vrot.lane.b32.xlu1 %v785_v2, %s4089_s6  ;;  %790 = vrot.lane.b32.xlu0 %v782_v26, %s4089_s6  ;;  %v789_v15 = vsel %vm168_vm11, %v784_v38, %v788_v3  ;;  %v787_v5 = vsel %vm168_vm11, %v781_v22, %v786_v37  ;;  %6534 = vst [vmem:[#allocation34_spill] sm:$0xff] %v4605_v32 }
 0x2a2   :  { %v4607_v31 = vpop.permute.xlu0 %750 }
 0x2a3   :  { %796 = vrot.lane.b32.xlu1 %v789_v15, %s4089_s6  ;;  %794 = vrot.lane.b32.xlu0 %v787_v5, %s4089_s6  ;;  %6535 = vst [vmem:[#allocation35_spill] sm:$0xff] %v4607_v31 }
 0x2a7   :  { %810 = vrot.lane.b32.xlu0 %v3846_v42, %s4088_s5 }
 0x311   :  { %v4609_v6 = vpop.permute.xlu0 %790 }
 0x312   :  { %6536 = vst [vmem:[#allocation36_spill] sm:$0xff] %v4609_v6 }
 0x315   :  { %v4611_v2 = vpop.permute.xlu0 %794 }
 0x316   :  { %6537 = vst [vmem:[#allocation37_spill] sm:$0xff] %v4611_v2 }
 0x319   :  { %v811_v26 = vpop.permute.xlu0 %810 }
 0x31a   :  { %v814_v3 = vmul.f32 %v811_v26, %v4213_v28  ;;  %v816_v37 = vmul.f32 %v811_v26, %v4245_v49  ;;  %v813_v15 = vmul.f32 %v811_v26, %v4211_v27  ;;  %v815_v5 = vmul.f32 %v811_v26, %v4243_v48 }
 0x31b   :  { %v818_v22 = vmul.f32 %v811_v26, %v4269_v61  ;;  %v817_v38 = vmul.f32 %v811_v26, %v4267_v60  ;;  %v3847_v26 = vld [vmem:[#allocation6 + $0x6] ss:$0 sm:$0xff] }
 0x31c   :  { %v828_v46 = vrot.slane %v814_v3, 2  ;;  %v829_v9 = vrot.slane %v816_v37, 2  ;;  %v825_v8 = vrot.slane %v813_v15, 2  ;;  %v826_v25 = vrot.slane %v815_v5, 2  ;;  %v4628_v3 = vpop.permute.xlu1 %792 }
 0x31d   :  { %v833_v2 = vrot.slane %v818_v22, 2  ;;  %v831_v31 = vrot.slane %v817_v38, 2  ;;  %6538 = vst [vmem:[#allocation38_spill] sm:$0xff] %v4628_v3  ;;  %v3848_v38 = vld [vmem:[#allocation6 + $0x15] ss:$0 sm:$0xff] }
 0x31e   :  { %v830_v30 = vsel %vm214_vm12, %v828_v46, %v829_v9  ;;  %v827_v42 = vsel %vm214_vm12, %v825_v8, %v826_v25 }
 0x31f   :  { %837 = vrot.lane.b32.xlu0 %v830_v30, %s4089_s6  ;;  %835 = vrot.lane.b32.xlu1 %v827_v42, %s4089_s6  ;;  %v834_v6 = vsel %vm214_vm12, %v829_v9, %v833_v2  ;;  %v832_v32 = vsel %vm214_vm12, %v826_v25, %v831_v31 }
 0x320   :  { %v4630_v37 = vpop.permute.xlu1 %796 }
 0x321   :  { %6539 = vst [vmem:[#allocation39_spill] sm:$0xff] %v4630_v37 }
 0x323   :  { %841 = vrot.lane.b32.xlu0 %v834_v6, %s4089_s6  ;;  %839 = vrot.lane.b32.xlu1 %v832_v32, %s4089_s6 }
 0x327   :  { %855 = vrot.lane.b32.xlu1 %v3847_v26, %s4090_s7 }
 0x391   :  { %v4632_v15 = vpop.permute.xlu1 %835  ;;  %v4645_v46 = vpop.permute.xlu0 %837 }
 0x392   :  { %6540 = vst [vmem:[#allocation40_spill] sm:$0xff] %v4632_v15  ;;  %6542 = vst [vmem:[#allocation42_spill] sm:$0xff] %v4645_v46 }
 0x395   :  { %v4634_v5 = vpop.permute.xlu1 %839  ;;  %v4647_v9 = vpop.permute.xlu0 %841 }
 0x396   :  { %6541 = vst [vmem:[#allocation41_spill] sm:$0xff] %v4634_v5  ;;  %6543 = vst [vmem:[#allocation43_spill] sm:$0xff] %v4647_v9 }
 0x399   :  { %v856_v22 = vpop.permute.xlu1 %855 }
 0x39a   :  { %v859_v2 = vmul.f32 %v856_v22, %v4213_v28  ;;  %v858_v31 = vmul.f32 %v856_v22, %v4211_v27  ;;  %v861_v32 = vmul.f32 %v856_v22, %v4245_v49  ;;  %v860_v6 = vmul.f32 %v856_v22, %v4243_v48 }
 0x39c   :  { %868 = vrot.lane.b32.xlu1 %v859_v2, %s4091_s8  ;;  %866 = vrot.lane.b32.xlu0 %v858_v31, %s4091_s8 }
 0x3a0   :  { %872 = vrot.lane.b32.xlu1 %v861_v32, %s4091_s8  ;;  %870 = vrot.lane.b32.xlu0 %v860_v6, %s4091_s8 }
 0x3a4   :  { %887 = vrot.lane.b32.xlu0 %v3848_v38, %s4090_s7 }
 0x40e   :  { %v4649_v8 = vpop.permute.xlu0 %866 }
 0x40f   :  { %6544 = vst [vmem:[#allocation44_spill] sm:$0xff] %v4649_v8 }
 0x412   :  { %v4651_v25 = vpop.permute.xlu0 %870 }
 0x413   :  { %6545 = vst [vmem:[#allocation45_spill] sm:$0xff] %v4651_v25 }
 0x416   :  { %v888_v30 = vpop.permute.xlu0 %887 }
 0x417   :  { %v891_v42 = vmul.f32 %v888_v30, %v4213_v28  ;;  %v893_v26 = vmul.f32 %v888_v30, %v4245_v49  ;;  %v890_v22 = vmul.f32 %v888_v30, %v4211_v27  ;;  %v892_v2 = vmul.f32 %v888_v30, %v4243_v48 }
 0x418   :  { %v895_v31 = vmul.f32 %v888_v30, %v4269_v61  ;;  %v894_v32 = vmul.f32 %v888_v30, %v4267_v60  ;;  %v3849_v30 = vld [vmem:[#allocation6 + $0x24] ss:$0 sm:$0xff] }
 0x419   :  { %v905_v6 = vrot.slane %v891_v42, 1  ;;  %v906_v38 = vrot.slane %v893_v26, 1  ;;  %v902_v5 = vrot.slane %v890_v22, 1  ;;  %v903_v9 = vrot.slane %v892_v2, 1  ;;  %v4668_v42 = vpop.permute.xlu1 %868 }
 0x41a   :  { %v910_v37 = vrot.slane %v895_v31, 1  ;;  %v908_v15 = vrot.slane %v894_v32, 1  ;;  %6546 = vst [vmem:[#allocation46_spill] sm:$0xff] %v4668_v42 }
 0x41b   :  { %v907_v8 = vsel %vm168_vm11, %v905_v6, %v906_v38  ;;  %v904_v25 = vsel %vm168_vm11, %v902_v5, %v903_v9 }
 0x41c   :  { %914 = vrot.lane.b32.xlu0 %v907_v8, %s4091_s8  ;;  %912 = vrot.lane.b32.xlu1 %v904_v25, %s4091_s8  ;;  %v911_v46 = vsel %vm168_vm11, %v906_v38, %v910_v37  ;;  %v909_v3 = vsel %vm168_vm11, %v903_v9, %v908_v15 }
 0x41d   :  { %v4670_v5 = vpop.permute.xlu1 %872 }
 0x41e   :  { %6547 = vst [vmem:[#allocation47_spill] sm:$0xff] %v4670_v5 }
 0x420   :  { %918 = vrot.lane.b32.xlu0 %v911_v46, %s4091_s8  ;;  %916 = vrot.lane.b32.xlu1 %v909_v3, %s4091_s8 }
 0x424   :  { %932 = vrot.lane.b32.xlu1 %v3849_v30, %s4090_s7 }
 0x48e   :  { %v4672_v26 = vpop.permute.xlu1 %912 }
 0x48f   :  { %6548 = vst [vmem:[#allocation48_spill] sm:$0xff] %v4672_v26 }
 0x492   :  { %v4674_v8 = vpop.permute.xlu1 %916 }
 0x493   :  { %6549 = vst [vmem:[#allocation49_spill] sm:$0xff] %v4674_v8 }
 0x496   :  { %v933_v25 = vpop.permute.xlu1 %932 }
 0x497   :  { %v936_v37 = vmul.f32 %v933_v25, %v4213_v28  ;;  %v938_v15 = vmul.f32 %v933_v25, %v4245_v49  ;;  %v935_v46 = vmul.f32 %v933_v25, %v4211_v27  ;;  %v937_v3 = vmul.f32 %v933_v25, %v4243_v48 }
 0x498   :  { %v940_v9 = vmul.f32 %v933_v25, %v4269_v61  ;;  %v939_v22 = vmul.f32 %v933_v25, %v4267_v60  ;;  %v3850_v25 = vld [vmem:[#allocation6 + $0x7] ss:$0 sm:$0xff] }
 0x499   :  { %v950_v2 = vrot.slane %v936_v37, 2  ;;  %v951_v31 = vrot.slane %v938_v15, 2  ;;  %v947_v32 = vrot.slane %v935_v46, 2  ;;  %v948_v6 = vrot.slane %v937_v3, 2  ;;  %v4691_v37 = vpop.permute.xlu0 %914 }
 0x49a   :  { %v955_v8 = vrot.slane %v940_v9, 2  ;;  %v953_v5 = vrot.slane %v939_v22, 2  ;;  %6550 = vst [vmem:[#allocation50_spill] sm:$0xff] %v4691_v37  ;;  %v3851_v22 = vld [vmem:[#allocation6 + $0x16] ss:$0 sm:$0xff] }
 0x49b   :  { %v952_v38 = vsel %vm214_vm12, %v950_v2, %v951_v31  ;;  %v949_v30 = vsel %vm214_vm12, %v947_v32, %v948_v6 }
 0x49c   :  { %959 = vrot.lane.b32.xlu1 %v952_v38, %s4091_s8  ;;  %957 = vrot.lane.b32.xlu0 %v949_v30, %s4091_s8  ;;  %v956_v26 = vsel %vm214_vm12, %v951_v31, %v955_v8  ;;  %v954_v42 = vsel %vm214_vm12, %v948_v6, %v953_v5 }
 0x49d   :  { %v4693_v15 = vpop.permute.xlu0 %918 }
 0x49e   :  { %6551 = vst [vmem:[#allocation51_spill] sm:$0xff] %v4693_v15 }
 0x4a0   :  { %963 = vrot.lane.b32.xlu1 %v956_v26, %s4091_s8  ;;  %961 = vrot.lane.b32.xlu0 %v954_v42, %s4091_s8 }
 0x4a4   :  { %977 = vrot.lane.b32.xlu0 %v3850_v25, %s4075_s25 }
 0x50e   :  { %v4695_v46 = vpop.permute.xlu0 %957  ;;  %v4708_v2 = vpop.permute.xlu1 %959 }
 0x50f   :  { %6552 = vst [vmem:[#allocation52_spill] sm:$0xff] %v4695_v46  ;;  %6554 = vst [vmem:[#allocation54_spill] sm:$0xff] %v4708_v2 }
 0x512   :  { %v4697_v3 = vpop.permute.xlu0 %961  ;;  %v4710_v31 = vpop.permute.xlu1 %963 }
 0x513   :  { %6553 = vst [vmem:[#allocation53_spill] sm:$0xff] %v4697_v3  ;;  %6555 = vst [vmem:[#allocation55_spill] sm:$0xff] %v4710_v31 }
 0x516   :  { %v978_v9 = vpop.permute.xlu0 %977 }
 0x517   :  { %v981_v8 = vmul.f32 %v978_v9, %v4213_v28  ;;  %v980_v5 = vmul.f32 %v978_v9, %v4211_v27  ;;  %v983_v42 = vmul.f32 %v978_v9, %v4245_v49  ;;  %v982_v26 = vmul.f32 %v978_v9, %v4243_v48 }
 0x519   :  { %990 = vrot.lane.b32.xlu0 %v981_v8, %s4092_s1  ;;  %988 = vrot.lane.b32.xlu1 %v980_v5, %s4092_s1 }
 0x51d   :  { %994 = vrot.lane.b32.xlu0 %v983_v42, %s4092_s1  ;;  %992 = vrot.lane.b32.xlu1 %v982_v26, %s4092_s1 }
 0x521   :  { %1009 = vrot.lane.b32.xlu1 %v3851_v22, %s4075_s25 }
 0x58b   :  { %v4712_v32 = vpop.permute.xlu1 %988 }
 0x58c   :  { %6556 = vst [vmem:[#allocation56_spill] sm:$0xff] %v4712_v32 }
 0x58f   :  { %v4714_v6 = vpop.permute.xlu1 %992 }
 0x590   :  { %6557 = vst [vmem:[#allocation57_spill] sm:$0xff] %v4714_v6 }
 0x593   :  { %v1010_v38 = vpop.permute.xlu1 %1009 }
 0x594   :  { %v1013_v30 = vmul.f32 %v1010_v38, %v4213_v28  ;;  %v1015_v25 = vmul.f32 %v1010_v38, %v4245_v49  ;;  %v1012_v9 = vmul.f32 %v1010_v38, %v4211_v27  ;;  %v1014_v8 = vmul.f32 %v1010_v38, %v4243_v48 }
 0x595   :  { %v1017_v5 = vmul.f32 %v1010_v38, %v4269_v61  ;;  %v1016_v42 = vmul.f32 %v1010_v38, %v4267_v60  ;;  %v3852_v38 = vld [vmem:[#allocation6 + $0x25] ss:$0 sm:$0xff] }
 0x596   :  { %v1027_v26 = vrot.slane %v1013_v30, 1  ;;  %v1028_v22 = vrot.slane %v1015_v25, 1  ;;  %v1024_v3 = vrot.slane %v1012_v9, 1  ;;  %v1025_v31 = vrot.slane %v1014_v8, 1  ;;  %v4731_v30 = vpop.permute.xlu0 %990  ;;  %v4739_v9 = vld [vmem:[#allocation2 + $0x8] sm:$0xff]  ;;  %v4743_v8 = vld [vmem:[#allocation2] sm:$0xff] }
 0x597   :  { %v1032_v15 = vrot.slane %v1017_v5, 1  ;;  %v1030_v28 = vrot.slane %v1016_v42, 1  ;;  %6558 = vst [vmem:[#allocation58_spill] sm:$0xff] %v4731_v30 }
 0x598   :  { %v1029_v32 = vsel %vm168_vm11, %v1027_v26, %v1028_v22  ;;  %v1026_v6 = vsel %vm168_vm11, %v1024_v3, %v1025_v31 }
 0x599   :  { %1036 = vrot.lane.b32.xlu1 %v1029_v32, %s4092_s1  ;;  %1034 = vrot.lane.b32.xlu0 %v1026_v6, %s4092_s1  ;;  %v1033_v27 = vsel %vm168_vm11, %v1028_v22, %v1032_v15  ;;  %v1031_v46 = vsel %vm168_vm11, %v1025_v31, %v1030_v28 }
 0x59a   :  { %v4733_v3 = vpop.permute.xlu0 %994 }
 0x59b   :  { %6559 = vst [vmem:[#allocation59_spill] sm:$0xff] %v4733_v3 }
 0x59d   :  { %1040 = vrot.lane.b32.xlu1 %v1033_v27, %s4092_s1  ;;  %1038 = vrot.lane.b32.xlu0 %v1031_v46, %s4092_s1 }
 0x5a1   :  { %1054 = vrot.lane.b32.xlu0 %v3852_v38, %s4075_s25 }
 0x60b   :  { %v4735_v25 = vpop.permute.xlu0 %1034 }
 0x60c   :  { %6560 = vst [vmem:[#allocation60_spill] sm:$0xff] %v4735_v25 }
 0x60f   :  { %v4737_v32 = vpop.permute.xlu0 %1038 }
 0x610   :  { %6561 = vst [vmem:[#allocation61_spill] sm:$0xff] %v4737_v32 }
 0x613   :  { %v1055_v6 = vpop.permute.xlu0 %1054 }
 0x614   :  { %v1058_v15 = vmul.f32 %v4739_v9, %v1055_v6  ;;  %v1060_v31 = vmul.f32 %v1055_v6, %v4245_v49  ;;  %v1057_v46 = vmul.f32 %v4743_v8, %v1055_v6  ;;  %v1059_v5 = vmul.f32 %v1055_v6, %v4243_v48 }
 0x615   :  { %v1062_v42 = vmul.f32 %v1055_v6, %v4269_v61  ;;  %v1061_v26 = vmul.f32 %v1055_v6, %v4267_v60  ;;  %v3853_v6 = vld [vmem:[#allocation6 + $0x8] ss:$0 sm:$0xff] }
 0x616   :  { %v1072_v22 = vrot.slane %v1058_v15, 2  ;;  %v1073_v28 = vrot.slane %v1060_v31, 2  ;;  %v1069_v27 = vrot.slane %v1057_v46, 2  ;;  %v1070_v38 = vrot.slane %v1059_v5, 2  ;;  %v4758_v15 = vpop.permute.xlu1 %1036  ;;  %v4771_v5 = vld [vmem:[#allocation2 + $0x10] sm:$0xff] }
 0x617   :  { %v1077_v25 = vrot.slane %v1062_v42, 2  ;;  %v1075_v30 = vrot.slane %v1061_v26, 2  ;;  %6562 = vst [vmem:[#allocation62_spill] sm:$0xff] %v4758_v15  ;;  %v3854_v26 = vld [vmem:[#allocation6 + $0x17] ss:$0 sm:$0xff] }
 0x618   :  { %v1074_v32 = vsel %vm214_vm12, %v1072_v22, %v1073_v28  ;;  %v1071_v3 = vsel %vm214_vm12, %v1069_v27, %v1070_v38 }
 0x619   :  { %1081 = vrot.lane.b32.xlu0 %v1074_v32, %s4092_s1  ;;  %1079 = vrot.lane.b32.xlu1 %v1071_v3, %s4092_s1  ;;  %v1078_v48 = vsel %vm214_vm12, %v1073_v28, %v1077_v25  ;;  %v1076_v2 = vsel %vm214_vm12, %v1070_v38, %v1075_v30 }
 0x61a   :  { %v4760_v31 = vpop.permute.xlu1 %1040 }
 0x61b   :  { %6563 = vst [vmem:[#allocation63_spill] sm:$0xff] %v4760_v31 }
 0x61d   :  { %1085 = vrot.lane.b32.xlu0 %v1078_v48, %s4092_s1  ;;  %1083 = vrot.lane.b32.xlu1 %v1076_v2, %s4092_s1 }
 0x621   :  { %1099 = vrot.lane.b32.xlu1 %v3853_v6, %s4093_s9  ;;  %v4786_v6 = vld [vmem:[#allocation2 + $0x18] sm:$0xff] }
 0x68b   :  { %v4762_v46 = vpop.permute.xlu1 %1079  ;;  %v4777_v22 = vpop.permute.xlu0 %1081 }
 0x68c   :  { %6564 = vst [vmem:[#allocation64_spill] sm:$0xff] %v4762_v46  ;;  %6566 = vst [vmem:[#allocation66_spill] sm:$0xff] %v4777_v22 }
 0x68f   :  { %v4764_v32 = vpop.permute.xlu1 %1083  ;;  %v4779_v28 = vpop.permute.xlu0 %1085 }
 0x690   :  { %6565 = vst [vmem:[#allocation65_spill] sm:$0xff] %v4764_v32  ;;  %6567 = vst [vmem:[#allocation67_spill] sm:$0xff] %v4779_v28 }
 0x693   :  { %v1100_v3 = vpop.permute.xlu1 %1099 }
 0x694   :  { %v1103_v25 = vmul.f32 %v4739_v9, %v1100_v3  ;;  %v1102_v30 = vmul.f32 %v4743_v8, %v1100_v3  ;;  %v1105_v2 = vmul.f32 %v1100_v3, %v4245_v49  ;;  %v1104_v42 = vmul.f32 %v4771_v5, %v1100_v3 }
 0x696   :  { %1112 = vrot.lane.b32.xlu1 %v1103_v25, %s4094_s10  ;;  %1110 = vrot.lane.b32.xlu0 %v1102_v30, %s4094_s10 }
 0x69a   :  { %1116 = vrot.lane.b32.xlu1 %v1105_v2, %s4094_s10  ;;  %1114 = vrot.lane.b32.xlu0 %v1104_v42, %s4094_s10 }
 0x69e   :  { %1131 = vrot.lane.b32.xlu0 %v3854_v26, %s4093_s9 }
 0x708   :  { %v4781_v27 = vpop.permute.xlu0 %1110 }
 0x709   :  { %6568 = vst [vmem:[#allocation68_spill] sm:$0xff] %v4781_v27 }
 0x70c   :  { %v4783_v38 = vpop.permute.xlu0 %1114 }
 0x70d   :  { %6569 = vst [vmem:[#allocation69_spill] sm:$0xff] %v4783_v38 }
 0x710   :  { %v1132_v49 = vpop.permute.xlu0 %1131 }
 0x711   :  { %v1135_v48 = vmul.f32 %v4739_v9, %v1132_v49  ;;  %v1137_v3 = vmul.f32 %v4786_v6, %v1132_v49  ;;  %v1134_v25 = vmul.f32 %v4743_v8, %v1132_v49  ;;  %v1136_v30 = vmul.f32 %v4771_v5, %v1132_v49 }
 0x712   :  { %v1139_v2 = vmul.f32 %v1132_v49, %v4269_v61  ;;  %v1138_v42 = vmul.f32 %v1132_v49, %v4267_v60  ;;  %v3855_v60 = vld [vmem:[#allocation6 + $0x26] ss:$0 sm:$0xff]  ;;  %v4802_v49 = vpop.permute.xlu1 %1112 }
 0x713   :  { %v1149_v26 = vrot.slane %v1135_v48, 1  ;;  %v1150_v32 = vrot.slane %v1137_v3, 1  ;;  %v1146_v28 = vrot.slane %v1134_v25, 1  ;;  %v1147_v27 = vrot.slane %v1136_v30, 1  ;;  %6570 = vst [vmem:[#allocation70_spill] sm:$0xff] %v4802_v49 }
 0x714   :  { %v1154_v46 = vrot.slane %v1139_v2, 1  ;;  %v1152_v22 = vrot.slane %v1138_v42, 1  ;;  %v4817_v25 = vld [vmem:[#allocation2 + $0x20] sm:$0x3] }
 0x715   :  { %v1151_v38 = vsel %vm168_vm11, %v1149_v26, %v1150_v32  ;;  %v1148_v31 = vsel %vm168_vm11, %v1146_v28, %v1147_v27 }
 0x716   :  { %1158 = vrot.lane.b32.xlu0 %v1151_v38, %s4094_s10  ;;  %1156 = vrot.lane.b32.xlu1 %v1148_v31, %s4094_s10  ;;  %v1155_v15 = vsel %vm168_vm11, %v1150_v32, %v1154_v46  ;;  %v1153_v61 = vsel %vm168_vm11, %v1147_v27, %v1152_v22  ;;  %v4804_v28 = vpop.permute.xlu1 %1116  ;;  %v4814_v27 = vld [vmem:[#allocation2 + $0x28] sm:$0x3] }
 0x717   :  { %6571 = vst [vmem:[#allocation71_spill] sm:$0xff] %v4804_v28 }
 0x71a   :  { %1162 = vrot.lane.b32.xlu0 %v1155_v15, %s4094_s10  ;;  %1160 = vrot.lane.b32.xlu1 %v1153_v61, %s4094_s10 }
 0x71e   :  { %1176 = vrot.lane.b32.xlu1 %v3855_v60, %s4093_s9 }
 0x788   :  { %v4806_v48 = vpop.permute.xlu1 %1156 }
 0x789   :  { %6572 = vst [vmem:[#allocation72_spill] sm:$0xff] %v4806_v48 }
 0x78c   :  { %v4808_v38 = vpop.permute.xlu1 %1160 }
 0x78d   :  { %6573 = vst [vmem:[#allocation73_spill] sm:$0xff] %v4808_v38 }
 0x790   :  { %v1177_v31 = vpop.permute.xlu1 %1176 }
 0x791   :  { %v1180_v46 = vmul.f32 %v4739_v9, %v1177_v31  ;;  %v1182_v32 = vmul.f32 %v4786_v6, %v1177_v31  ;;  %v1179_v15 = vmul.f32 %v4743_v8, %v1177_v31  ;;  %v1181_v22 = vmul.f32 %v4771_v5, %v1177_v31 }
 0x792   :  { %v1184_v3 = vmul.f32 %v4814_v27, %v1177_v31  ;;  %v1183_v30 = vmul.f32 %v4817_v25, %v1177_v31  ;;  %v3856_v31 = vld [vmem:[#allocation6 + $0x9] ss:$0 sm:$0xff] }
 0x793   :  { %v1194_v2 = vrot.slane %v1180_v46, 2  ;;  %v1195_v42 = vrot.slane %v1182_v32, 2  ;;  %v1191_v26 = vrot.slane %v1179_v15, 2  ;;  %v1192_v61 = vrot.slane %v1181_v22, 2  ;;  %v4829_v46 = vpop.permute.xlu0 %1158 }
 0x794   :  { %v1199_v28 = vrot.slane %v1184_v3, 2  ;;  %v1197_v48 = vrot.slane %v1183_v30, 2  ;;  %6574 = vst [vmem:[#allocation74_spill] sm:$0xff] %v4829_v46  ;;  %v3857_v3 = vld [vmem:[#allocation6 + $0x18] ss:$0 sm:$0xff] }
 0x795   :  { %v1196_v60 = vsel %vm214_vm12, %v1194_v2, %v1195_v42  ;;  %v1193_v38 = vsel %vm214_vm12, %v1191_v26, %v1192_v61 }
 0x796   :  { %1203 = vrot.lane.b32.xlu1 %v1196_v60, %s4094_s10  ;;  %1201 = vrot.lane.b32.xlu0 %v1193_v38, %s4094_s10  ;;  %v1200_v49 = vsel %vm214_vm12, %v1195_v42, %v1199_v28  ;;  %v1198_v37 = vsel %vm214_vm12, %v1192_v61, %v1197_v48 }
 0x797   :  { %v4831_v32 = vpop.permute.xlu0 %1162 }
 0x798   :  { %6575 = vst [vmem:[#allocation75_spill] sm:$0xff] %v4831_v32 }
 0x79a   :  { %1207 = vrot.lane.b32.xlu1 %v1200_v49, %s4094_s10  ;;  %1205 = vrot.lane.b32.xlu0 %v1198_v37, %s4094_s10 }
 0x79e   :  { %1221 = vrot.lane.b32.xlu0 %v3856_v31, %s4095_s11 }
 0x808   :  { %v4833_v15 = vpop.permute.xlu0 %1201  ;;  %v4846_v30 = vpop.permute.xlu1 %1203 }
 0x809   :  { %6576 = vst [vmem:[#allocation76_spill] sm:$0xff] %v4833_v15  ;;  %6578 = vst [vmem:[#allocation78_spill] sm:$0xff] %v4846_v30 }
 0x80c   :  { %v4835_v22 = vpop.permute.xlu0 %1205  ;;  %v4848_v2 = vpop.permute.xlu1 %1207 }
 0x80d   :  { %6577 = vst [vmem:[#allocation77_spill] sm:$0xff] %v4835_v22  ;;  %6579 = vst [vmem:[#allocation79_spill] sm:$0xff] %v4848_v2 }
 0x810   :  { %v1222_v38 = vpop.permute.xlu0 %1221 }
 0x811   :  { %v1225_v28 = vmul.f32 %v4739_v9, %v1222_v38  ;;  %v1224_v48 = vmul.f32 %v4743_v8, %v1222_v38  ;;  %v1227_v37 = vmul.f32 %v4786_v6, %v1222_v38  ;;  %v1226_v49 = vmul.f32 %v4771_v5, %v1222_v38 }
 0x813   :  { %1234 = vrot.lane.b32.xlu0 %v1225_v28, %s4096_s12  ;;  %1232 = vrot.lane.b32.xlu1 %v1224_v48, %s4096_s12 }
 0x817   :  { %1238 = vrot.lane.b32.xlu0 %v1227_v37, %s4096_s12  ;;  %1236 = vrot.lane.b32.xlu1 %v1226_v49, %s4096_s12 }
 0x81b   :  { %1253 = vrot.lane.b32.xlu1 %v3857_v3, %s4095_s11 }
 0x885   :  { %v4850_v42 = vpop.permute.xlu1 %1232 }
 0x886   :  { %6580 = vst [vmem:[#allocation80_spill] sm:$0xff] %v4850_v42 }
 0x889   :  { %v4852_v26 = vpop.permute.xlu1 %1236 }
 0x88a   :  { %6581 = vst [vmem:[#allocation81_spill] sm:$0xff] %v4852_v26 }
 0x88d   :  { %v1254_v61 = vpop.permute.xlu1 %1253 }
 0x88e   :  { %v1257_v60 = vmul.f32 %v4739_v9, %v1254_v61  ;;  %v1259_v31 = vmul.f32 %v4786_v6, %v1254_v61  ;;  %v1256_v38 = vmul.f32 %v4743_v8, %v1254_v61  ;;  %v1258_v28 = vmul.f32 %v4771_v5, %v1254_v61 }
 0x88f   :  { %v1261_v48 = vmul.f32 %v4814_v27, %v1254_v61  ;;  %v1260_v37 = vmul.f32 %v4817_v25, %v1254_v61  ;;  %v3858_v61 = vld [vmem:[#allocation6 + $0x27] ss:$0 sm:$0xff] }
 0x890   :  { %v1271_v49 = vrot.slane %v1257_v60, 1  ;;  %v1272_v3 = vrot.slane %v1259_v31, 1  ;;  %v1268_v22 = vrot.slane %v1256_v38, 1  ;;  %v1269_v2 = vrot.slane %v1258_v28, 1  ;;  %v4869_v60 = vpop.permute.xlu0 %1234 }
 0x891   :  { %v1276_v32 = vrot.slane %v1261_v48, 1  ;;  %v1274_v15 = vrot.slane %v1260_v37, 1  ;;  %6582 = vst [vmem:[#allocation82_spill] sm:$0xff] %v4869_v60 }
 0x892   :  { %v1273_v42 = vsel %vm168_vm11, %v1271_v49, %v1272_v3  ;;  %v1270_v26 = vsel %vm168_vm11, %v1268_v22, %v1269_v2 }
 0x893   :  { %1280 = vrot.lane.b32.xlu1 %v1273_v42, %s4096_s12  ;;  %1278 = vrot.lane.b32.xlu0 %v1270_v26, %s4096_s12  ;;  %v1277_v30 = vsel %vm168_vm11, %v1272_v3, %v1276_v32  ;;  %v1275_v46 = vsel %vm168_vm11, %v1269_v2, %v1274_v15 }
 0x894   :  { %v4871_v22 = vpop.permute.xlu0 %1238 }
 0x895   :  { %6583 = vst [vmem:[#allocation83_spill] sm:$0xff] %v4871_v22 }
 0x897   :  { %1284 = vrot.lane.b32.xlu1 %v1277_v30, %s4096_s12  ;;  %1282 = vrot.lane.b32.xlu0 %v1275_v46, %s4096_s12 }
 0x89b   :  { %1298 = vrot.lane.b32.xlu0 %v3858_v61, %s4095_s11 }
 0x905   :  { %v4873_v31 = vpop.permute.xlu0 %1278 }
 0x906   :  { %6584 = vst [vmem:[#allocation84_spill] sm:$0xff] %v4873_v31 }
 0x909   :  { %v4875_v42 = vpop.permute.xlu0 %1282 }
 0x90a   :  { %6585 = vst [vmem:[#allocation85_spill] sm:$0xff] %v4875_v42 }
 0x90d   :  { %v1299_v26 = vpop.permute.xlu0 %1298 }
 0x90e   :  { %v1302_v32 = vmul.f32 %v4739_v9, %v1299_v26  ;;  %v1304_v15 = vmul.f32 %v4786_v6, %v1299_v26  ;;  %v1301_v30 = vmul.f32 %v4743_v8, %v1299_v26  ;;  %v1303_v46 = vmul.f32 %v4771_v5, %v1299_v26 }
 0x90f   :  { %v1306_v2 = vmul.f32 %v4814_v27, %v1299_v26  ;;  %v1305_v38 = vmul.f32 %v4817_v25, %v1299_v26  ;;  %v3859_v26 = vld [vmem:[#allocation6 + $0xa] ss:$0 sm:$0xff] }
 0x910   :  { %v1316_v28 = vrot.slane %v1302_v32, 2  ;;  %v1317_v48 = vrot.slane %v1304_v15, 2  ;;  %v1313_v37 = vrot.slane %v1301_v30, 2  ;;  %v1314_v49 = vrot.slane %v1303_v46, 2  ;;  %v4892_v32 = vpop.permute.xlu1 %1280 }
 0x911   :  { %v1321_v42 = vrot.slane %v1306_v2, 2  ;;  %v1319_v22 = vrot.slane %v1305_v38, 2  ;;  %6586 = vst [vmem:[#allocation86_spill] sm:$0xff] %v4892_v32  ;;  %v3860_v38 = vld [vmem:[#allocation6 + $0x19] ss:$0 sm:$0xff] }
 0x912   :  { %v1318_v3 = vsel %vm214_vm12, %v1316_v28, %v1317_v48  ;;  %v1315_v61 = vsel %vm214_vm12, %v1313_v37, %v1314_v49 }
 0x913   :  { %1325 = vrot.lane.b32.xlu0 %v1318_v3, %s4096_s12  ;;  %1323 = vrot.lane.b32.xlu1 %v1315_v61, %s4096_s12  ;;  %v1322_v31 = vsel %vm214_vm12, %v1317_v48, %v1321_v42  ;;  %v1320_v60 = vsel %vm214_vm12, %v1314_v49, %v1319_v22 }
 0x914   :  { %v4894_v15 = vpop.permute.xlu1 %1284 }
 0x915   :  { %6587 = vst [vmem:[#allocation87_spill] sm:$0xff] %v4894_v15 }
 0x917   :  { %1329 = vrot.lane.b32.xlu0 %v1322_v31, %s4096_s12  ;;  %1327 = vrot.lane.b32.xlu1 %v1320_v60, %s4096_s12 }
 0x91b   :  { %1343 = vrot.lane.b32.xlu1 %v3859_v26, %s4097_s13 }
 0x985   :  { %v4896_v30 = vpop.permute.xlu1 %1323  ;;  %v4909_v28 = vpop.permute.xlu0 %1325 }
 0x986   :  { %6588 = vst [vmem:[#allocation88_spill] sm:$0xff] %v4896_v30  ;;  %6590 = vst [vmem:[#allocation90_spill] sm:$0xff] %v4909_v28 }
 0x989   :  { %v4898_v46 = vpop.permute.xlu1 %1327  ;;  %v4911_v48 = vpop.permute.xlu0 %1329 }
 0x98a   :  { %6589 = vst [vmem:[#allocation89_spill] sm:$0xff] %v4898_v46  ;;  %6591 = vst [vmem:[#allocation91_spill] sm:$0xff] %v4911_v48 }
 0x98d   :  { %v1344_v2 = vpop.permute.xlu1 %1343 }
 0x98e   :  { %v1347_v42 = vmul.f32 %v4739_v9, %v1344_v2  ;;  %v1346_v22 = vmul.f32 %v4743_v8, %v1344_v2  ;;  %v1349_v60 = vmul.f32 %v4786_v6, %v1344_v2  ;;  %v1348_v31 = vmul.f32 %v4771_v5, %v1344_v2 }
 0x990   :  { %1356 = vrot.lane.b32.xlu1 %v1347_v42, %s4098_s14  ;;  %1354 = vrot.lane.b32.xlu0 %v1346_v22, %s4098_s14 }
 0x994   :  { %1360 = vrot.lane.b32.xlu1 %v1349_v60, %s4098_s14  ;;  %1358 = vrot.lane.b32.xlu0 %v1348_v31, %s4098_s14 }
 0x998   :  { %1375 = vrot.lane.b32.xlu0 %v3860_v38, %s4097_s13 }
 0xa02   :  { %v4913_v37 = vpop.permute.xlu0 %1354 }
 0xa03   :  { %6592 = vst [vmem:[#allocation92_spill] sm:$0xff] %v4913_v37 }
 0xa06   :  { %v4915_v49 = vpop.permute.xlu0 %1358 }
 0xa07   :  { %6593 = vst [vmem:[#allocation93_spill] sm:$0xff] %v4915_v49 }
 0xa0a   :  { %v1376_v3 = vpop.permute.xlu0 %1375 }
 0xa0b   :  { %v1379_v61 = vmul.f32 %v4739_v9, %v1376_v3  ;;  %v1381_v26 = vmul.f32 %v4786_v6, %v1376_v3  ;;  %v1378_v2 = vmul.f32 %v4743_v8, %v1376_v3  ;;  %v1380_v42 = vmul.f32 %v4771_v5, %v1376_v3 }
 0xa0c   :  { %v1383_v22 = vmul.f32 %v4814_v27, %v1376_v3  ;;  %v1382_v60 = vmul.f32 %v4817_v25, %v1376_v3  ;;  %v3861_v3 = vld [vmem:[#allocation6 + $0x28] ss:$0 sm:$0xff] }
 0xa0d   :  { %v1393_v31 = vrot.slane %v1379_v61, 1  ;;  %v1394_v38 = vrot.slane %v1381_v26, 1  ;;  %v1390_v46 = vrot.slane %v1378_v2, 1  ;;  %v1391_v48 = vrot.slane %v1380_v42, 1  ;;  %v4932_v61 = vpop.permute.xlu1 %1356 }
 0xa0e   :  { %v1398_v15 = vrot.slane %v1383_v22, 1  ;;  %v1396_v30 = vrot.slane %v1382_v60, 1  ;;  %6594 = vst [vmem:[#allocation94_spill] sm:$0xff] %v4932_v61 }
 0xa0f   :  { %v1395_v37 = vsel %vm168_vm11, %v1393_v31, %v1394_v38  ;;  %v1392_v49 = vsel %vm168_vm11, %v1390_v46, %v1391_v48 }
 0xa10   :  { %1402 = vrot.lane.b32.xlu0 %v1395_v37, %s4098_s14  ;;  %1400 = vrot.lane.b32.xlu1 %v1392_v49, %s4098_s14  ;;  %v1399_v28 = vsel %vm168_vm11, %v1394_v38, %v1398_v15  ;;  %v1397_v32 = vsel %vm168_vm11, %v1391_v48, %v1396_v30 }
 0xa11   :  { %v4934_v46 = vpop.permute.xlu1 %1360 }
 0xa12   :  { %6595 = vst [vmem:[#allocation95_spill] sm:$0xff] %v4934_v46 }
 0xa14   :  { %1406 = vrot.lane.b32.xlu0 %v1399_v28, %s4098_s14  ;;  %1404 = vrot.lane.b32.xlu1 %v1397_v32, %s4098_s14 }
 0xa18   :  { %1420 = vrot.lane.b32.xlu1 %v3861_v3, %s4097_s13 }
 0xa82   :  { %v4936_v26 = vpop.permute.xlu1 %1400 }
 0xa83   :  { %6596 = vst [vmem:[#allocation96_spill] sm:$0xff] %v4936_v26 }
 0xa86   :  { %v4938_v37 = vpop.permute.xlu1 %1404 }
 0xa87   :  { %6597 = vst [vmem:[#allocation97_spill] sm:$0xff] %v4938_v37 }
 0xa8a   :  { %v1421_v49 = vpop.permute.xlu1 %1420 }
 0xa8b   :  { %v1424_v15 = vmul.f32 %v4739_v9, %v1421_v49  ;;  %v1426_v30 = vmul.f32 %v4786_v6, %v1421_v49  ;;  %v1423_v28 = vmul.f32 %v4743_v8, %v1421_v49  ;;  %v1425_v32 = vmul.f32 %v4771_v5, %v1421_v49 }
 0xa8c   :  { %v1428_v48 = vmul.f32 %v4814_v27, %v1421_v49  ;;  %v1427_v2 = vmul.f32 %v4817_v25, %v1421_v49  ;;  %v3862_v49 = vld [vmem:[#allocation6 + $0xb] ss:$0 sm:$0xff] }
 0xa8d   :  { %v1438_v42 = vrot.slane %v1424_v15, 2  ;;  %v1439_v22 = vrot.slane %v1426_v30, 2  ;;  %v1435_v60 = vrot.slane %v1423_v28, 2  ;;  %v1436_v31 = vrot.slane %v1425_v32, 2  ;;  %v4955_v15 = vpop.permute.xlu0 %1402 }
 0xa8e   :  { %v1443_v37 = vrot.slane %v1428_v48, 2  ;;  %v1441_v46 = vrot.slane %v1427_v2, 2  ;;  %6598 = vst [vmem:[#allocation98_spill] sm:$0xff] %v4955_v15  ;;  %v3863_v2 = vld [vmem:[#allocation6 + $0x1a] ss:$0 sm:$0xff] }
 0xa8f   :  { %v1440_v38 = vsel %vm214_vm12, %v1438_v42, %v1439_v22  ;;  %v1437_v3 = vsel %vm214_vm12, %v1435_v60, %v1436_v31 }
 0xa90   :  { %1447 = vrot.lane.b32.xlu1 %v1440_v38, %s4098_s14  ;;  %1445 = vrot.lane.b32.xlu0 %v1437_v3, %s4098_s14  ;;  %v1444_v26 = vsel %vm214_vm12, %v1439_v22, %v1443_v37  ;;  %v1442_v61 = vsel %vm214_vm12, %v1436_v31, %v1441_v46 }
 0xa91   :  { %v4957_v30 = vpop.permute.xlu0 %1406 }
 0xa92   :  { %6599 = vst [vmem:[#allocation99_spill] sm:$0xff] %v4957_v30 }
 0xa94   :  { %1451 = vrot.lane.b32.xlu1 %v1444_v26, %s4098_s14  ;;  %1449 = vrot.lane.b32.xlu0 %v1442_v61, %s4098_s14 }
 0xa98   :  { %1465 = vrot.lane.b32.xlu0 %v3862_v49, %s4099_s16 }
 0xb02   :  { %v4959_v28 = vpop.permute.xlu0 %1445  ;;  %v4972_v42 = vpop.permute.xlu1 %1447 }
 0xb03   :  { %6600 = vst [vmem:[#allocation100_spill] sm:$0xff] %v4959_v28  ;;  %6602 = vst [vmem:[#allocation102_spill] sm:$0xff] %v4972_v42 }
 0xb06   :  { %v4961_v32 = vpop.permute.xlu0 %1449  ;;  %v4974_v22 = vpop.permute.xlu1 %1451 }
 0xb07   :  { %6601 = vst [vmem:[#allocation101_spill] sm:$0xff] %v4961_v32  ;;  %6603 = vst [vmem:[#allocation103_spill] sm:$0xff] %v4974_v22 }
 0xb0a   :  { %v1466_v48 = vpop.permute.xlu0 %1465 }
 0xb0b   :  { %v1469_v37 = vmul.f32 %v4739_v9, %v1466_v48  ;;  %v1468_v46 = vmul.f32 %v4743_v8, %v1466_v48  ;;  %v1471_v61 = vmul.f32 %v4786_v6, %v1466_v48  ;;  %v1470_v26 = vmul.f32 %v4771_v5, %v1466_v48 }
 0xb0d   :  { %1478 = vrot.lane.b32.xlu0 %v1469_v37, %s4100_s17  ;;  %1476 = vrot.lane.b32.xlu1 %v1468_v46, %s4100_s17 }
 0xb11   :  { %1482 = vrot.lane.b32.xlu0 %v1471_v61, %s4100_s17  ;;  %1480 = vrot.lane.b32.xlu1 %v1470_v26, %s4100_s17 }
 0xb15   :  { %1497 = vrot.lane.b32.xlu1 %v3863_v2, %s4099_s16 }
 0xb7f   :  { %v4976_v60 = vpop.permute.xlu1 %1476 }
 0xb80   :  { %6604 = vst [vmem:[#allocation104_spill] sm:$0xff] %v4976_v60 }
 0xb83   :  { %v4978_v31 = vpop.permute.xlu1 %1480 }
 0xb84   :  { %6605 = vst [vmem:[#allocation105_spill] sm:$0xff] %v4978_v31 }
 0xb87   :  { %v1498_v38 = vpop.permute.xlu1 %1497 }
 0xb88   :  { %v1501_v3 = vmul.f32 %v4739_v9, %v1498_v38  ;;  %v1503_v49 = vmul.f32 %v4786_v6, %v1498_v38  ;;  %v1500_v48 = vmul.f32 %v4743_v8, %v1498_v38  ;;  %v1502_v37 = vmul.f32 %v4771_v5, %v1498_v38 }
 0xb89   :  { %v1505_v46 = vmul.f32 %v4814_v27, %v1498_v38  ;;  %v1504_v61 = vmul.f32 %v4817_v25, %v1498_v38  ;;  %v3864_v38 = vld [vmem:[#allocation6 + $0x29] ss:$0 sm:$0xff] }
 0xb8a   :  { %v1515_v26 = vrot.slane %v1501_v3, 1  ;;  %v1516_v2 = vrot.slane %v1503_v49, 1  ;;  %v1512_v32 = vrot.slane %v1500_v48, 1  ;;  %v1513_v22 = vrot.slane %v1502_v37, 1  ;;  %v4995_v3 = vpop.permute.xlu0 %1478 }
 0xb8b   :  { %v1520_v30 = vrot.slane %v1505_v46, 1  ;;  %v1518_v28 = vrot.slane %v1504_v61, 1  ;;  %6606 = vst [vmem:[#allocation106_spill] sm:$0xff] %v4995_v3 }
 0xb8c   :  { %v1517_v60 = vsel %vm168_vm11, %v1515_v26, %v1516_v2  ;;  %v1514_v31 = vsel %vm168_vm11, %v1512_v32, %v1513_v22 }
 0xb8d   :  { %1524 = vrot.lane.b32.xlu1 %v1517_v60, %s4100_s17  ;;  %1522 = vrot.lane.b32.xlu0 %v1514_v31, %s4100_s17  ;;  %v1521_v42 = vsel %vm168_vm11, %v1516_v2, %v1520_v30  ;;  %v1519_v15 = vsel %vm168_vm11, %v1513_v22, %v1518_v28 }
 0xb8e   :  { %v4997_v32 = vpop.permute.xlu0 %1482 }
 0xb8f   :  { %6607 = vst [vmem:[#allocation107_spill] sm:$0xff] %v4997_v32 }
 0xb91   :  { %1528 = vrot.lane.b32.xlu1 %v1521_v42, %s4100_s17  ;;  %1526 = vrot.lane.b32.xlu0 %v1519_v15, %s4100_s17 }
 0xb95   :  { %1542 = vrot.lane.b32.xlu0 %v3864_v38, %s4099_s16 }
 0xbff   :  { %v4999_v49 = vpop.permute.xlu0 %1522 }
 0xc00   :  { %6608 = vst [vmem:[#allocation108_spill] sm:$0xff] %v4999_v49 }
 0xc03   :  { %v5001_v60 = vpop.permute.xlu0 %1526 }
 0xc04   :  { %6609 = vst [vmem:[#allocation109_spill] sm:$0xff] %v5001_v60 }
 0xc07   :  { %v1543_v31 = vpop.permute.xlu0 %1542 }
 0xc08   :  { %v1546_v30 = vmul.f32 %v4739_v9, %v1543_v31  ;;  %v1548_v28 = vmul.f32 %v4786_v6, %v1543_v31  ;;  %v1545_v42 = vmul.f32 %v4743_v8, %v1543_v31  ;;  %v1547_v15 = vmul.f32 %v4771_v5, %v1543_v31 }
 0xc09   :  { %v1550_v22 = vmul.f32 %v4814_v27, %v1543_v31  ;;  %v1549_v48 = vmul.f32 %v4817_v25, %v1543_v31  ;;  %v3865_v31 = vld [vmem:[#allocation6 + $0xc] ss:$0 sm:$0xff] }
 0xc0a   :  { %v1560_v37 = vrot.slane %v1546_v30, 2  ;;  %v1561_v46 = vrot.slane %v1548_v28, 2  ;;  %v1557_v61 = vrot.slane %v1545_v42, 2  ;;  %v1558_v26 = vrot.slane %v1547_v15, 2  ;;  %v5018_v30 = vpop.permute.xlu1 %1524 }
 0xc0b   :  { %v1565_v60 = vrot.slane %v1550_v22, 2  ;;  %v1563_v32 = vrot.slane %v1549_v48, 2  ;;  %6610 = vst [vmem:[#allocation110_spill] sm:$0xff] %v5018_v30  ;;  %v3866_v48 = vld [vmem:[#allocation6 + $0x1b] ss:$0 sm:$0xff] }
 0xc0c   :  { %v1562_v2 = vsel %vm214_vm12, %v1560_v37, %v1561_v46  ;;  %v1559_v38 = vsel %vm214_vm12, %v1557_v61, %v1558_v26 }
 0xc0d   :  { %1569 = vrot.lane.b32.xlu0 %v1562_v2, %s4100_s17  ;;  %1567 = vrot.lane.b32.xlu1 %v1559_v38, %s4100_s17  ;;  %v1566_v49 = vsel %vm214_vm12, %v1561_v46, %v1565_v60  ;;  %v1564_v3 = vsel %vm214_vm12, %v1558_v26, %v1563_v32 }
 0xc0e   :  { %v5020_v28 = vpop.permute.xlu1 %1528 }
 0xc0f   :  { %6611 = vst [vmem:[#allocation111_spill] sm:$0xff] %v5020_v28 }
 0xc11   :  { %1573 = vrot.lane.b32.xlu0 %v1566_v49, %s4100_s17  ;;  %1571 = vrot.lane.b32.xlu1 %v1564_v3, %s4100_s17 }
 0xc15   :  { %1587 = vrot.lane.b32.xlu1 %v3865_v31, %s4101_s18 }
 0xc7f   :  { %v5022_v42 = vpop.permute.xlu1 %1567  ;;  %v5035_v37 = vpop.permute.xlu0 %1569 }
 0xc80   :  { %6612 = vst [vmem:[#allocation112_spill] sm:$0xff] %v5022_v42  ;;  %6614 = vst [vmem:[#allocation114_spill] sm:$0xff] %v5035_v37 }
 0xc83   :  { %v5024_v15 = vpop.permute.xlu1 %1571  ;;  %v5037_v46 = vpop.permute.xlu0 %1573 }
 0xc84   :  { %6613 = vst [vmem:[#allocation113_spill] sm:$0xff] %v5024_v15  ;;  %6615 = vst [vmem:[#allocation115_spill] sm:$0xff] %v5037_v46 }
 0xc87   :  { %v1588_v22 = vpop.permute.xlu1 %1587 }
 0xc88   :  { %v1591_v60 = vmul.f32 %v4739_v9, %v1588_v22  ;;  %v1590_v32 = vmul.f32 %v4743_v8, %v1588_v22  ;;  %v1593_v3 = vmul.f32 %v4786_v6, %v1588_v22  ;;  %v1592_v49 = vmul.f32 %v4771_v5, %v1588_v22 }
 0xc8a   :  { %1600 = vrot.lane.b32.xlu1 %v1591_v60, %s4102_s19  ;;  %1598 = vrot.lane.b32.xlu0 %v1590_v32, %s4102_s19 }
 0xc8e   :  { %1604 = vrot.lane.b32.xlu1 %v1593_v3, %s4102_s19  ;;  %1602 = vrot.lane.b32.xlu0 %v1592_v49, %s4102_s19 }
 0xc92   :  { %1619 = vrot.lane.b32.xlu0 %v3866_v48, %s4101_s18 }
 0xcfc   :  { %v5039_v61 = vpop.permute.xlu0 %1598 }
 0xcfd   :  { %6616 = vst [vmem:[#allocation116_spill] sm:$0xff] %v5039_v61 }
 0xd00   :  { %v5041_v26 = vpop.permute.xlu0 %1602 }
 0xd01   :  { %6617 = vst [vmem:[#allocation117_spill] sm:$0xff] %v5041_v26 }
 0xd04   :  { %v1620_v2 = vpop.permute.xlu0 %1619 }
 0xd05   :  { %v1623_v38 = vmul.f32 %v4739_v9, %v1620_v2  ;;  %v1625_v31 = vmul.f32 %v4786_v6, %v1620_v2  ;;  %v1622_v22 = vmul.f32 %v4743_v8, %v1620_v2  ;;  %v1624_v60 = vmul.f32 %v4771_v5, %v1620_v2 }
 0xd06   :  { %v1627_v32 = vmul.f32 %v4814_v27, %v1620_v2  ;;  %v1626_v3 = vmul.f32 %v4817_v25, %v1620_v2  ;;  %v3867_v2 = vld [vmem:[#allocation6 + $0x2a] ss:$0 sm:$0xff] }
 0xd07   :  { %v1637_v49 = vrot.slane %v1623_v38, 1  ;;  %v1638_v48 = vrot.slane %v1625_v31, 1  ;;  %v1634_v15 = vrot.slane %v1622_v22, 1  ;;  %v1635_v46 = vrot.slane %v1624_v60, 1  ;;  %v5058_v38 = vpop.permute.xlu1 %1600 }
 0xd08   :  { %v1642_v28 = vrot.slane %v1627_v32, 1  ;;  %v1640_v42 = vrot.slane %v1626_v3, 1  ;;  %6618 = vst [vmem:[#allocation118_spill] sm:$0xff] %v5058_v38 }
 0xd09   :  { %v1639_v61 = vsel %vm168_vm11, %v1637_v49, %v1638_v48  ;;  %v1636_v26 = vsel %vm168_vm11, %v1634_v15, %v1635_v46 }
 0xd0a   :  { %1646 = vrot.lane.b32.xlu0 %v1639_v61, %s4102_s19  ;;  %1644 = vrot.lane.b32.xlu1 %v1636_v26, %s4102_s19  ;;  %v1643_v37 = vsel %vm168_vm11, %v1638_v48, %v1642_v28  ;;  %v1641_v30 = vsel %vm168_vm11, %v1635_v46, %v1640_v42 }
 0xd0b   :  { %v5060_v15 = vpop.permute.xlu1 %1604 }
 0xd0c   :  { %6619 = vst [vmem:[#allocation119_spill] sm:$0xff] %v5060_v15 }
 0xd0e   :  { %1650 = vrot.lane.b32.xlu0 %v1643_v37, %s4102_s19  ;;  %1648 = vrot.lane.b32.xlu1 %v1641_v30, %s4102_s19 }
 0xd12   :  { %1664 = vrot.lane.b32.xlu1 %v3867_v2, %s4101_s18 }
 0xd7c   :  { %v5062_v31 = vpop.permute.xlu1 %1644 }
 0xd7d   :  { %6620 = vst [vmem:[#allocation120_spill] sm:$0xff] %v5062_v31 }
 0xd80   :  { %v5064_v61 = vpop.permute.xlu1 %1648 }
 0xd81   :  { %6621 = vst [vmem:[#allocation121_spill] sm:$0xff] %v5064_v61 }
 0xd84   :  { %v1665_v26 = vpop.permute.xlu1 %1664 }
 0xd85   :  { %v1668_v28 = vmul.f32 %v4739_v9, %v1665_v26  ;;  %v1670_v42 = vmul.f32 %v4786_v6, %v1665_v26  ;;  %v1667_v37 = vmul.f32 %v4743_v8, %v1665_v26  ;;  %v1669_v30 = vmul.f32 %v4771_v5, %v1665_v26 }
 0xd86   :  { %v1672_v46 = vmul.f32 %v4814_v27, %v1665_v26  ;;  %v1671_v22 = vmul.f32 %v4817_v25, %v1665_v26  ;;  %v3868_v26 = vld [vmem:[#allocation6 + $0xd] ss:$0 sm:$0xff] }
 0xd87   :  { %v1682_v60 = vrot.slane %v1668_v28, 2  ;;  %v1683_v32 = vrot.slane %v1670_v42, 2  ;;  %v1679_v3 = vrot.slane %v1667_v37, 2  ;;  %v1680_v49 = vrot.slane %v1669_v30, 2  ;;  %v5081_v28 = vpop.permute.xlu0 %1646 }
 0xd88   :  { %v1687_v61 = vrot.slane %v1672_v46, 2  ;;  %v1685_v15 = vrot.slane %v1671_v22, 2  ;;  %6622 = vst [vmem:[#allocation122_spill] sm:$0xff] %v5081_v28  ;;  %v3869_v22 = vld [vmem:[#allocation6 + $0x1c] ss:$0 sm:$0xff] }
 0xd89   :  { %v1684_v48 = vsel %vm214_vm12, %v1682_v60, %v1683_v32  ;;  %v1681_v2 = vsel %vm214_vm12, %v1679_v3, %v1680_v49 }
 0xd8a   :  { %1691 = vrot.lane.b32.xlu1 %v1684_v48, %s4102_s19  ;;  %1689 = vrot.lane.b32.xlu0 %v1681_v2, %s4102_s19  ;;  %v1688_v31 = vsel %vm214_vm12, %v1683_v32, %v1687_v61  ;;  %v1686_v38 = vsel %vm214_vm12, %v1680_v49, %v1685_v15 }
 0xd8b   :  { %v5083_v42 = vpop.permute.xlu0 %1650 }
 0xd8c   :  { %6623 = vst [vmem:[#allocation123_spill] sm:$0xff] %v5083_v42 }
 0xd8e   :  { %1695 = vrot.lane.b32.xlu1 %v1688_v31, %s4102_s19  ;;  %1693 = vrot.lane.b32.xlu0 %v1686_v38, %s4102_s19 }
 0xd92   :  { %1709 = vrot.lane.b32.xlu0 %v3868_v26, %s4103_s20 }
 0xdfc   :  { %v5085_v37 = vpop.permute.xlu0 %1689  ;;  %v5098_v60 = vpop.permute.xlu1 %1691 }
 0xdfd   :  { %6624 = vst [vmem:[#allocation124_spill] sm:$0xff] %v5085_v37  ;;  %6626 = vst [vmem:[#allocation126_spill] sm:$0xff] %v5098_v60 }
 0xe00   :  { %v5087_v30 = vpop.permute.xlu0 %1693  ;;  %v5100_v32 = vpop.permute.xlu1 %1695 }
 0xe01   :  { %6625 = vst [vmem:[#allocation125_spill] sm:$0xff] %v5087_v30  ;;  %6627 = vst [vmem:[#allocation127_spill] sm:$0xff] %v5100_v32 }
 0xe04   :  { %v1710_v46 = vpop.permute.xlu0 %1709 }
 0xe05   :  { %v1713_v61 = vmul.f32 %v4739_v9, %v1710_v46  ;;  %v1712_v15 = vmul.f32 %v4743_v8, %v1710_v46  ;;  %v1715_v38 = vmul.f32 %v4786_v6, %v1710_v46  ;;  %v1714_v31 = vmul.f32 %v4771_v5, %v1710_v46 }
 0xe07   :  { %1722 = vrot.lane.b32.xlu0 %v1713_v61, %s4104_s0  ;;  %1720 = vrot.lane.b32.xlu1 %v1712_v15, %s4104_s0 }
 0xe0b   :  { %1726 = vrot.lane.b32.xlu0 %v1715_v38, %s4104_s0  ;;  %1724 = vrot.lane.b32.xlu1 %v1714_v31, %s4104_s0 }
 0xe0f   :  { %1741 = vrot.lane.b32.xlu1 %v3869_v22, %s4103_s20 }
 0xe79   :  { %v5102_v3 = vpop.permute.xlu1 %1720 }
 0xe7a   :  { %6628 = vst [vmem:[#allocation128_spill] sm:$0xff] %v5102_v3 }
 0xe7d   :  { %v5104_v49 = vpop.permute.xlu1 %1724 }
 0xe7e   :  { %6629 = vst [vmem:[#allocation129_spill] sm:$0xff] %v5104_v49 }
 0xe81   :  { %v1742_v48 = vpop.permute.xlu1 %1741 }
 0xe82   :  { %v1745_v2 = vmul.f32 %v4739_v9, %v1742_v48  ;;  %v1747_v26 = vmul.f32 %v4786_v6, %v1742_v48  ;;  %v1744_v46 = vmul.f32 %v4743_v8, %v1742_v48  ;;  %v1746_v61 = vmul.f32 %v4771_v5, %v1742_v48 }
 0xe83   :  { %v1749_v15 = vmul.f32 %v4814_v27, %v1742_v48  ;;  %v1748_v38 = vmul.f32 %v4817_v25, %v1742_v48  ;;  %v3870_v48 = vld [vmem:[#allocation6 + $0x2b] ss:$0 sm:$0xff] }
 0xe84   :  { %v1759_v31 = vrot.slane %v1745_v2, 1  ;;  %v1760_v22 = vrot.slane %v1747_v26, 1  ;;  %v1756_v30 = vrot.slane %v1744_v46, 1  ;;  %v1757_v32 = vrot.slane %v1746_v61, 1  ;;  %v5121_v2 = vpop.permute.xlu0 %1722 }
 0xe85   :  { %v1764_v42 = vrot.slane %v1749_v15, 1  ;;  %v1762_v37 = vrot.slane %v1748_v38, 1  ;;  %6630 = vst [vmem:[#allocation130_spill] sm:$0xff] %v5121_v2 }
 0xe86   :  { %v1761_v3 = vsel %vm168_vm11, %v1759_v31, %v1760_v22  ;;  %v1758_v49 = vsel %vm168_vm11, %v1756_v30, %v1757_v32 }
 0xe87   :  { %1768 = vrot.lane.b32.xlu1 %v1761_v3, %s4104_s0  ;;  %1766 = vrot.lane.b32.xlu0 %v1758_v49, %s4104_s0  ;;  %v1765_v60 = vsel %vm168_vm11, %v1760_v22, %v1764_v42  ;;  %v1763_v28 = vsel %vm168_vm11, %v1757_v32, %v1762_v37 }
 0xe88   :  { %v5123_v30 = vpop.permute.xlu0 %1726 }
 0xe89   :  { %6631 = vst [vmem:[#allocation131_spill] sm:$0xff] %v5123_v30 }
 0xe8b   :  { %1772 = vrot.lane.b32.xlu1 %v1765_v60, %s4104_s0  ;;  %1770 = vrot.lane.b32.xlu0 %v1763_v28, %s4104_s0 }
 0xe8f   :  { %1786 = vrot.lane.b32.xlu0 %v3870_v48, %s4103_s20 }
 0xef9   :  { %v5125_v26 = vpop.permute.xlu0 %1766 }
 0xefa   :  { %6632 = vst [vmem:[#allocation132_spill] sm:$0xff] %v5125_v26 }
 0xefd   :  { %v5127_v3 = vpop.permute.xlu0 %1770 }
 0xefe   :  { %6633 = vst [vmem:[#allocation133_spill] sm:$0xff] %v5127_v3 }
 0xf01   :  { %v1787_v49 = vpop.permute.xlu0 %1786 }
 0xf02   :  { %v1790_v42 = vmul.f32 %v4739_v9, %v1787_v49  ;;  %v1792_v37 = vmul.f32 %v4786_v6, %v1787_v49  ;;  %v1789_v60 = vmul.f32 %v4743_v8, %v1787_v49  ;;  %v1791_v28 = vmul.f32 %v4771_v5, %v1787_v49 }
 0xf03   :  { %v1794_v32 = vmul.f32 %v4814_v27, %v1787_v49  ;;  %v1793_v46 = vmul.f32 %v4817_v25, %v1787_v49  ;;  %v3871_v49 = vld [vmem:[#allocation6 + $0xe] ss:$0 sm:$0xff] }
 0xf04   :  { %v1804_v61 = vrot.slane %v1790_v42, 2  ;;  %v1805_v15 = vrot.slane %v1792_v37, 2  ;;  %v1801_v38 = vrot.slane %v1789_v60, 2  ;;  %v1802_v31 = vrot.slane %v1791_v28, 2  ;;  %v5144_v42 = vpop.permute.xlu1 %1768 }
 0xf05   :  { %v1809_v3 = vrot.slane %v1794_v32, 2  ;;  %v1807_v30 = vrot.slane %v1793_v46, 2  ;;  %6634 = vst [vmem:[#allocation134_spill] sm:$0xff] %v5144_v42  ;;  %v3872_v46 = vld [vmem:[#allocation6 + $0x1d] ss:$0 sm:$0xff] }
 0xf06   :  { %v1806_v22 = vsel %vm214_vm12, %v1804_v61, %v1805_v15  ;;  %v1803_v48 = vsel %vm214_vm12, %v1801_v38, %v1802_v31 }
 0xf07   :  { %1813 = vrot.lane.b32.xlu0 %v1806_v22, %s4104_s0  ;;  %1811 = vrot.lane.b32.xlu1 %v1803_v48, %s4104_s0  ;;  %v1810_v26 = vsel %vm214_vm12, %v1805_v15, %v1809_v3  ;;  %v1808_v2 = vsel %vm214_vm12, %v1802_v31, %v1807_v30 }
 0xf08   :  { %v5146_v37 = vpop.permute.xlu1 %1772 }
 0xf09   :  { %6635 = vst [vmem:[#allocation135_spill] sm:$0xff] %v5146_v37 }
 0xf0b   :  { %1817 = vrot.lane.b32.xlu0 %v1810_v26, %s4104_s0  ;;  %1815 = vrot.lane.b32.xlu1 %v1808_v2, %s4104_s0 }
 0xf0f   :  { %1831 = vrot.lane.b32.xlu1 %v3871_v49, %s4105_s15 }
 0xf79   :  { %v5148_v60 = vpop.permute.xlu1 %1811  ;;  %v5161_v61 = vpop.permute.xlu0 %1813 }
 0xf7a   :  { %6636 = vst [vmem:[#allocation136_spill] sm:$0xff] %v5148_v60  ;;  %6638 = vst [vmem:[#allocation138_spill] sm:$0xff] %v5161_v61 }
 0xf7d   :  { %v5150_v28 = vpop.permute.xlu1 %1815  ;;  %v5163_v15 = vpop.permute.xlu0 %1817 }
 0xf7e   :  { %6637 = vst [vmem:[#allocation137_spill] sm:$0xff] %v5150_v28  ;;  %6639 = vst [vmem:[#allocation139_spill] sm:$0xff] %v5163_v15 }
 0xf81   :  { %v1832_v32 = vpop.permute.xlu1 %1831 }
 0xf82   :  { %v1835_v3 = vmul.f32 %v4739_v9, %v1832_v32  ;;  %v1834_v30 = vmul.f32 %v4743_v8, %v1832_v32  ;;  %v1837_v2 = vmul.f32 %v4786_v6, %v1832_v32  ;;  %v1836_v26 = vmul.f32 %v4771_v5, %v1832_v32 }
 0xf84   :  { %1844 = vrot.lane.b32.xlu1 %v1835_v3, %s4106_s24  ;;  %1842 = vrot.lane.b32.xlu0 %v1834_v30, %s4106_s24 }
 0xf88   :  { %1848 = vrot.lane.b32.xlu1 %v1837_v2, %s4106_s24  ;;  %1846 = vrot.lane.b32.xlu0 %v1836_v26, %s4106_s24 }
 0xf8c   :  { %1863 = vrot.lane.b32.xlu0 %v3872_v46, %s4105_s15 }
 0xff6   :  { %v5165_v38 = vpop.permute.xlu0 %1842 }
 0xff7   :  { %6640 = vst [vmem:[#allocation140_spill] sm:$0xff] %v5165_v38 }
 0xffa   :  { %v5167_v31 = vpop.permute.xlu0 %1846 }
 0xffb   :  { %6641 = vst [vmem:[#allocation141_spill] sm:$0xff] %v5167_v31 }
 0xffe   :  { %v1864_v22 = vpop.permute.xlu0 %1863 }
 0xfff   :  { %v1867_v48 = vmul.f32 %v4739_v9, %v1864_v22  ;;  %v1869_v49 = vmul.f32 %v4786_v6, %v1864_v22  ;;  %v1866_v32 = vmul.f32 %v4743_v8, %v1864_v22  ;;  %v1868_v3 = vmul.f32 %v4771_v5, %v1864_v22 }
0x1000   :  { %v1871_v30 = vmul.f32 %v4814_v27, %v1864_v22  ;;  %v1870_v2 = vmul.f32 %v4817_v25, %v1864_v22  ;;  %v3873_v22 = vld [vmem:[#allocation6 + $0x2c] ss:$0 sm:$0xff] }
0x1001   :  { %v1881_v26 = vrot.slane %v1867_v48, 1  ;;  %v1882_v46 = vrot.slane %v1869_v49, 1  ;;  %v1878_v28 = vrot.slane %v1866_v32, 1  ;;  %v1879_v15 = vrot.slane %v1868_v3, 1  ;;  %v5184_v48 = vpop.permute.xlu1 %1844 }
0x1002   :  { %v1886_v37 = vrot.slane %v1871_v30, 1  ;;  %v1884_v60 = vrot.slane %v1870_v2, 1 }
0x1003   :  { %v1883_v38 = vsel %vm168_vm11, %v1881_v26, %v1882_v46  ;;  %v1880_v31 = vsel %vm168_vm11, %v1878_v28, %v1879_v15 }
0x1004   :  { %1890 = vrot.lane.b32.xlu0 %v1883_v38, %s4106_s24  ;;  %1888 = vrot.lane.b32.xlu1 %v1880_v31, %s4106_s24  ;;  %v1887_v61 = vsel %vm168_vm11, %v1882_v46, %v1886_v37  ;;  %v1885_v42 = vsel %vm168_vm11, %v1879_v15, %v1884_v60 }
0x1005   :  { %v5186_v28 = vpop.permute.xlu1 %1848 }
0x1008   :  { %1894 = vrot.lane.b32.xlu0 %v1887_v61, %s4106_s24  ;;  %1892 = vrot.lane.b32.xlu1 %v1885_v42, %s4106_s24 }
0x100c   :  { %1908 = vrot.lane.b32.xlu1 %v3873_v22, %s4105_s15 }
0x1076   :  { %v5188_v49 = vpop.permute.xlu1 %1888 }
0x107a   :  { %v5190_v38 = vpop.permute.xlu1 %1892 }
0x107b   :  { %6642 = vst [vmem:[#allocation142_spill] sm:$0xff] %v5190_v38 }
0x107e   :  { %v1909_v31 = vpop.permute.xlu1 %1908 }
0x107f   :  { %v1912_v37 = vmul.f32 %v4739_v9, %v1909_v31  ;;  %v1914_v60 = vmul.f32 %v4786_v6, %v1909_v31  ;;  %v1911_v61 = vmul.f32 %v4743_v8, %v1909_v31  ;;  %v1913_v42 = vmul.f32 %v4771_v5, %v1909_v31  ;;  %v3828_v6 = vld [vmem:[#allocation6 + $0x2d] ss:$0 sm:$0xff] }
0x1080   :  { %v1916_v15 = vmul.f32 %v4814_v27, %v1909_v31  ;;  %v1915_v32 = vmul.f32 %v4817_v25, %v1909_v31  ;;  %v141_v27 = vsel %vm140_vm13, %v4476_v55, %v4442_v35  ;;  %v187_v25 = vsel %vm140_vm13, %v4462_v47, %v4532_v33 }
0x1081   :  { %v1926_v3 = vrot.slane %v1912_v37, 2  ;;  %v1927_v30 = vrot.slane %v1914_v60, 2  ;;  %v1923_v2 = vrot.slane %v1911_v61, 2  ;;  %v1924_v26 = vrot.slane %v1913_v42, 2 }
0x1082   :  { %v1931_v38 = vrot.slane %v1916_v15, 2  ;;  %v1929_v9 = vrot.slane %v1915_v32, 2  ;;  %v145_v31 = vadd.f32 %v3828_v6, %v141_v27  ;;  %v233_v37 = vsel %vm140_vm13, %v4537_v10, %v4466_v51  ;;  %v6644_v15 = vld [vmem:[#allocation22_spill] sm:$0xff] }
0x1083   :  { %v1928_v46 = vsel %vm214_vm12, %v1926_v3, %v1927_v30  ;;  %v1925_v22 = vsel %vm214_vm12, %v1923_v2, %v1924_v26  ;;  %v188_v61 = vsel %vm140_vm13, %v4464_v50, %v4535_v23  ;;  %v234_v47 = vsel %vm140_vm13, %v4539_v11, %v4468_v52  ;;  %v6645_v32 = vld [vmem:[#allocation14_spill] sm:$0xff]  ;;  %v6647_v3 = vld [vmem:[#allocation24_spill] sm:$0xff]  ;;  %v6648_v2 = vld [vmem:[#allocation25_spill] sm:$0xff] }
0x1084   :  { %1935 = vrot.lane.b32.xlu1 %v1928_v46, %s4106_s24  ;;  %1933 = vrot.lane.b32.xlu0 %v1925_v22, %s4106_s24  ;;  %v1932_v8 = vsel %vm214_vm12, %v1927_v30, %v1931_v38  ;;  %v1930_v5 = vsel %vm214_vm12, %v1924_v26, %v1929_v9  ;;  %v142_v38 = vsel %vm140_vm13, %v4500_v4, %v4452_v43  ;;  %v6650_v46 = vld [vmem:[#allocation13_spill] sm:$0xff]  ;;  %v6651_v22 = vld [vmem:[#allocation16_spill] sm:$0xff]  ;;  %v6652_v9 = vld [vmem:[#allocation26_spill] sm:$0xff] }
0x1085   :  { %v191_v60 = vadd.f32 %v187_v25, %v145_v31  ;;  %v146_v35 = vadd.f32 %v3828_v6, %v142_v38  ;;  %v265_v43 = vsel %vm264_vm14, %v4444_v36, %v4480_v57  ;;  %v310_v51 = vsel %vm264_vm14, %v4541_v12, %v4470_v53  ;;  %v6654_v25 = vld [vmem:[#allocation30_spill] sm:$0xff]  ;;  %v6655_v31 = vld [vmem:[#allocation28_spill] sm:$0xff] }
0x1086   :  { %v355_v50 = vsel %vm264_vm14, %v4474_v29, %v4545_v14  ;;  %v266_v52 = vsel %vm264_vm14, %v4454_v44, %v4506_v7  ;;  %v311_v11 = vsel %vm264_vm14, %v4543_v13, %v4472_v54  ;;  %v356_v53 = vsel %vm264_vm14, %v4478_v56, %v4547_v16 }
0x1087   :  { %v237_v55 = vadd.f32 %v233_v37, %v191_v60  ;;  %v192_v33 = vadd.f32 %v188_v61, %v146_v35  ;;  %v387_v29 = vsel %vm386_vm15, %v4486_v62, %v4446_v39  ;;  %v432_v44 = vsel %vm386_vm15, %v4482_v58, %v4549_v17  ;;  %v6656_v60 = vld [vmem:[#allocation15_spill] sm:$0xff] }
0x1088   :  { %1939 = vrot.lane.b32.xlu1 %v1932_v8, %s4106_s24  ;;  %1937 = vrot.lane.b32.xlu0 %v1930_v5, %s4106_s24  ;;  %v477_v54 = vsel %vm386_vm15, %v4553_v19, %v4488_v63  ;;  %v388_v56 = vsel %vm386_vm15, %v4510_v34, %v4456_v45  ;;  %v433_v16 = vsel %vm386_vm15, %v4484_v59, %v4551_v18  ;;  %v6643_v59 = vld [vmem:[#allocation18_spill] sm:$0xff]  ;;  %v6653_v8 = vld [vmem:[#allocation20_spill] sm:$0xff]  ;;  %v6657_v61 = vld [vmem:[#allocation23_spill] sm:$0xff] }
0x1089   :  { %v269_v4 = vadd.f32 %v265_v43, %v237_v55  ;;  %v238_v10 = vadd.f32 %v234_v47, %v192_v33  ;;  %v478_v58 = vsel %vm386_vm15, %v4555_v20, %v4492_v1  ;;  %v509_v63 = vsel %vm508_vm1, %v4448_v40, %v4490_v0  ;;  %v6646_v20 = vld [vmem:[#allocation17_spill] sm:$0xff]  ;;  %v6658_v55 = vld [vmem:[#allocation27_spill] sm:$0xff]  ;;  %v6660_v43 = vld [vmem:[#allocation34_spill] sm:$0xff] }
0x108a   :  { %v554_v45 = vsel %vm508_vm1, %v4557_v21, %v4494_v41  ;;  %v599_v18 = vsel %vm508_vm1, %v6643_v59, %v4561_v24  ;;  %v510_v1 = vsel %vm508_vm1, %v6645_v32, %v6644_v15  ;;  %v555_v30 = vsel %vm508_vm1, %v6647_v3, %v6646_v20  ;;  %v6649_v41 = vld [vmem:[#allocation19_spill] sm:$0xff]  ;;  %v6659_v47 = vld [vmem:[#allocation21_spill] sm:$0xff]  ;;  %v6676_v32 = vld [vmem:[#allocation50_spill] sm:$0xff] }
0x108b   :  { %v314_v23 = vadd.f32 %v310_v51, %v269_v4  ;;  %v270_v36 = vadd.f32 %v266_v52, %v238_v10  ;;  %v600_v21 = vsel %vm508_vm1, %v6649_v41, %v6648_v2  ;;  %v631_v24 = vsel %vm6499_vm3, %v6651_v22, %v6650_v46  ;;  %v6661_v51 = vld [vmem:[#allocation32_spill] sm:$0xff]  ;;  %v6663_v52 = vld [vmem:[#allocation29_spill] sm:$0xff]  ;;  %v6680_v41 = vld [vmem:[#allocation54_spill] sm:$0xff] }
0x108c   :  { %v676_v5 = vsel %vm6499_vm3, %v6653_v8, %v6652_v9  ;;  %v721_v38 = vsel %vm6499_vm3, %v6655_v31, %v6654_v25  ;;  %v632_v35 = vsel %vm6499_vm3, %v6657_v61, %v6656_v60  ;;  %v677_v33 = vsel %vm6499_vm3, %v6659_v47, %v6658_v55  ;;  %v6683_v9 = vld [vmem:[#allocation49_spill] sm:$0xff]  ;;  %v6688_v61 = vld [vmem:[#allocation62_spill] sm:$0xff] }
0x108d   :  { %v359_v57 = vadd.f32 %v355_v50, %v314_v23  ;;  %v315_v12 = vadd.f32 %v311_v11, %v270_v36  ;;  %v753_v4 = vsel %vm6500_vm4, %v6661_v51, %v6660_v43  ;;  %v6662_v23 = vld [vmem:[#allocation31_spill] sm:$0xff]  ;;  %v6664_v36 = vld [vmem:[#allocation38_spill] sm:$0xff]  ;;  %v6691_v51 = vld [vmem:[#allocation57_spill] sm:$0xff] }
0x108e   :  { %v722_v11 = vsel %vm6499_vm3, %v6663_v52, %v6662_v23  ;;  %vm6502_vm3 = vcmask 982016   ;;  %v6690_v43 = vld [vmem:[#allocation59_spill] sm:$0xff] }
0x108f   :  { %v391_v7 = vadd.f32 %v387_v29, %v359_v57  ;;  %v360_v14 = vadd.f32 %v356_v53, %v315_v12  ;;  %v6665_v57 = vld [vmem:[#allocation36_spill] sm:$0xff] }
0x1090   :  { %v798_v53 = vsel %vm6500_vm4, %v6665_v57, %v6664_v36  ;;  %v6694_v36 = vld [vmem:[#allocation63_spill] sm:$0xff]  ;;  %v6695_v57 = vld [vmem:[#allocation61_spill] sm:$0xff] }
0x1091   :  { %v436_v13 = vadd.f32 %v432_v44, %v391_v7  ;;  %v392_v39 = vadd.f32 %v388_v56, %v360_v14  ;;  %v6666_v44 = vld [vmem:[#allocation35_spill] sm:$0xff]  ;;  %v6667_v7 = vld [vmem:[#allocation33_spill] sm:$0xff] }
0x1092   :  { %v754_v14 = vsel %vm6500_vm4, %v6667_v7, %v6666_v44 }
0x1093   :  { %v481_v62 = vadd.f32 %v477_v54, %v436_v13  ;;  %v437_v17 = vadd.f32 %v433_v16, %v392_v39  ;;  %v6668_v54 = vld [vmem:[#allocation42_spill] sm:$0xff]  ;;  %v6669_v13 = vld [vmem:[#allocation40_spill] sm:$0xff] }
0x1094   :  { %v843_v56 = vsel %vm6500_vm4, %v6669_v13, %v6668_v54  ;;  %v6698_v54 = vld [vmem:[#allocation67_spill] sm:$0xff]  ;;  %v6699_v13 = vld [vmem:[#allocation65_spill] sm:$0xff] }
0x1095   :  { %v513_v34 = vadd.f32 %v509_v63, %v481_v62  ;;  %v482_v19 = vadd.f32 %v478_v58, %v437_v17  ;;  %v6670_v62 = vld [vmem:[#allocation39_spill] sm:$0xff]  ;;  %v6671_v58 = vld [vmem:[#allocation37_spill] sm:$0xff]  ;;  %v6672_v63 = vld [vmem:[#allocation46_spill] sm:$0xff] }
0x1096   :  { %v799_v17 = vsel %vm6500_vm4, %v6671_v58, %v6670_v62 }
0x1097   :  { %v558_v42 = vadd.f32 %v554_v45, %v513_v34  ;;  %v514_v40 = vadd.f32 %v510_v1, %v482_v19  ;;  %v6673_v45 = vld [vmem:[#allocation44_spill] sm:$0xff] }
0x1098   :  { %v875_v34 = vsel %vm6501_vm6, %v6673_v45, %v6672_v63  ;;  %v6677_v1 = vld [vmem:[#allocation48_spill] sm:$0xff]  ;;  %v6702_v63 = vld [vmem:[#allocation71_spill] sm:$0xff]  ;;  %v6703_v45 = vld [vmem:[#allocation69_spill] sm:$0xff] }
0x1099   :  { %v603_v0 = vadd.f32 %v599_v18, %v558_v42  ;;  %v559_v26 = vadd.f32 %v555_v30, %v514_v40  ;;  %v6674_v18 = vld [vmem:[#allocation43_spill] sm:$0xff]  ;;  %v6675_v42 = vld [vmem:[#allocation41_spill] sm:$0xff]  ;;  %v920_v20 = vsel %vm6501_vm6, %v6677_v1, %v6676_v32 }
0x109a   :  { %v844_v15 = vsel %vm6500_vm4, %v6675_v42, %v6674_v18  ;;  %v6678_v40 = vld [vmem:[#allocation47_spill] sm:$0xff]  ;;  %vm6503_vm4 = vcmask 973824   ;;  %v6707_v1 = vld [vmem:[#allocation73_spill] sm:$0xff] }
0x109b   :  { %v635_v6 = vadd.f32 %v631_v24, %v603_v0  ;;  %v604_v27 = vadd.f32 %v600_v21, %v559_v26  ;;  %v6679_v0 = vld [vmem:[#allocation45_spill] sm:$0xff]  ;;  %v6681_v21 = vld [vmem:[#allocation52_spill] sm:$0xff]  ;;  %v6682_v24 = vld [vmem:[#allocation51_spill] sm:$0xff] }
0x109c   :  { %v876_v2 = vsel %vm6501_vm6, %v6679_v0, %v6678_v40  ;;  %v965_v26 = vsel %vm6501_vm6, %v6681_v21, %v6680_v41  ;;  %v921_v8 = vsel %vm6501_vm6, %v6683_v9, %v6682_v24  ;;  %v6706_v32 = vld [vmem:[#allocation75_spill] sm:$0xff]  ;;  %v6711_v21 = vld [vmem:[#allocation77_spill] sm:$0xff] }
0x109d   :  { %v680_v37 = vadd.f32 %v676_v5, %v635_v6  ;;  %v636_v10 = vadd.f32 %v632_v35, %v604_v27  ;;  %v6684_v5 = vld [vmem:[#allocation58_spill] sm:$0xff]  ;;  %v6685_v6 = vld [vmem:[#allocation56_spill] sm:$0xff]  ;;  %v6710_v41 = vld [vmem:[#allocation79_spill] sm:$0xff] }
0x109e   :  { %v997_v27 = vsel %vm6502_vm3, %v6685_v6, %v6684_v5  ;;  %v6689_v35 = vld [vmem:[#allocation60_spill] sm:$0xff]  ;;  %v6714_v5 = vld [vmem:[#allocation83_spill] sm:$0xff]  ;;  %v6715_v6 = vld [vmem:[#allocation81_spill] sm:$0xff] }
0x109f   :  { %v725_v50 = vadd.f32 %v721_v38, %v680_v37  ;;  %v681_v12 = vadd.f32 %v677_v33, %v636_v10  ;;  %v6686_v38 = vld [vmem:[#allocation55_spill] sm:$0xff]  ;;  %v6687_v37 = vld [vmem:[#allocation53_spill] sm:$0xff]  ;;  %v1042_v55 = vsel %vm6502_vm3, %v6689_v35, %v6688_v61  ;;  %v6692_v10 = vld [vmem:[#allocation66_spill] sm:$0xff] }
0x10a0   :  { %v966_v60 = vsel %vm6501_vm6, %v6687_v37, %v6686_v38  ;;  %vm6504_vm6 = vcmask 965632   ;;  %v6718_v61 = vld [vmem:[#allocation87_spill] sm:$0xff]  ;;  %v6719_v35 = vld [vmem:[#allocation85_spill] sm:$0xff] }
0x10a1   :  { %v757_v29 = vadd.f32 %v753_v4, %v725_v50  ;;  %v726_v16 = vadd.f32 %v722_v11, %v681_v12  ;;  %v998_v4 = vsel %vm6502_vm3, %v6691_v51, %v6690_v43  ;;  %v6693_v50 = vld [vmem:[#allocation64_spill] sm:$0xff]  ;;  %v6696_v12 = vld [vmem:[#allocation70_spill] sm:$0xff] }
0x10a2   :  { %v1087_v23 = vsel %vm6502_vm3, %v6693_v50, %v6692_v10  ;;  %v6722_v10 = vld [vmem:[#allocation91_spill] sm:$0xff]  ;;  %v6723_v50 = vld [vmem:[#allocation89_spill] sm:$0xff] }
0x10a3   :  { %v802_v39 = vadd.f32 %v798_v53, %v757_v29  ;;  %v758_v19 = vadd.f32 %v754_v14, %v726_v16  ;;  %v1043_v53 = vsel %vm6502_vm3, %v6695_v57, %v6694_v36  ;;  %v6697_v29 = vld [vmem:[#allocation68_spill] sm:$0xff]  ;;  %v6700_v16 = vld [vmem:[#allocation74_spill] sm:$0xff] }
0x10a4   :  { %v1119_v44 = vsel %vm6503_vm4, %v6697_v29, %v6696_v12  ;;  %v6726_v12 = vld [vmem:[#allocation95_spill] sm:$0xff]  ;;  %v6727_v29 = vld [vmem:[#allocation93_spill] sm:$0xff] }
0x10a5   :  { %v847_v59 = vadd.f32 %v843_v56, %v802_v39  ;;  %v803_v3 = vadd.f32 %v799_v17, %v758_v19  ;;  %v1088_v56 = vsel %vm6502_vm3, %v6699_v13, %v6698_v54  ;;  %v6701_v39 = vld [vmem:[#allocation72_spill] sm:$0xff]  ;;  %v6704_v19 = vld [vmem:[#allocation78_spill] sm:$0xff]  ;;  %vm6505_vm3 = vcmask 957440  }
0x10a6   :  { %v1164_v62 = vsel %vm6503_vm4, %v6701_v39, %v6700_v16  ;;  %v6730_v16 = vld [vmem:[#allocation99_spill] sm:$0xff]  ;;  %v6731_v39 = vld [vmem:[#allocation97_spill] sm:$0xff] }
0x10a7   :  { %v879_v30 = vadd.f32 %v875_v34, %v847_v59  ;;  %v848_v46 = vadd.f32 %v844_v15, %v803_v3  ;;  %v1120_v34 = vsel %vm6503_vm4, %v6703_v45, %v6702_v63  ;;  %v6705_v59 = vld [vmem:[#allocation76_spill] sm:$0xff]  ;;  %v6708_v3 = vld [vmem:[#allocation82_spill] sm:$0xff] }
0x10a8   :  { %v1209_v18 = vsel %vm6503_vm4, %v6705_v59, %v6704_v19  ;;  %v6734_v19 = vld [vmem:[#allocation103_spill] sm:$0xff]  ;;  %v6735_v59 = vld [vmem:[#allocation101_spill] sm:$0xff] }
0x10a9   :  { %v924_v22 = vadd.f32 %v920_v20, %v879_v30  ;;  %v880_v25 = vadd.f32 %v876_v2, %v848_v46  ;;  %v1165_v20 = vsel %vm6503_vm4, %v6707_v1, %v6706_v32  ;;  %v6709_v30 = vld [vmem:[#allocation80_spill] sm:$0xff]  ;;  %v6712_v46 = vld [vmem:[#allocation86_spill] sm:$0xff] }
0x10aa   :  { %v1241_v40 = vsel %vm6504_vm6, %v6709_v30, %v6708_v3  ;;  %v6738_v3 = vld [vmem:[#allocation107_spill] sm:$0xff]  ;;  %v6739_v30 = vld [vmem:[#allocation105_spill] sm:$0xff] }
0x10ab   :  { %v969_v31 = vadd.f32 %v965_v26, %v924_v22  ;;  %v925_v47 = vadd.f32 %v921_v8, %v880_v25  ;;  %v1210_v26 = vsel %vm6503_vm4, %v6711_v21, %v6710_v41  ;;  %v6713_v22 = vld [vmem:[#allocation84_spill] sm:$0xff]  ;;  %v6716_v25 = vld [vmem:[#allocation90_spill] sm:$0xff]  ;;  %vm6506_vm4 = vcmask 949248  }
0x10ac   :  { %v1286_v24 = vsel %vm6504_vm6, %v6713_v22, %v6712_v46  ;;  %v6742_v46 = vld [vmem:[#allocation111_spill] sm:$0xff]  ;;  %v6743_v22 = vld [vmem:[#allocation109_spill] sm:$0xff] }
0x10ad   :  { %v1001_v33 = vadd.f32 %v997_v27, %v969_v31  ;;  %v970_v52 = vadd.f32 %v966_v60, %v925_v47  ;;  %v1242_v27 = vsel %vm6504_vm6, %v6715_v6, %v6714_v5  ;;  %v6717_v31 = vld [vmem:[#allocation88_spill] sm:$0xff]  ;;  %v6720_v47 = vld [vmem:[#allocation94_spill] sm:$0xff] }
0x10ae   :  { %v1331_v38 = vsel %vm6504_vm6, %v6717_v31, %v6716_v25  ;;  %v6746_v25 = vld [vmem:[#allocation115_spill] sm:$0xff]  ;;  %v6747_v31 = vld [vmem:[#allocation113_spill] sm:$0xff] }
0x10af   :  { %v1046_v11 = vadd.f32 %v1042_v55, %v1001_v33  ;;  %v1002_v7 = vadd.f32 %v998_v4, %v970_v52  ;;  %v1287_v55 = vsel %vm6504_vm6, %v6719_v35, %v6718_v61  ;;  %v6721_v33 = vld [vmem:[#allocation92_spill] sm:$0xff]  ;;  %v6724_v52 = vld [vmem:[#allocation98_spill] sm:$0xff] }
0x10b0   :  { %v1363_v43 = vsel %vm6505_vm3, %v6721_v33, %v6720_v47  ;;  %v6750_v47 = vld [vmem:[#allocation119_spill] sm:$0xff]  ;;  %v6751_v33 = vld [vmem:[#allocation117_spill] sm:$0xff] }
0x10b1   :  { %v1091_v14 = vadd.f32 %v1087_v23, %v1046_v11  ;;  %v1047_v58 = vadd.f32 %v1043_v53, %v1002_v7  ;;  %v1332_v23 = vsel %vm6504_vm6, %v6723_v50, %v6722_v10  ;;  %v6725_v11 = vld [vmem:[#allocation96_spill] sm:$0xff]  ;;  %v6728_v7 = vld [vmem:[#allocation102_spill] sm:$0xff]  ;;  %vm1606_vm6 = vcmask 941056  }
0x10b2   :  { %v1408_v36 = vsel %vm6505_vm3, %v6725_v11, %v6724_v52  ;;  %v6754_v52 = vld [vmem:[#allocation123_spill] sm:$0xff]  ;;  %v6755_v11 = vld [vmem:[#allocation121_spill] sm:$0xff] }
0x10b3   :  { %v1123_v17 = vadd.f32 %v1119_v44, %v1091_v14  ;;  %v1092_v42 = vadd.f32 %v1088_v56, %v1047_v58  ;;  %v1364_v44 = vsel %vm6505_vm3, %v6727_v29, %v6726_v12  ;;  %v6729_v14 = vld [vmem:[#allocation100_spill] sm:$0xff]  ;;  %v6732_v58 = vld [vmem:[#allocation106_spill] sm:$0xff] }
0x10b4   :  { %v1453_v54 = vsel %vm6505_vm3, %v6729_v14, %v6728_v7  ;;  %v1891_v7 = vpop.permute.xlu0 %1890  ;;  %v6758_v14 = vld [vmem:[#allocation127_spill] sm:$0xff] }
0x10b5   :  { %v1168_v15 = vadd.f32 %v1164_v62, %v1123_v17  ;;  %v1124_v0 = vadd.f32 %v1120_v34, %v1092_v42  ;;  %v1409_v62 = vsel %vm6505_vm3, %v6731_v39, %v6730_v16  ;;  %v6733_v17 = vld [vmem:[#allocation104_spill] sm:$0xff]  ;;  %v6736_v42 = vld [vmem:[#allocation110_spill] sm:$0xff] }
0x10b6   :  { %v1485_v63 = vsel %vm6506_vm4, %v6733_v17, %v6732_v58  ;;  %v6761_v16 = vld [vmem:[#allocation132_spill] sm:$0xff]  ;;  %v6762_v17 = vld [vmem:[#allocation131_spill] sm:$0xff] }
0x10b7   :  { %v1213_v2 = vadd.f32 %v1209_v18, %v1168_v15  ;;  %v1169_v9 = vadd.f32 %v1165_v20, %v1124_v0  ;;  %v1454_v18 = vsel %vm6505_vm3, %v6735_v59, %v6734_v19  ;;  %v6737_v15 = vld [vmem:[#allocation108_spill] sm:$0xff]  ;;  %v6740_v0 = vld [vmem:[#allocation114_spill] sm:$0xff]  ;;  %vm1728_vm3 = vcmask 932864  }
0x10b8   :  { %v1530_v32 = vsel %vm6506_vm4, %v6737_v15, %v6736_v42  ;;  %v6765_v19 = vld [vmem:[#allocation136_spill] sm:$0xff]  ;;  %v6766_v15 = vld [vmem:[#allocation135_spill] sm:$0xff] }
0x10b9   :  { %v1245_v8 = vadd.f32 %v1241_v40, %v1213_v2  ;;  %v1214_v37 = vadd.f32 %v1210_v26, %v1169_v9  ;;  %v1486_v40 = vsel %vm6506_vm4, %v6739_v30, %v6738_v3  ;;  %v6741_v2 = vld [vmem:[#allocation112_spill] sm:$0xff]  ;;  %v6744_v9 = vld [vmem:[#allocation118_spill] sm:$0xff] }
0x10ba   :  { %v1575_v41 = vsel %vm6506_vm4, %v6741_v2, %v6740_v0  ;;  %v1895_v0 = vpop.permute.xlu0 %1894  ;;  %v6769_v2 = vld [vmem:[#allocation139_spill] sm:$0xff] }
0x10bb   :  { %v1290_v60 = vadd.f32 %v1286_v24, %v1245_v8  ;;  %v1246_v51 = vadd.f32 %v1242_v27, %v1214_v37  ;;  %v1531_v24 = vsel %vm6506_vm4, %v6743_v22, %v6742_v46  ;;  %v6745_v8 = vld [vmem:[#allocation116_spill] sm:$0xff]  ;;  %v6748_v37 = vld [vmem:[#allocation122_spill] sm:$0xff] }
0x10bc   :  { %v1607_v5 = vsel %vm1606_vm6, %v6745_v8, %v6744_v9 }
0x10bd   :  { %v1335_v4 = vadd.f32 %v1331_v38, %v1290_v60  ;;  %v1291_v57 = vadd.f32 %v1287_v55, %v1246_v51  ;;  %v1576_v38 = vsel %vm6506_vm4, %v6747_v31, %v6746_v25  ;;  %v6749_v60 = vld [vmem:[#allocation120_spill] sm:$0xff]  ;;  %v6752_v51 = vld [vmem:[#allocation126_spill] sm:$0xff]  ;;  %vm1850_vm4 = vcmask 924672  }
0x10be   :  { %v1652_v61 = vsel %vm1606_vm6, %v6749_v60, %v6748_v37 }
0x10bf   :  { %v1367_v53 = vadd.f32 %v1363_v43, %v1335_v4  ;;  %v1336_v13 = vadd.f32 %v1332_v23, %v1291_v57  ;;  %v1608_v43 = vsel %vm1606_vm6, %v6751_v33, %v6750_v47  ;;  %v6753_v4 = vld [vmem:[#allocation124_spill] sm:$0xff]  ;;  %v6756_v57 = vld [vmem:[#allocation130_spill] sm:$0xff] }
0x10c0   :  { %v1697_v10 = vsel %vm1606_vm6, %v6753_v4, %v6752_v51  ;;  %v3876_v4 = vld [vmem:[#allocation8 + $0xf] ss:$0 sm:$0xff] }
0x10c1   :  { %v1412_v56 = vadd.f32 %v1408_v36, %v1367_v53  ;;  %v1368_v45 = vadd.f32 %v1364_v44, %v1336_v13  ;;  %v1653_v36 = vsel %vm1606_vm6, %v6755_v11, %v6754_v52  ;;  %v6757_v53 = vld [vmem:[#allocation128_spill] sm:$0xff] }
0x10c2   :  { %v1729_v12 = vsel %vm1728_vm3, %v6757_v53, %v6756_v57 }
0x10c3   :  { %v1457_v34 = vadd.f32 %v1453_v54, %v1412_v56  ;;  %v1413_v1 = vadd.f32 %v1409_v62, %v1368_v45  ;;  %v6759_v54 = vld [vmem:[#allocation125_spill] sm:$0xff]  ;;  %v6760_v56 = vld [vmem:[#allocation134_spill] sm:$0xff] }
0x10c4   :  { %v1698_v13 = vsel %vm1606_vm6, %v6759_v54, %v6758_v14  ;;  %v1774_v39 = vsel %vm1728_vm3, %v6761_v16, %v6760_v56 }
0x10c5   :  { %v1489_v20 = vadd.f32 %v1485_v63, %v1457_v34  ;;  %v1458_v21 = vadd.f32 %v1454_v18, %v1413_v1  ;;  %v6763_v63 = vld [vmem:[#allocation129_spill] sm:$0xff]  ;;  %v6764_v34 = vld [vmem:[#allocation138_spill] sm:$0xff] }
0x10c6   :  { %v1730_v45 = vsel %vm1728_vm3, %v6763_v63, %v6762_v17  ;;  %v1819_v59 = vsel %vm1728_vm3, %v6765_v19, %v6764_v34 }
0x10c7   :  { %v1534_v26 = vadd.f32 %v1530_v32, %v1489_v20  ;;  %v1490_v6 = vadd.f32 %v1486_v40, %v1458_v21  ;;  %v6767_v32 = vld [vmem:[#allocation133_spill] sm:$0xff]  ;;  %v6768_v20 = vld [vmem:[#allocation140_spill] sm:$0xff] }
0x10c8   :  { %v1775_v1 = vsel %vm1728_vm3, %v6767_v32, %v6766_v15  ;;  %v1851_v3 = vsel %vm1850_vm4, %v6768_v20, %v5184_v48 }
0x10c9   :  { %v1579_v27 = vadd.f32 %v1575_v41, %v1534_v26  ;;  %v1535_v35 = vadd.f32 %v1531_v24, %v1490_v6  ;;  %v6770_v41 = vld [vmem:[#allocation137_spill] sm:$0xff]  ;;  %v1896_v26 = vsel %vm1850_vm4, %v5188_v49, %v1891_v7 }
0x10ca   :  { %v1820_v21 = vsel %vm1728_vm3, %v6770_v41, %v6769_v2  ;;  %v6771_v24 = vld [vmem:[#allocation141_spill] sm:$0xff] }
0x10cb   :  { %v1611_v55 = vadd.f32 %v1607_v5, %v1579_v27  ;;  %v1580_v50 = vadd.f32 %v1576_v38, %v1535_v35  ;;  %v1852_v9 = vsel %vm1850_vm4, %v6771_v24, %v5186_v28  ;;  %v6772_v27 = vld [vmem:[#allocation142_spill] sm:$0xff] }
0x10cc   :  { %v1897_v25 = vsel %vm1850_vm4, %v6772_v27, %v1895_v0 }
0x10cd   :  { %v1656_v23 = vadd.f32 %v1652_v61, %v1611_v55  ;;  %v1612_v29 = vadd.f32 %v1608_v43, %v1580_v50 }
0x10cf   :  { %v1701_v44 = vadd.f32 %v1697_v10, %v1656_v23  ;;  %v1657_v62 = vadd.f32 %v1653_v36, %v1612_v29  ;;  %v3875_v10 = vld [vmem:[#allocation8] ss:$0 sm:$0xff] }
0x10d1   :  { %v1733_v58 = vadd.f32 %v1729_v12, %v1701_v44  ;;  %v1702_v18 = vadd.f32 %v1698_v13, %v1657_v62 }
0x10d3   :  { %v1778_v42 = vadd.f32 %v1774_v39, %v1733_v58  ;;  %v1734_v30 = vadd.f32 %v1730_v45, %v1702_v18 }
0x10d5   :  { %v1823_v40 = vadd.f32 %v1819_v59, %v1778_v42  ;;  %v1779_v46 = vadd.f32 %v1775_v1, %v1734_v30 }
0x10d7   :  { %v1855_v22 = vadd.f32 %v1851_v3, %v1823_v40  ;;  %v1824_v8 = vadd.f32 %v1820_v21, %v1779_v46  ;;  %v3877_v3 = vld [vmem:[#allocation8 + $0x1e] ss:$0 sm:$0xff] }
0x10d9   :  { %v1900_v5 = vadd.f32 %v1896_v26, %v1855_v22  ;;  %v1856_v38 = vadd.f32 %v1852_v9, %v1824_v8 }
0x10db   :  { %v1901_v60 = vadd.f32 %v1897_v25, %v1856_v38 }
0x10f6   :  { %v1936_v6 = vpop.permute.xlu1 %1935  ;;  %v1934_v48 = vpop.permute.xlu0 %1933 }
0x10f7   :  { %v1941_v31 = vsel %vm1850_vm4, %v1934_v48, %v1936_v6 }
0x10f8   :  { %v1945_v37 = vadd.f32 %v1941_v31, %v1900_v5 }
0x10fa   :  { %v1947_v61 = vmax.f32 %v1945_v37, 0.0  ;;  %v1940_v49 = vpop.permute.xlu1 %1939  ;;  %v1938_v35 = vpop.permute.xlu0 %1937 }
0x10fb   :  { %v1942_v55 = vsel %vm1850_vm4, %v1938_v35, %v1940_v49 }
0x10fc   :  { %v1951_v47 = vrot.slane %v1947_v61, 7  ;;  %v1946_v33 = vadd.f32 %v1942_v55, %v1901_v60  ;;  %v3878_v61 = vld [vmem:[#allocation8 + $0x1] ss:$0 sm:$0xff] }
0x10fe   :  { %v1948_v28 = vmax.f32 %v1946_v33, 0.0  ;;  %1954 = vrot.lane.b32.xlu0 %v1951_v47, %s4075_s25 }
0x1100   :  { %v1952_v43 = vrot.slane %v1948_v28, 7 }
0x1102   :  { %1958 = vrot.lane.b32.xlu0 %v1952_v43, %s4075_s25  ;;  %v1953_v51 = vsel %vm81_vm7, %v1951_v47, %v1952_v43 }
0x1103   :  { %1956 = vrot.lane.b32.xlu1 %v1953_v51, %s4075_s25 }
0x1106   :  { %2018 = vrot.lane.b32.xlu0 %v3876_v4, %s4078_s2 }
0x1107   :  { %1987 = vrot.lane.b32.xlu1 %v3875_v10, %s4078_s2 }
0x1170   :  { %v1955_v50 = vpop.permute.xlu0 %1954 }
0x1171   :  { %1963 = vst.msk [vmem:[#allocation2] sm:$0xfe] %vm94_vm8, %v1955_v50 }
0x1172   :  { %1964 = vst.msk [vmem:[#allocation2 + $0x8] sm:$0xfe] %vm67_vm0, %v1955_v50  ;;  %vm6841_vm0 = vcmask 1006592  }
0x1173   :  { %vm6852_vm7 = vmmov %vm6841_vm0 }
0x1174   :  { %v1959_v23 = vpop.permute.xlu0 %1958  ;;  %vm6855_vm8 = vmmov %vm6841_vm0 }
0x1175   :  { %1967 = vst.msk [vmem:[#allocation2 + $0x20] sm:$0x1] %vm100_vm9, %v1959_v23  ;;  %v1957_v52 = vpop.permute.xlu1 %1956  ;;  %vm6858_vm9 = vcmask 998400  }
0x1176   :  { %1968 = vst.msk [vmem:[#allocation2 + $0x28] sm:$0x1] %vm71_vm2, %v1959_v23  ;;  %v3879_v23 = vld [vmem:[#allocation8 + $0x10] ss:$0 sm:$0xff]  ;;  %vm6846_vm2 = vmmov %vm6841_vm0 }
0x1177   :  { %1965 = vst.msk [vmem:[#allocation2 + $0x10] sm:$0xff] %vm97_vm10, %v1957_v52  ;;  %vm6861_vm10 = vmmov %vm6841_vm0 }
0x1178   :  { %1966 = vst.msk [vmem:[#allocation2 + $0x18] sm:$0xff] %vm69_vm5, %v1957_v52  ;;  %v5482_v11 = vld [vmem:[#allocation2] sm:$0xff]  ;;  %v2019_v57 = vpop.permute.xlu0 %2018  ;;  %vm6849_vm5 = vmmov %vm6841_vm0 }
0x1179   :  { %v5484_v36 = vld [vmem:[#allocation2 + $0x8] sm:$0xff]  ;;  %v1988_v53 = vpop.permute.xlu1 %1987  ;;  %v2021_v54 = vmul.f32 %v2019_v57, %v5482_v11 }
0x117a   :  { %v1991_v12 = vmul.f32 %v1988_v53, %v5484_v36  ;;  %v1990_v29 = vmul.f32 %v1988_v53, %v5482_v11  ;;  %v2022_v14 = vmul.f32 %v2019_v57, %v5484_v36 }
0x117b   :  { %v2033_v19 = vrot.slane %v2021_v54, 1 }
0x117c   :  { %v5488_v44 = vld [vmem:[#allocation2 + $0x20] sm:$0x3]  ;;  %2000 = vrot.lane.b32.xlu1 %v1991_v12, %s4083_s27  ;;  %1998 = vrot.lane.b32.xlu0 %v1990_v29, %s4083_s27  ;;  %v2036_v45 = vrot.slane %v2022_v14, 1 }
0x117d   :  { %v5490_v7 = vld [vmem:[#allocation2 + $0x28] sm:$0x3]  ;;  %v2025_v63 = vmul.f32 %v2019_v57, %v5488_v44 }
0x117e   :  { %v5496_v13 = vld [vmem:[#allocation2 + $0x10] sm:$0xff]  ;;  %v2026_v17 = vmul.f32 %v2019_v57, %v5490_v7 }
0x117f   :  { %v5498_v56 = vld [vmem:[#allocation2 + $0x18] sm:$0xff]  ;;  %v1992_v39 = vmul.f32 %v1988_v53, %v5496_v13  ;;  %v2023_v58 = vmul.f32 %v2019_v57, %v5496_v13  ;;  %v2039_v32 = vrot.slane %v2025_v63, 1 }
0x1180   :  { %v1993_v16 = vmul.f32 %v1988_v53, %v5498_v56  ;;  %v2024_v62 = vmul.f32 %v2019_v57, %v5498_v56  ;;  %v2041_v15 = vrot.slane %v2026_v17, 1 }
0x1181   :  { %2002 = vrot.lane.b32.xlu0 %v1992_v39, %s4083_s27  ;;  %v2034_v59 = vrot.slane %v2023_v58, 1 }
0x1182   :  { %2004 = vrot.lane.b32.xlu1 %v1993_v16, %s4083_s27  ;;  %v2037_v34 = vrot.slane %v2024_v62, 1 }
0x1183   :  { %v2035_v42 = vsel %vm168_vm11, %v2033_v19, %v2034_v59  ;;  %v2040_v20 = vsel %vm168_vm11, %v2034_v59, %v2039_v32 }
0x1184   :  { %v2038_v18 = vsel %vm168_vm11, %v2036_v45, %v2037_v34  ;;  %v2042_v1 = vsel %vm168_vm11, %v2037_v34, %v2041_v15 }
0x1185   :  { %2045 = vrot.lane.b32.xlu0 %v2038_v18, %s4083_s27 }
0x1186   :  { %2043 = vrot.lane.b32.xlu1 %v2035_v42, %s4083_s27 }
0x1189   :  { %2049 = vrot.lane.b32.xlu0 %v2042_v1, %s4083_s27  ;;  %v3880_v1 = vld [vmem:[#allocation8 + $0x1f] ss:$0 sm:$0xff] }
0x118a   :  { %2047 = vrot.lane.b32.xlu1 %v2040_v20, %s4083_s27 }
0x118e   :  { %2063 = vrot.lane.b32.xlu1 %v3877_v3, %s4078_s2 }
0x11ee   :  { %v5517_v30 = vpop.permute.xlu1 %2000  ;;  %v5540_v49 = vpop.permute.xlu0 %1998 }
0x11f3   :  { %v5542_v35 = vpop.permute.xlu0 %2002 }
0x11f4   :  { %v5519_v40 = vpop.permute.xlu1 %2004 }
0x11f7   :  { %v5544_v55 = vpop.permute.xlu0 %2045 }
0x11f8   :  { %v5521_v0 = vpop.permute.xlu1 %2043 }
0x11fb   :  { %v5546_v47 = vpop.permute.xlu0 %2049 }
0x11fc   :  { %v5523_v2 = vpop.permute.xlu1 %2047 }
0x1200   :  { %v2064_v41 = vpop.permute.xlu1 %2063 }
0x1201   :  { %v2067_v21 = vmul.f32 %v2064_v41, %v5484_v36  ;;  %v2069_v26 = vmul.f32 %v2064_v41, %v5498_v56  ;;  %v2066_v46 = vmul.f32 %v2064_v41, %v5482_v11  ;;  %v2068_v22 = vmul.f32 %v2064_v41, %v5496_v13 }
0x1202   :  { %v2071_v24 = vmul.f32 %v2064_v41, %v5490_v7  ;;  %v2070_v9 = vmul.f32 %v2064_v41, %v5488_v44 }
0x1203   :  { %v2081_v8 = vrot.slane %v2067_v21, 2  ;;  %v2082_v5 = vrot.slane %v2069_v26, 2  ;;  %v2078_v6 = vrot.slane %v2066_v46, 2  ;;  %v2079_v48 = vrot.slane %v2068_v22, 2 }
0x1204   :  { %v2086_v31 = vrot.slane %v2071_v24, 2  ;;  %v2084_v38 = vrot.slane %v2070_v9, 2 }
0x1205   :  { %v2083_v27 = vsel %vm214_vm12, %v2081_v8, %v2082_v5  ;;  %v2080_v25 = vsel %vm214_vm12, %v2078_v6, %v2079_v48 }
0x1206   :  { %2090 = vrot.lane.b32.xlu1 %v2083_v27, %s4083_s27  ;;  %2088 = vrot.lane.b32.xlu0 %v2080_v25, %s4083_s27  ;;  %v2087_v37 = vsel %vm214_vm12, %v2082_v5, %v2086_v31  ;;  %v2085_v60 = vsel %vm214_vm12, %v2079_v48, %v2084_v38 }
0x120a   :  { %2094 = vrot.lane.b32.xlu1 %v2087_v37, %s4083_s27  ;;  %2092 = vrot.lane.b32.xlu0 %v2085_v60, %s4083_s27 }
0x120e   :  { %2108 = vrot.lane.b32.xlu0 %v3878_v61, %s4079_s21 }
0x1278   :  { %v5548_v33 = vpop.permute.xlu0 %2088  ;;  %v5561_v52 = vpop.permute.xlu1 %2090 }
0x127c   :  { %v5550_v28 = vpop.permute.xlu0 %2092  ;;  %v5563_v57 = vpop.permute.xlu1 %2094 }
0x1280   :  { %v2109_v43 = vpop.permute.xlu0 %2108 }
0x1281   :  { %v2112_v51 = vmul.f32 %v2109_v43, %v5484_v36  ;;  %v2111_v4 = vmul.f32 %v2109_v43, %v5482_v11  ;;  %v2114_v10 = vmul.f32 %v2109_v43, %v5498_v56  ;;  %v2113_v50 = vmul.f32 %v2109_v43, %v5496_v13 }
0x1283   :  { %2121 = vrot.lane.b32.xlu0 %v2112_v51, %s4084_s28  ;;  %2119 = vrot.lane.b32.xlu1 %v2111_v4, %s4084_s28  ;;  %v3881_v51 = vld [vmem:[#allocation8 + $0x2] ss:$0 sm:$0xff] }
0x1287   :  { %2125 = vrot.lane.b32.xlu0 %v2114_v10, %s4084_s28  ;;  %2123 = vrot.lane.b32.xlu1 %v2113_v50, %s4084_s28 }
0x128b   :  { %2139 = vrot.lane.b32.xlu1 %v3879_v23, %s4079_s21 }
0x12f5   :  { %v5565_v53 = vpop.permute.xlu1 %2119  ;;  %v5584_v20 = vpop.permute.xlu0 %2121 }
0x12f9   :  { %v5567_v12 = vpop.permute.xlu1 %2123  ;;  %v5586_v3 = vpop.permute.xlu0 %2125 }
0x12fd   :  { %v2140_v29 = vpop.permute.xlu1 %2139 }
0x12fe   :  { %v2143_v14 = vmul.f32 %v2140_v29, %v5484_v36  ;;  %v2145_v54 = vmul.f32 %v2140_v29, %v5498_v56  ;;  %v2142_v16 = vmul.f32 %v2140_v29, %v5482_v11  ;;  %v2144_v39 = vmul.f32 %v2140_v29, %v5496_v13 }
0x12ff   :  { %v2147_v62 = vmul.f32 %v2140_v29, %v5490_v7  ;;  %v2146_v58 = vmul.f32 %v2140_v29, %v5488_v44 }
0x1300   :  { %v2157_v17 = vrot.slane %v2143_v14, 1  ;;  %v2158_v63 = vrot.slane %v2145_v54, 1  ;;  %v2154_v45 = vrot.slane %v2142_v16, 1  ;;  %v2155_v34 = vrot.slane %v2144_v39, 1 }
0x1301   :  { %v2162_v18 = vrot.slane %v2147_v62, 1  ;;  %v2160_v42 = vrot.slane %v2146_v58, 1  ;;  %v3882_v62 = vld [vmem:[#allocation8 + $0x11] ss:$0 sm:$0xff] }
0x1302   :  { %v2159_v19 = vsel %vm168_vm11, %v2157_v17, %v2158_v63  ;;  %v2156_v59 = vsel %vm168_vm11, %v2154_v45, %v2155_v34 }
0x1303   :  { %2166 = vrot.lane.b32.xlu1 %v2159_v19, %s4084_s28  ;;  %2164 = vrot.lane.b32.xlu0 %v2156_v59, %s4084_s28  ;;  %v2163_v15 = vsel %vm168_vm11, %v2158_v63, %v2162_v18  ;;  %v2161_v32 = vsel %vm168_vm11, %v2155_v34, %v2160_v42 }
0x1307   :  { %2170 = vrot.lane.b32.xlu1 %v2163_v15, %s4084_s28  ;;  %2168 = vrot.lane.b32.xlu0 %v2161_v32, %s4084_s28 }
0x130b   :  { %2184 = vrot.lane.b32.xlu0 %v3880_v1, %s4079_s21 }
0x1375   :  { %v5588_v41 = vpop.permute.xlu0 %2164  ;;  %v5607_v4 = vpop.permute.xlu1 %2166 }
0x1379   :  { %v5590_v21 = vpop.permute.xlu0 %2168  ;;  %v5609_v10 = vpop.permute.xlu1 %2170 }
0x137d   :  { %v2185_v26 = vpop.permute.xlu0 %2184 }
0x137e   :  { %v2188_v46 = vmul.f32 %v2185_v26, %v5484_v36  ;;  %v2190_v22 = vmul.f32 %v2185_v26, %v5498_v56  ;;  %v2187_v24 = vmul.f32 %v2185_v26, %v5482_v11  ;;  %v2189_v9 = vmul.f32 %v2185_v26, %v5496_v13 }
0x137f   :  { %v2192_v8 = vmul.f32 %v2185_v26, %v5490_v7  ;;  %v2191_v5 = vmul.f32 %v2185_v26, %v5488_v44 }
0x1380   :  { %v2202_v6 = vrot.slane %v2188_v46, 2  ;;  %v2203_v48 = vrot.slane %v2190_v22, 2  ;;  %v2199_v27 = vrot.slane %v2187_v24, 2  ;;  %v2200_v25 = vrot.slane %v2189_v9, 2 }
0x1381   :  { %v2207_v37 = vrot.slane %v2192_v8, 2  ;;  %v2205_v60 = vrot.slane %v2191_v5, 2 }
0x1382   :  { %v2204_v31 = vsel %vm214_vm12, %v2202_v6, %v2203_v48  ;;  %v2201_v38 = vsel %vm214_vm12, %v2199_v27, %v2200_v25  ;;  %v3883_v27 = vld [vmem:[#allocation8 + $0x20] ss:$0 sm:$0xff] }
0x1383   :  { %2211 = vrot.lane.b32.xlu0 %v2204_v31, %s4084_s28  ;;  %2209 = vrot.lane.b32.xlu1 %v2201_v38, %s4084_s28  ;;  %v2208_v61 = vsel %vm214_vm12, %v2203_v48, %v2207_v37  ;;  %v2206_v43 = vsel %vm214_vm12, %v2200_v25, %v2205_v60 }
0x1387   :  { %2215 = vrot.lane.b32.xlu0 %v2208_v61, %s4084_s28  ;;  %2213 = vrot.lane.b32.xlu1 %v2206_v43, %s4084_s28 }
0x138b   :  { %2229 = vrot.lane.b32.xlu1 %v3881_v51, %s4080_s22 }
0x13f5   :  { %v5611_v50 = vpop.permute.xlu1 %2209  ;;  %v5624_v58 = vpop.permute.xlu0 %2211 }
0x13f9   :  { %v5613_v23 = vpop.permute.xlu1 %2213  ;;  %v5626_v17 = vpop.permute.xlu0 %2215 }
0x13fd   :  { %v2230_v29 = vpop.permute.xlu1 %2229 }
0x13fe   :  { %v2233_v14 = vmul.f32 %v2230_v29, %v5484_v36  ;;  %v2232_v54 = vmul.f32 %v2230_v29, %v5482_v11  ;;  %v2235_v16 = vmul.f32 %v2230_v29, %v5498_v56  ;;  %v2234_v39 = vmul.f32 %v2230_v29, %v5496_v13 }
0x1400   :  { %2242 = vrot.lane.b32.xlu1 %v2233_v14, %s4085_s29  ;;  %2240 = vrot.lane.b32.xlu0 %v2232_v54, %s4085_s29 }
0x1404   :  { %2246 = vrot.lane.b32.xlu1 %v2235_v16, %s4085_s29  ;;  %2244 = vrot.lane.b32.xlu0 %v2234_v39, %s4085_s29 }
0x1408   :  { %2260 = vrot.lane.b32.xlu0 %v3882_v62, %s4080_s22 }
0x1472   :  { %v5628_v63 = vpop.permute.xlu0 %2240  ;;  %v5647_v25 = vpop.permute.xlu1 %2242 }
0x1476   :  { %v5630_v45 = vpop.permute.xlu0 %2244  ;;  %v5649_v31 = vpop.permute.xlu1 %2246 }
0x147a   :  { %v2261_v34 = vpop.permute.xlu0 %2260 }
0x147b   :  { %v2264_v19 = vmul.f32 %v2261_v34, %v5484_v36  ;;  %v2266_v59 = vmul.f32 %v2261_v34, %v5498_v56  ;;  %v2263_v18 = vmul.f32 %v2261_v34, %v5482_v11  ;;  %v2265_v42 = vmul.f32 %v2261_v34, %v5496_v13 }
0x147c   :  { %v2268_v15 = vmul.f32 %v2261_v34, %v5490_v7  ;;  %v2267_v32 = vmul.f32 %v2261_v34, %v5488_v44 }
0x147d   :  { %v2278_v1 = vrot.slane %v2264_v19, 1  ;;  %v2279_v26 = vrot.slane %v2266_v59, 1  ;;  %v2275_v46 = vrot.slane %v2263_v18, 1  ;;  %v2276_v22 = vrot.slane %v2265_v42, 1 }
0x147e   :  { %v2283_v8 = vrot.slane %v2268_v15, 1  ;;  %v2281_v5 = vrot.slane %v2267_v32, 1 }
0x147f   :  { %v2280_v24 = vsel %vm168_vm11, %v2278_v1, %v2279_v26  ;;  %v2277_v9 = vsel %vm168_vm11, %v2275_v46, %v2276_v22  ;;  %v3884_v1 = vld [vmem:[#allocation8 + $0x3] ss:$0 sm:$0xff] }
0x1480   :  { %2287 = vrot.lane.b32.xlu0 %v2280_v24, %s4085_s29  ;;  %2285 = vrot.lane.b32.xlu1 %v2277_v9, %s4085_s29  ;;  %v2284_v6 = vsel %vm168_vm11, %v2279_v26, %v2283_v8  ;;  %v2282_v48 = vsel %vm168_vm11, %v2276_v22, %v2281_v5 }
0x1484   :  { %2291 = vrot.lane.b32.xlu0 %v2284_v6, %s4085_s29  ;;  %2289 = vrot.lane.b32.xlu1 %v2282_v48, %s4085_s29 }
0x1488   :  { %2305 = vrot.lane.b32.xlu1 %v3883_v27, %s4080_s22  ;;  %v3885_v27 = vld [vmem:[#allocation8 + $0x12] ss:$0 sm:$0xff] }
0x14f2   :  { %v5651_v38 = vpop.permute.xlu1 %2285  ;;  %v5670_v26 = vpop.permute.xlu0 %2287 }
0x14f6   :  { %v5653_v37 = vpop.permute.xlu1 %2289  ;;  %v5672_v46 = vpop.permute.xlu0 %2291 }
0x14fa   :  { %v2306_v60 = vpop.permute.xlu1 %2305 }
0x14fb   :  { %v2309_v61 = vmul.f32 %v2306_v60, %v5484_v36  ;;  %v2311_v43 = vmul.f32 %v2306_v60, %v5498_v56  ;;  %v2308_v51 = vmul.f32 %v2306_v60, %v5482_v11  ;;  %v2310_v29 = vmul.f32 %v2306_v60, %v5496_v13 }
0x14fc   :  { %v2313_v14 = vmul.f32 %v2306_v60, %v5490_v7  ;;  %v2312_v54 = vmul.f32 %v2306_v60, %v5488_v44 }
0x14fd   :  { %v2323_v16 = vrot.slane %v2309_v61, 2  ;;  %v2324_v39 = vrot.slane %v2311_v43, 2  ;;  %v2320_v62 = vrot.slane %v2308_v51, 2  ;;  %v2321_v34 = vrot.slane %v2310_v29, 2 }
0x14fe   :  { %v2328_v18 = vrot.slane %v2313_v14, 2  ;;  %v2326_v42 = vrot.slane %v2312_v54, 2 }
0x14ff   :  { %v2325_v19 = vsel %vm214_vm12, %v2323_v16, %v2324_v39  ;;  %v2322_v59 = vsel %vm214_vm12, %v2320_v62, %v2321_v34 }
0x1500   :  { %2332 = vrot.lane.b32.xlu1 %v2325_v19, %s4085_s29  ;;  %2330 = vrot.lane.b32.xlu0 %v2322_v59, %s4085_s29  ;;  %v2329_v15 = vsel %vm214_vm12, %v2324_v39, %v2328_v18  ;;  %v2327_v32 = vsel %vm214_vm12, %v2321_v34, %v2326_v42 }
0x1504   :  { %2336 = vrot.lane.b32.xlu1 %v2329_v15, %s4085_s29  ;;  %2334 = vrot.lane.b32.xlu0 %v2327_v32, %s4085_s29 }
0x1508   :  { %2350 = vrot.lane.b32.xlu0 %v3884_v1, %s4081_s23 }
0x1572   :  { %v5674_v22 = vpop.permute.xlu0 %2330  ;;  %v5687_v60 = vpop.permute.xlu1 %2332 }
0x1576   :  { %v5676_v24 = vpop.permute.xlu0 %2334  ;;  %v5689_v61 = vpop.permute.xlu1 %2336 }
0x157a   :  { %v2351_v9 = vpop.permute.xlu0 %2350 }
0x157b   :  { %v2354_v8 = vmul.f32 %v2351_v9, %v5484_v36  ;;  %v2353_v5 = vmul.f32 %v2351_v9, %v5482_v11  ;;  %v2356_v6 = vmul.f32 %v2351_v9, %v5498_v56  ;;  %v2355_v48 = vmul.f32 %v2351_v9, %v5496_v13 }
0x157d   :  { %2363 = vrot.lane.b32.xlu0 %v2354_v8, %s4086_s30  ;;  %2361 = vrot.lane.b32.xlu1 %v2353_v5, %s4086_s30 }
0x1581   :  { %2367 = vrot.lane.b32.xlu0 %v2356_v6, %s4086_s30  ;;  %2365 = vrot.lane.b32.xlu1 %v2355_v48, %s4086_s30  ;;  %v3886_v6 = vld [vmem:[#allocation8 + $0x21] ss:$0 sm:$0xff] }
0x1585   :  { %2381 = vrot.lane.b32.xlu1 %v3885_v27, %s4081_s23 }
0x15ef   :  { %v5691_v43 = vpop.permute.xlu1 %2361  ;;  %v5710_v48 = vpop.permute.xlu0 %2363 }
0x15f3   :  { %v5693_v51 = vpop.permute.xlu1 %2365  ;;  %v5712_v27 = vpop.permute.xlu0 %2367 }
0x15f4   :  { %6773 = vst [vmem:[#allocation18_spill] sm:$0xff] %v5693_v51 }
0x15f7   :  { %v2382_v29 = vpop.permute.xlu1 %2381 }
0x15f8   :  { %v2385_v14 = vmul.f32 %v2382_v29, %v5484_v36  ;;  %v2387_v54 = vmul.f32 %v2382_v29, %v5498_v56  ;;  %v2384_v16 = vmul.f32 %v2382_v29, %v5482_v11  ;;  %v2386_v39 = vmul.f32 %v2382_v29, %v5496_v13 }
0x15f9   :  { %v2389_v62 = vmul.f32 %v2382_v29, %v5490_v7  ;;  %v2388_v34 = vmul.f32 %v2382_v29, %v5488_v44 }
0x15fa   :  { %v2399_v19 = vrot.slane %v2385_v14, 1  ;;  %v2400_v59 = vrot.slane %v2387_v54, 1  ;;  %v2396_v18 = vrot.slane %v2384_v16, 1  ;;  %v2397_v42 = vrot.slane %v2386_v39, 1 }
0x15fb   :  { %v2404_v1 = vrot.slane %v2389_v62, 1  ;;  %v2402_v9 = vrot.slane %v2388_v34, 1 }
0x15fc   :  { %v2401_v15 = vsel %vm168_vm11, %v2399_v19, %v2400_v59  ;;  %v2398_v32 = vsel %vm168_vm11, %v2396_v18, %v2397_v42 }
0x15fd   :  { %2408 = vrot.lane.b32.xlu1 %v2401_v15, %s4086_s30  ;;  %2406 = vrot.lane.b32.xlu0 %v2398_v32, %s4086_s30  ;;  %v2405_v8 = vsel %vm168_vm11, %v2400_v59, %v2404_v1  ;;  %v2403_v5 = vsel %vm168_vm11, %v2397_v42, %v2402_v9 }
0x1601   :  { %2412 = vrot.lane.b32.xlu1 %v2405_v8, %s4086_s30  ;;  %2410 = vrot.lane.b32.xlu0 %v2403_v5, %s4086_s30 }
0x1605   :  { %2426 = vrot.lane.b32.xlu0 %v3886_v6, %s4081_s23 }
0x166f   :  { %v5714_v29 = vpop.permute.xlu0 %2406 }
0x1673   :  { %v5716_v14 = vpop.permute.xlu0 %2410 }
0x1674   :  { %6774 = vst [vmem:[#allocation22_spill] sm:$0xff] %v5716_v14 }
0x1677   :  { %v2427_v54 = vpop.permute.xlu0 %2426 }
0x1678   :  { %v2430_v16 = vmul.f32 %v2427_v54, %v5484_v36  ;;  %v2432_v39 = vmul.f32 %v2427_v54, %v5498_v56  ;;  %v2429_v62 = vmul.f32 %v2427_v54, %v5482_v11  ;;  %v2431_v34 = vmul.f32 %v2427_v54, %v5496_v13 }
0x1679   :  { %v2434_v19 = vmul.f32 %v2427_v54, %v5490_v7  ;;  %v2433_v59 = vmul.f32 %v2427_v54, %v5488_v44  ;;  %v3887_v54 = vld [vmem:[#allocation8 + $0x4] ss:$0 sm:$0xff] }
0x167a   :  { %v2444_v18 = vrot.slane %v2430_v16, 2  ;;  %v2445_v42 = vrot.slane %v2432_v39, 2  ;;  %v2441_v15 = vrot.slane %v2429_v62, 2  ;;  %v2442_v32 = vrot.slane %v2431_v34, 2  ;;  %v5733_v16 = vpop.permute.xlu1 %2408 }
0x167b   :  { %v2449_v8 = vrot.slane %v2434_v19, 2  ;;  %v2447_v5 = vrot.slane %v2433_v59, 2 }
0x167c   :  { %v2446_v1 = vsel %vm214_vm12, %v2444_v18, %v2445_v42  ;;  %v2443_v9 = vsel %vm214_vm12, %v2441_v15, %v2442_v32  ;;  %v3888_v15 = vld [vmem:[#allocation8 + $0x13] ss:$0 sm:$0xff] }
0x167d   :  { %2453 = vrot.lane.b32.xlu0 %v2446_v1, %s4086_s30  ;;  %2451 = vrot.lane.b32.xlu1 %v2443_v9, %s4086_s30  ;;  %v2450_v6 = vsel %vm214_vm12, %v2445_v42, %v2449_v8  ;;  %v2448_v14 = vsel %vm214_vm12, %v2442_v32, %v2447_v5 }
0x167e   :  { %v5735_v39 = vpop.permute.xlu1 %2412 }
0x167f   :  { %6775 = vst [vmem:[#allocation14_spill] sm:$0xff] %v5735_v39 }
0x1681   :  { %2457 = vrot.lane.b32.xlu0 %v2450_v6, %s4086_s30  ;;  %2455 = vrot.lane.b32.xlu1 %v2448_v14, %s4086_s30 }
0x1685   :  { %2471 = vrot.lane.b32.xlu1 %v3887_v54, %s4082_s26 }
0x16ef   :  { %v5737_v62 = vpop.permute.xlu1 %2451  ;;  %v5750_v32 = vpop.permute.xlu0 %2453 }
0x16f0   :  { %6776 = vst [vmem:[#allocation17_spill] sm:$0xff] %v5737_v62  ;;  %6778 = vst [vmem:[#allocation25_spill] sm:$0xff] %v5750_v32 }
0x16f3   :  { %v5739_v34 = vpop.permute.xlu1 %2455  ;;  %v5752_v1 = vpop.permute.xlu0 %2457 }
0x16f4   :  { %6777 = vst [vmem:[#allocation24_spill] sm:$0xff] %v5739_v34  ;;  %6779 = vst [vmem:[#allocation19_spill] sm:$0xff] %v5752_v1 }
0x16f7   :  { %v2472_v19 = vpop.permute.xlu1 %2471 }
0x16f8   :  { %v2475_v59 = vmul.f32 %v2472_v19, %v5484_v36  ;;  %v2474_v18 = vmul.f32 %v2472_v19, %v5482_v11  ;;  %v2477_v14 = vmul.f32 %v2472_v19, %v5498_v56  ;;  %v2476_v42 = vmul.f32 %v2472_v19, %v5496_v13 }
0x16fa   :  { %2484 = vrot.lane.b32.xlu1 %v2475_v59, %s4087_s4  ;;  %2482 = vrot.lane.b32.xlu0 %v2474_v18, %s4087_s4 }
0x16fe   :  { %2488 = vrot.lane.b32.xlu1 %v2477_v14, %s4087_s4  ;;  %2486 = vrot.lane.b32.xlu0 %v2476_v42, %s4087_s4 }
0x1702   :  { %2502 = vrot.lane.b32.xlu0 %v3888_v15, %s4082_s26 }
0x176c   :  { %v5754_v9 = vpop.permute.xlu0 %2482 }
0x176d   :  { %6780 = vst [vmem:[#allocation13_spill] sm:$0xff] %v5754_v9 }
0x1770   :  { %v5756_v8 = vpop.permute.xlu0 %2486 }
0x1771   :  { %6781 = vst [vmem:[#allocation16_spill] sm:$0xff] %v5756_v8 }
0x1774   :  { %v2503_v5 = vpop.permute.xlu0 %2502 }
0x1775   :  { %v2506_v6 = vmul.f32 %v2503_v5, %v5484_v36  ;;  %v2508_v54 = vmul.f32 %v2503_v5, %v5498_v56  ;;  %v2505_v19 = vmul.f32 %v2503_v5, %v5482_v11  ;;  %v2507_v59 = vmul.f32 %v2503_v5, %v5496_v13 }
0x1776   :  { %v2510_v18 = vmul.f32 %v2503_v5, %v5490_v7  ;;  %v2509_v14 = vmul.f32 %v2503_v5, %v5488_v44  ;;  %v3889_v5 = vld [vmem:[#allocation8 + $0x22] ss:$0 sm:$0xff] }
0x1777   :  { %v2520_v42 = vrot.slane %v2506_v6, 1  ;;  %v2521_v15 = vrot.slane %v2508_v54, 1  ;;  %v2517_v34 = vrot.slane %v2505_v19, 1  ;;  %v2518_v1 = vrot.slane %v2507_v59, 1  ;;  %v5773_v6 = vpop.permute.xlu1 %2484 }
0x1778   :  { %v2525_v39 = vrot.slane %v2510_v18, 1  ;;  %v2523_v62 = vrot.slane %v2509_v14, 1  ;;  %6782 = vst [vmem:[#allocation26_spill] sm:$0xff] %v5773_v6 }
0x1779   :  { %v2522_v9 = vsel %vm168_vm11, %v2520_v42, %v2521_v15  ;;  %v2519_v8 = vsel %vm168_vm11, %v2517_v34, %v2518_v1 }
0x177a   :  { %2529 = vrot.lane.b32.xlu0 %v2522_v9, %s4087_s4  ;;  %2527 = vrot.lane.b32.xlu1 %v2519_v8, %s4087_s4  ;;  %v2526_v32 = vsel %vm168_vm11, %v2521_v15, %v2525_v39  ;;  %v2524_v51 = vsel %vm168_vm11, %v2518_v1, %v2523_v62 }
0x177b   :  { %v5775_v34 = vpop.permute.xlu1 %2488 }
0x177c   :  { %6783 = vst [vmem:[#allocation20_spill] sm:$0xff] %v5775_v34 }
0x177e   :  { %2533 = vrot.lane.b32.xlu0 %v2526_v32, %s4087_s4  ;;  %2531 = vrot.lane.b32.xlu1 %v2524_v51, %s4087_s4 }
0x1782   :  { %2547 = vrot.lane.b32.xlu1 %v3889_v5, %s4082_s26 }
0x17ec   :  { %v5777_v54 = vpop.permute.xlu1 %2527 }
0x17ed   :  { %6784 = vst [vmem:[#allocation30_spill] sm:$0xff] %v5777_v54 }
0x17f0   :  { %v5779_v9 = vpop.permute.xlu1 %2531 }
0x17f1   :  { %6785 = vst [vmem:[#allocation28_spill] sm:$0xff] %v5779_v9 }
0x17f4   :  { %v2548_v8 = vpop.permute.xlu1 %2547 }
0x17f5   :  { %v2551_v39 = vmul.f32 %v2548_v8, %v5484_v36  ;;  %v2553_v62 = vmul.f32 %v2548_v8, %v5498_v56  ;;  %v2550_v32 = vmul.f32 %v2548_v8, %v5482_v11  ;;  %v2552_v51 = vmul.f32 %v2548_v8, %v5496_v13 }
0x17f6   :  { %v2555_v1 = vmul.f32 %v2548_v8, %v5490_v7  ;;  %v2554_v19 = vmul.f32 %v2548_v8, %v5488_v44  ;;  %v3890_v8 = vld [vmem:[#allocation8 + $0x5] ss:$0 sm:$0xff] }
0x17f7   :  { %v2565_v59 = vrot.slane %v2551_v39, 2  ;;  %v2566_v18 = vrot.slane %v2553_v62, 2  ;;  %v2562_v14 = vrot.slane %v2550_v32, 2  ;;  %v2563_v42 = vrot.slane %v2552_v51, 2  ;;  %v5796_v39 = vpop.permute.xlu0 %2529 }
0x17f8   :  { %v2570_v9 = vrot.slane %v2555_v1, 2  ;;  %v2568_v34 = vrot.slane %v2554_v19, 2  ;;  %6786 = vst [vmem:[#allocation15_spill] sm:$0xff] %v5796_v39  ;;  %v3891_v19 = vld [vmem:[#allocation8 + $0x14] ss:$0 sm:$0xff] }
0x17f9   :  { %v2567_v15 = vsel %vm214_vm12, %v2565_v59, %v2566_v18  ;;  %v2564_v5 = vsel %vm214_vm12, %v2562_v14, %v2563_v42 }
0x17fa   :  { %2574 = vrot.lane.b32.xlu1 %v2567_v15, %s4087_s4  ;;  %2572 = vrot.lane.b32.xlu0 %v2564_v5, %s4087_s4  ;;  %v2571_v54 = vsel %vm214_vm12, %v2566_v18, %v2570_v9  ;;  %v2569_v6 = vsel %vm214_vm12, %v2563_v42, %v2568_v34 }
0x17fb   :  { %v5798_v62 = vpop.permute.xlu0 %2533 }
0x17fc   :  { %6787 = vst [vmem:[#allocation23_spill] sm:$0xff] %v5798_v62 }
0x17fe   :  { %2578 = vrot.lane.b32.xlu1 %v2571_v54, %s4087_s4  ;;  %2576 = vrot.lane.b32.xlu0 %v2569_v6, %s4087_s4 }
0x1802   :  { %2592 = vrot.lane.b32.xlu0 %v3890_v8, %s4088_s5 }
0x186c   :  { %v5800_v32 = vpop.permute.xlu0 %2572  ;;  %v5813_v59 = vpop.permute.xlu1 %2574 }
0x186d   :  { %6788 = vst [vmem:[#allocation27_spill] sm:$0xff] %v5800_v32  ;;  %6790 = vst [vmem:[#allocation34_spill] sm:$0xff] %v5813_v59 }
0x1870   :  { %v5802_v51 = vpop.permute.xlu0 %2576  ;;  %v5815_v18 = vpop.permute.xlu1 %2578 }
0x1871   :  { %6789 = vst [vmem:[#allocation21_spill] sm:$0xff] %v5802_v51  ;;  %6791 = vst [vmem:[#allocation32_spill] sm:$0xff] %v5815_v18 }
0x1874   :  { %v2593_v1 = vpop.permute.xlu0 %2592 }
0x1875   :  { %v2596_v9 = vmul.f32 %v2593_v1, %v5484_v36  ;;  %v2595_v34 = vmul.f32 %v2593_v1, %v5482_v11  ;;  %v2598_v6 = vmul.f32 %v2593_v1, %v5498_v56  ;;  %v2597_v54 = vmul.f32 %v2593_v1, %v5496_v13 }
0x1877   :  { %2605 = vrot.lane.b32.xlu0 %v2596_v9, %s4089_s6  ;;  %2603 = vrot.lane.b32.xlu1 %v2595_v34, %s4089_s6 }
0x187b   :  { %2609 = vrot.lane.b32.xlu0 %v2598_v6, %s4089_s6  ;;  %2607 = vrot.lane.b32.xlu1 %v2597_v54, %s4089_s6 }
0x187f   :  { %2623 = vrot.lane.b32.xlu1 %v3891_v19, %s4088_s5 }
0x18e9   :  { %v5817_v14 = vpop.permute.xlu1 %2603 }
0x18ea   :  { %6792 = vst [vmem:[#allocation31_spill] sm:$0xff] %v5817_v14 }
0x18ed   :  { %v5819_v42 = vpop.permute.xlu1 %2607 }
0x18ee   :  { %6793 = vst [vmem:[#allocation29_spill] sm:$0xff] %v5819_v42 }
0x18f1   :  { %v2624_v15 = vpop.permute.xlu1 %2623 }
0x18f2   :  { %v2627_v5 = vmul.f32 %v2624_v15, %v5484_v36  ;;  %v2629_v8 = vmul.f32 %v2624_v15, %v5498_v56  ;;  %v2626_v1 = vmul.f32 %v2624_v15, %v5482_v11  ;;  %v2628_v9 = vmul.f32 %v2624_v15, %v5496_v13 }
0x18f3   :  { %v2631_v34 = vmul.f32 %v2624_v15, %v5490_v7  ;;  %v2630_v6 = vmul.f32 %v2624_v15, %v5488_v44  ;;  %v3892_v15 = vld [vmem:[#allocation8 + $0x23] ss:$0 sm:$0xff] }
0x18f4   :  { %v2641_v54 = vrot.slane %v2627_v5, 1  ;;  %v2642_v19 = vrot.slane %v2629_v8, 1  ;;  %v2638_v51 = vrot.slane %v2626_v1, 1  ;;  %v2639_v18 = vrot.slane %v2628_v9, 1  ;;  %v5836_v5 = vpop.permute.xlu0 %2605 }
0x18f5   :  { %v2646_v62 = vrot.slane %v2631_v34, 1  ;;  %v2644_v32 = vrot.slane %v2630_v6, 1  ;;  %6794 = vst [vmem:[#allocation38_spill] sm:$0xff] %v5836_v5 }
0x18f6   :  { %v2643_v14 = vsel %vm168_vm11, %v2641_v54, %v2642_v19  ;;  %v2640_v42 = vsel %vm168_vm11, %v2638_v51, %v2639_v18 }
0x18f7   :  { %2650 = vrot.lane.b32.xlu1 %v2643_v14, %s4089_s6  ;;  %2648 = vrot.lane.b32.xlu0 %v2640_v42, %s4089_s6  ;;  %v2647_v59 = vsel %vm168_vm11, %v2642_v19, %v2646_v62  ;;  %v2645_v39 = vsel %vm168_vm11, %v2639_v18, %v2644_v32 }
0x18f8   :  { %v5838_v51 = vpop.permute.xlu0 %2609 }
0x18f9   :  { %6795 = vst [vmem:[#allocation36_spill] sm:$0xff] %v5838_v51 }
0x18fb   :  { %2654 = vrot.lane.b32.xlu1 %v2647_v59, %s4089_s6  ;;  %2652 = vrot.lane.b32.xlu0 %v2645_v39, %s4089_s6 }
0x18ff   :  { %2668 = vrot.lane.b32.xlu0 %v3892_v15, %s4088_s5 }
0x1969   :  { %v5840_v8 = vpop.permute.xlu0 %2648 }
0x196a   :  { %6796 = vst [vmem:[#allocation35_spill] sm:$0xff] %v5840_v8 }
0x196d   :  { %v5842_v14 = vpop.permute.xlu0 %2652 }
0x196e   :  { %6797 = vst [vmem:[#allocation33_spill] sm:$0xff] %v5842_v14 }
0x1971   :  { %v2669_v42 = vpop.permute.xlu0 %2668 }
0x1972   :  { %v2672_v62 = vmul.f32 %v2669_v42, %v5484_v36  ;;  %v2674_v32 = vmul.f32 %v2669_v42, %v5498_v56  ;;  %v2671_v59 = vmul.f32 %v2669_v42, %v5482_v11  ;;  %v2673_v39 = vmul.f32 %v2669_v42, %v5496_v13 }
0x1973   :  { %v2676_v18 = vmul.f32 %v2669_v42, %v5490_v7  ;;  %v2675_v1 = vmul.f32 %v2669_v42, %v5488_v44  ;;  %v3893_v42 = vld [vmem:[#allocation8 + $0x6] ss:$0 sm:$0xff] }
0x1974   :  { %v2686_v9 = vrot.slane %v2672_v62, 2  ;;  %v2687_v34 = vrot.slane %v2674_v32, 2  ;;  %v2683_v6 = vrot.slane %v2671_v59, 2  ;;  %v2684_v54 = vrot.slane %v2673_v39, 2  ;;  %v5859_v62 = vpop.permute.xlu1 %2650 }
0x1975   :  { %v2691_v14 = vrot.slane %v2676_v18, 2  ;;  %v2689_v51 = vrot.slane %v2675_v1, 2  ;;  %6798 = vst [vmem:[#allocation42_spill] sm:$0xff] %v5859_v62  ;;  %v3894_v1 = vld [vmem:[#allocation8 + $0x15] ss:$0 sm:$0xff] }
0x1976   :  { %v2688_v19 = vsel %vm214_vm12, %v2686_v9, %v2687_v34  ;;  %v2685_v15 = vsel %vm214_vm12, %v2683_v6, %v2684_v54 }
0x1977   :  { %2695 = vrot.lane.b32.xlu0 %v2688_v19, %s4089_s6  ;;  %2693 = vrot.lane.b32.xlu1 %v2685_v15, %s4089_s6  ;;  %v2692_v8 = vsel %vm214_vm12, %v2687_v34, %v2691_v14  ;;  %v2690_v5 = vsel %vm214_vm12, %v2684_v54, %v2689_v51 }
0x1978   :  { %v5861_v32 = vpop.permute.xlu1 %2654 }
0x1979   :  { %6799 = vst [vmem:[#allocation40_spill] sm:$0xff] %v5861_v32 }
0x197b   :  { %2699 = vrot.lane.b32.xlu0 %v2692_v8, %s4089_s6  ;;  %2697 = vrot.lane.b32.xlu1 %v2690_v5, %s4089_s6 }
0x197f   :  { %2713 = vrot.lane.b32.xlu1 %v3893_v42, %s4090_s7 }
0x19e9   :  { %v5863_v59 = vpop.permute.xlu1 %2693  ;;  %v5876_v9 = vpop.permute.xlu0 %2695 }
0x19ea   :  { %6800 = vst [vmem:[#allocation39_spill] sm:$0xff] %v5863_v59  ;;  %6802 = vst [vmem:[#allocation46_spill] sm:$0xff] %v5876_v9 }
0x19ed   :  { %v5865_v39 = vpop.permute.xlu1 %2697  ;;  %v5878_v34 = vpop.permute.xlu0 %2699 }
0x19ee   :  { %6801 = vst [vmem:[#allocation37_spill] sm:$0xff] %v5865_v39  ;;  %6803 = vst [vmem:[#allocation44_spill] sm:$0xff] %v5878_v34 }
0x19f1   :  { %v2714_v18 = vpop.permute.xlu1 %2713 }
0x19f2   :  { %v2717_v14 = vmul.f32 %v2714_v18, %v5484_v36  ;;  %v2716_v51 = vmul.f32 %v2714_v18, %v5482_v11  ;;  %v2719_v5 = vmul.f32 %v2714_v18, %v5498_v56  ;;  %v2718_v8 = vmul.f32 %v2714_v18, %v5496_v13 }
0x19f4   :  { %2726 = vrot.lane.b32.xlu1 %v2717_v14, %s4091_s8  ;;  %2724 = vrot.lane.b32.xlu0 %v2716_v51, %s4091_s8 }
0x19f8   :  { %2730 = vrot.lane.b32.xlu1 %v2719_v5, %s4091_s8  ;;  %2728 = vrot.lane.b32.xlu0 %v2718_v8, %s4091_s8 }
0x19fc   :  { %2744 = vrot.lane.b32.xlu0 %v3894_v1, %s4090_s7 }
0x1a66   :  { %v5880_v6 = vpop.permute.xlu0 %2724 }
0x1a67   :  { %6804 = vst [vmem:[#allocation43_spill] sm:$0xff] %v5880_v6 }
0x1a6a   :  { %v5882_v54 = vpop.permute.xlu0 %2728 }
0x1a6b   :  { %6805 = vst [vmem:[#allocation41_spill] sm:$0xff] %v5882_v54 }
0x1a6e   :  { %v2745_v19 = vpop.permute.xlu0 %2744 }
0x1a6f   :  { %v2748_v15 = vmul.f32 %v2745_v19, %v5484_v36  ;;  %v2750_v42 = vmul.f32 %v2745_v19, %v5498_v56  ;;  %v2747_v18 = vmul.f32 %v2745_v19, %v5482_v11  ;;  %v2749_v14 = vmul.f32 %v2745_v19, %v5496_v13 }
0x1a70   :  { %v2752_v51 = vmul.f32 %v2745_v19, %v5490_v7  ;;  %v2751_v5 = vmul.f32 %v2745_v19, %v5488_v44  ;;  %v3895_v19 = vld [vmem:[#allocation8 + $0x24] ss:$0 sm:$0xff] }
0x1a71   :  { %v2762_v8 = vrot.slane %v2748_v15, 1  ;;  %v2763_v1 = vrot.slane %v2750_v42, 1  ;;  %v2759_v39 = vrot.slane %v2747_v18, 1  ;;  %v2760_v34 = vrot.slane %v2749_v14, 1  ;;  %v5899_v15 = vpop.permute.xlu1 %2726 }
0x1a72   :  { %v2767_v32 = vrot.slane %v2752_v51, 1  ;;  %v2765_v59 = vrot.slane %v2751_v5, 1  ;;  %6806 = vst [vmem:[#allocation50_spill] sm:$0xff] %v5899_v15 }
0x1a73   :  { %v2764_v6 = vsel %vm168_vm11, %v2762_v8, %v2763_v1  ;;  %v2761_v54 = vsel %vm168_vm11, %v2759_v39, %v2760_v34 }
0x1a74   :  { %2771 = vrot.lane.b32.xlu0 %v2764_v6, %s4091_s8  ;;  %2769 = vrot.lane.b32.xlu1 %v2761_v54, %s4091_s8  ;;  %v2768_v9 = vsel %vm168_vm11, %v2763_v1, %v2767_v32  ;;  %v2766_v62 = vsel %vm168_vm11, %v2760_v34, %v2765_v59 }
0x1a75   :  { %v5901_v39 = vpop.permute.xlu1 %2730 }
0x1a76   :  { %6807 = vst [vmem:[#allocation48_spill] sm:$0xff] %v5901_v39 }
0x1a78   :  { %2775 = vrot.lane.b32.xlu0 %v2768_v9, %s4091_s8  ;;  %2773 = vrot.lane.b32.xlu1 %v2766_v62, %s4091_s8 }
0x1a7c   :  { %2789 = vrot.lane.b32.xlu1 %v3895_v19, %s4090_s7 }
0x1ae6   :  { %v5903_v42 = vpop.permute.xlu1 %2769 }
0x1ae7   :  { %6808 = vst [vmem:[#allocation47_spill] sm:$0xff] %v5903_v42 }
0x1aea   :  { %v5905_v6 = vpop.permute.xlu1 %2773 }
0x1aeb   :  { %6809 = vst [vmem:[#allocation45_spill] sm:$0xff] %v5905_v6 }
0x1aee   :  { %v2790_v54 = vpop.permute.xlu1 %2789 }
0x1aef   :  { %v2793_v32 = vmul.f32 %v2790_v54, %v5484_v36  ;;  %v2795_v59 = vmul.f32 %v2790_v54, %v5498_v56  ;;  %v2792_v9 = vmul.f32 %v2790_v54, %v5482_v11  ;;  %v2794_v62 = vmul.f32 %v2790_v54, %v5496_v13 }
0x1af0   :  { %v2797_v34 = vmul.f32 %v2790_v54, %v5490_v7  ;;  %v2796_v18 = vmul.f32 %v2790_v54, %v5488_v44  ;;  %v3896_v54 = vld [vmem:[#allocation8 + $0x7] ss:$0 sm:$0xff] }
0x1af1   :  { %v2807_v14 = vrot.slane %v2793_v32, 2  ;;  %v2808_v51 = vrot.slane %v2795_v59, 2  ;;  %v2804_v5 = vrot.slane %v2792_v9, 2  ;;  %v2805_v8 = vrot.slane %v2794_v62, 2  ;;  %v5922_v32 = vpop.permute.xlu0 %2771 }
0x1af2   :  { %v2812_v6 = vrot.slane %v2797_v34, 2  ;;  %v2810_v39 = vrot.slane %v2796_v18, 2  ;;  %6810 = vst [vmem:[#allocation54_spill] sm:$0xff] %v5922_v32  ;;  %v3897_v18 = vld [vmem:[#allocation8 + $0x16] ss:$0 sm:$0xff] }
0x1af3   :  { %v2809_v1 = vsel %vm214_vm12, %v2807_v14, %v2808_v51  ;;  %v2806_v19 = vsel %vm214_vm12, %v2804_v5, %v2805_v8 }
0x1af4   :  { %2816 = vrot.lane.b32.xlu1 %v2809_v1, %s4091_s8  ;;  %2814 = vrot.lane.b32.xlu0 %v2806_v19, %s4091_s8  ;;  %v2813_v42 = vsel %vm214_vm12, %v2808_v51, %v2812_v6  ;;  %v2811_v15 = vsel %vm214_vm12, %v2805_v8, %v2810_v39 }
0x1af5   :  { %v5924_v59 = vpop.permute.xlu0 %2775 }
0x1af6   :  { %6811 = vst [vmem:[#allocation52_spill] sm:$0xff] %v5924_v59 }
0x1af8   :  { %2820 = vrot.lane.b32.xlu1 %v2813_v42, %s4091_s8  ;;  %2818 = vrot.lane.b32.xlu0 %v2811_v15, %s4091_s8 }
0x1afc   :  { %2834 = vrot.lane.b32.xlu0 %v3896_v54, %s4075_s25 }
0x1b66   :  { %v5926_v9 = vpop.permute.xlu0 %2814  ;;  %v5939_v14 = vpop.permute.xlu1 %2816 }
0x1b67   :  { %6812 = vst [vmem:[#allocation51_spill] sm:$0xff] %v5926_v9  ;;  %6814 = vst [vmem:[#allocation58_spill] sm:$0xff] %v5939_v14 }
0x1b6a   :  { %v5928_v62 = vpop.permute.xlu0 %2818  ;;  %v5941_v51 = vpop.permute.xlu1 %2820 }
0x1b6b   :  { %6813 = vst [vmem:[#allocation49_spill] sm:$0xff] %v5928_v62  ;;  %6815 = vst [vmem:[#allocation56_spill] sm:$0xff] %v5941_v51 }
0x1b6e   :  { %v2835_v34 = vpop.permute.xlu0 %2834 }
0x1b6f   :  { %v2838_v6 = vmul.f32 %v2835_v34, %v5484_v36  ;;  %v2837_v39 = vmul.f32 %v2835_v34, %v5482_v11  ;;  %v2840_v15 = vmul.f32 %v2835_v34, %v5498_v56  ;;  %v2839_v42 = vmul.f32 %v2835_v34, %v5496_v13 }
0x1b71   :  { %2847 = vrot.lane.b32.xlu0 %v2838_v6, %s4092_s1  ;;  %2845 = vrot.lane.b32.xlu1 %v2837_v39, %s4092_s1 }
0x1b75   :  { %2851 = vrot.lane.b32.xlu0 %v2840_v15, %s4092_s1  ;;  %2849 = vrot.lane.b32.xlu1 %v2839_v42, %s4092_s1 }
0x1b79   :  { %2865 = vrot.lane.b32.xlu1 %v3897_v18, %s4075_s25 }
0x1be3   :  { %v5943_v5 = vpop.permute.xlu1 %2845 }
0x1be4   :  { %6816 = vst [vmem:[#allocation55_spill] sm:$0xff] %v5943_v5 }
0x1be7   :  { %v5945_v8 = vpop.permute.xlu1 %2849 }
0x1be8   :  { %6817 = vst [vmem:[#allocation53_spill] sm:$0xff] %v5945_v8 }
0x1beb   :  { %v2866_v1 = vpop.permute.xlu1 %2865 }
0x1bec   :  { %v2869_v19 = vmul.f32 %v2866_v1, %v5484_v36  ;;  %v2871_v54 = vmul.f32 %v2866_v1, %v5498_v56  ;;  %v2868_v34 = vmul.f32 %v2866_v1, %v5482_v11  ;;  %v2870_v6 = vmul.f32 %v2866_v1, %v5496_v13  ;;  %v5962_v13 = vpop.permute.xlu0 %2847 }
0x1bed   :  { %v2873_v39 = vmul.f32 %v2866_v1, %v5490_v7  ;;  %v2872_v15 = vmul.f32 %v2866_v1, %v5488_v44  ;;  %v3898_v44 = vld [vmem:[#allocation8 + $0x25] ss:$0 sm:$0xff]  ;;  %6818 = vst [vmem:[#allocation62_spill] sm:$0xff] %v5962_v13  ;;  %v5970_v1 = vld [vmem:[#allocation2 + $0x8] sm:$0xff] }
0x1bee   :  { %v2883_v42 = vrot.slane %v2869_v19, 1  ;;  %v2884_v18 = vrot.slane %v2871_v54, 1  ;;  %v2880_v62 = vrot.slane %v2868_v34, 1  ;;  %v2881_v51 = vrot.slane %v2870_v6, 1  ;;  %6822 = vst [vmem:[#allocation66_spill] sm:$0xff] %v5970_v1  ;;  %v5976_v54 = vld [vmem:[#allocation2] sm:$0xff] }
0x1bef   :  { %v2888_v59 = vrot.slane %v2873_v39, 1  ;;  %v2886_v36 = vrot.slane %v2872_v15, 1  ;;  %v5979_v6 = vld [vmem:[#allocation2 + $0x10] sm:$0xff]  ;;  %v5982_v15 = vld [vmem:[#allocation2 + $0x28] sm:$0x3] }
0x1bf0   :  { %v2885_v5 = vsel %vm168_vm11, %v2883_v42, %v2884_v18  ;;  %v2882_v8 = vsel %vm168_vm11, %v2880_v62, %v2881_v51  ;;  %v5964_v56 = vpop.permute.xlu0 %2851  ;;  %6824 = vst [vmem:[#allocation63_spill] sm:$0xff] %v5982_v15 }
0x1bf1   :  { %2892 = vrot.lane.b32.xlu1 %v2885_v5, %s4092_s1  ;;  %2890 = vrot.lane.b32.xlu0 %v2882_v8, %s4092_s1  ;;  %v2889_v11 = vsel %vm168_vm11, %v2884_v18, %v2888_v59  ;;  %v2887_v7 = vsel %vm168_vm11, %v2881_v51, %v2886_v36  ;;  %6819 = vst [vmem:[#allocation60_spill] sm:$0xff] %v5964_v56  ;;  %v5973_v51 = vld [vmem:[#allocation2 + $0x18] sm:$0xff]  ;;  %v5985_v18 = vld [vmem:[#allocation2 + $0x20] sm:$0x3] }
0x1bf2   :  { %6823 = vst [vmem:[#allocation64_spill] sm:$0xff] %v5973_v51 }
0x1bf5   :  { %2896 = vrot.lane.b32.xlu1 %v2889_v11, %s4092_s1  ;;  %2894 = vrot.lane.b32.xlu0 %v2887_v7, %s4092_s1 }
0x1bf9   :  { %2910 = vrot.lane.b32.xlu0 %v3898_v44, %s4075_s25 }
0x1c63   :  { %v5966_v62 = vpop.permute.xlu0 %2890 }
0x1c64   :  { %6820 = vst [vmem:[#allocation59_spill] sm:$0xff] %v5966_v62 }
0x1c67   :  { %v5968_v5 = vpop.permute.xlu0 %2894 }
0x1c68   :  { %6821 = vst [vmem:[#allocation57_spill] sm:$0xff] %v5968_v5 }
0x1c6b   :  { %v2911_v8 = vpop.permute.xlu0 %2910 }
0x1c6c   :  { %v2914_v59 = vmul.f32 %v5970_v1, %v2911_v8  ;;  %v2916_v19 = vmul.f32 %v5973_v51, %v2911_v8  ;;  %v2913_v34 = vmul.f32 %v5976_v54, %v2911_v8  ;;  %v2915_v39 = vmul.f32 %v5979_v6, %v2911_v8 }
0x1c6d   :  { %v2918_v42 = vmul.f32 %v5982_v15, %v2911_v8  ;;  %v2917_v36 = vmul.f32 %v5985_v18, %v2911_v8  ;;  %v3899_v8 = vld [vmem:[#allocation8 + $0x8] ss:$0 sm:$0xff] }
0x1c6e   :  { %v2928_v11 = vrot.slane %v2914_v59, 2  ;;  %v2929_v7 = vrot.slane %v2916_v19, 2  ;;  %v2925_v44 = vrot.slane %v2913_v34, 2  ;;  %v2926_v5 = vrot.slane %v2915_v39, 2  ;;  %v5997_v59 = vpop.permute.xlu1 %2892 }
0x1c6f   :  { %v2933_v13 = vrot.slane %v2918_v42, 2  ;;  %v2931_v9 = vrot.slane %v2917_v36, 2  ;;  %6825 = vst [vmem:[#allocation61_spill] sm:$0xff] %v5997_v59 }
0x1c70   :  { %v2930_v56 = vsel %vm214_vm12, %v2928_v11, %v2929_v7  ;;  %v2927_v62 = vsel %vm214_vm12, %v2925_v44, %v2926_v5 }
0x1c71   :  { %2937 = vrot.lane.b32.xlu0 %v2930_v56, %s4092_s1  ;;  %2935 = vrot.lane.b32.xlu1 %v2927_v62, %s4092_s1  ;;  %v2934_v14 = vsel %vm214_vm12, %v2929_v7, %v2933_v13  ;;  %v2932_v32 = vsel %vm214_vm12, %v2926_v5, %v2931_v9  ;;  %v3900_v5 = vld [vmem:[#allocation8 + $0x17] ss:$0 sm:$0xff] }
0x1c72   :  { %v5999_v19 = vpop.permute.xlu1 %2896 }
0x1c73   :  { %6826 = vst [vmem:[#allocation70_spill] sm:$0xff] %v5999_v19 }
0x1c75   :  { %2941 = vrot.lane.b32.xlu0 %v2934_v14, %s4092_s1  ;;  %2939 = vrot.lane.b32.xlu1 %v2932_v32, %s4092_s1 }
0x1c79   :  { %2955 = vrot.lane.b32.xlu1 %v3899_v8, %s4093_s9 }
0x1ce3   :  { %v6001_v34 = vpop.permute.xlu1 %2935  ;;  %v6014_v39 = vpop.permute.xlu0 %2937 }
0x1ce4   :  { %6827 = vst [vmem:[#allocation68_spill] sm:$0xff] %v6001_v34  ;;  %6829 = vst [vmem:[#allocation65_spill] sm:$0xff] %v6014_v39 }
0x1ce7   :  { %v6003_v56 = vpop.permute.xlu1 %2939  ;;  %v6016_v42 = vpop.permute.xlu0 %2941 }
0x1ce8   :  { %6828 = vst [vmem:[#allocation67_spill] sm:$0xff] %v6003_v56  ;;  %6830 = vst [vmem:[#allocation74_spill] sm:$0xff] %v6016_v42 }
0x1ceb   :  { %v2956_v62 = vpop.permute.xlu1 %2955 }
0x1cec   :  { %v2959_v13 = vmul.f32 %v5970_v1, %v2956_v62  ;;  %v2958_v9 = vmul.f32 %v5976_v54, %v2956_v62  ;;  %v2961_v32 = vmul.f32 %v5973_v51, %v2956_v62  ;;  %v2960_v14 = vmul.f32 %v5979_v6, %v2956_v62 }
0x1cee   :  { %2968 = vrot.lane.b32.xlu1 %v2959_v13, %s4094_s10  ;;  %2966 = vrot.lane.b32.xlu0 %v2958_v9, %s4094_s10 }
0x1cf2   :  { %2972 = vrot.lane.b32.xlu1 %v2961_v32, %s4094_s10  ;;  %2970 = vrot.lane.b32.xlu0 %v2960_v14, %s4094_s10 }
0x1cf6   :  { %2986 = vrot.lane.b32.xlu0 %v3900_v5, %s4093_s9 }
0x1d60   :  { %v6018_v36 = vpop.permute.xlu0 %2966 }
0x1d61   :  { %6831 = vst [vmem:[#allocation72_spill] sm:$0xff] %v6018_v36 }
0x1d64   :  { %v6020_v11 = vpop.permute.xlu0 %2970 }
0x1d65   :  { %6832 = vst [vmem:[#allocation71_spill] sm:$0xff] %v6020_v11 }
0x1d68   :  { %v2987_v7 = vpop.permute.xlu0 %2986 }
0x1d69   :  { %v2990_v44 = vmul.f32 %v5970_v1, %v2987_v7  ;;  %v2992_v8 = vmul.f32 %v5973_v51, %v2987_v7  ;;  %v2989_v62 = vmul.f32 %v5976_v54, %v2987_v7  ;;  %v2991_v13 = vmul.f32 %v5979_v6, %v2987_v7 }
0x1d6a   :  { %v2994_v9 = vmul.f32 %v5982_v15, %v2987_v7  ;;  %v2993_v32 = vmul.f32 %v5985_v18, %v2987_v7  ;;  %v3901_v7 = vld [vmem:[#allocation8 + $0x26] ss:$0 sm:$0xff] }
0x1d6b   :  { %v3004_v14 = vrot.slane %v2990_v44, 1  ;;  %v3005_v5 = vrot.slane %v2992_v8, 1  ;;  %v3001_v56 = vrot.slane %v2989_v62, 1  ;;  %v3002_v42 = vrot.slane %v2991_v13, 1  ;;  %v6037_v44 = vpop.permute.xlu1 %2968 }
0x1d6c   :  { %v3009_v19 = vrot.slane %v2994_v9, 1  ;;  %v3007_v34 = vrot.slane %v2993_v32, 1 }
0x1d6d   :  { %v3006_v36 = vsel %vm168_vm11, %v3004_v14, %v3005_v5  ;;  %v3003_v11 = vsel %vm168_vm11, %v3001_v56, %v3002_v42 }
0x1d6e   :  { %3013 = vrot.lane.b32.xlu0 %v3006_v36, %s4094_s10  ;;  %3011 = vrot.lane.b32.xlu1 %v3003_v11, %s4094_s10  ;;  %v3010_v39 = vsel %vm168_vm11, %v3005_v5, %v3009_v19  ;;  %v3008_v59 = vsel %vm168_vm11, %v3002_v42, %v3007_v34 }
0x1d6f   :  { %v6039_v56 = vpop.permute.xlu1 %2972 }
0x1d72   :  { %3017 = vrot.lane.b32.xlu0 %v3010_v39, %s4094_s10  ;;  %3015 = vrot.lane.b32.xlu1 %v3008_v59, %s4094_s10 }
0x1d76   :  { %3031 = vrot.lane.b32.xlu1 %v3901_v7, %s4093_s9 }
0x1de0   :  { %v6041_v8 = vpop.permute.xlu1 %3011 }
0x1de4   :  { %v6043_v36 = vpop.permute.xlu1 %3015 }
0x1de5   :  { %6833 = vst [vmem:[#allocation69_spill] sm:$0xff] %v6043_v36 }
0x1de8   :  { %v3032_v11 = vpop.permute.xlu1 %3031 }
0x1de9   :  { %v3035_v19 = vmul.f32 %v5970_v1, %v3032_v11  ;;  %v3037_v34 = vmul.f32 %v5973_v51, %v3032_v11  ;;  %v3034_v39 = vmul.f32 %v5976_v54, %v3032_v11  ;;  %v3036_v59 = vmul.f32 %v5979_v6, %v3032_v11 }
0x1dea   :  { %v3039_v42 = vmul.f32 %v5982_v15, %v3032_v11  ;;  %v3038_v62 = vmul.f32 %v5985_v18, %v3032_v11  ;;  %v3902_v11 = vld [vmem:[#allocation8 + $0x9] ss:$0 sm:$0xff] }
0x1deb   :  { %v3049_v13 = vrot.slane %v3035_v19, 2  ;;  %v3050_v9 = vrot.slane %v3037_v34, 2  ;;  %v3046_v32 = vrot.slane %v3034_v39, 2  ;;  %v3047_v14 = vrot.slane %v3036_v59, 2  ;;  %v3874_v19 = vld [vmem:[#allocation8 + $0x2d] ss:$0 sm:$0xff] }
0x1dec   :  { %v3054_v36 = vrot.slane %v3039_v42, 2  ;;  %v3052_v1 = vrot.slane %v3038_v62, 2  ;;  %v2006_v34 = vsel %vm140_vm13, %v5540_v49, %v5517_v30  ;;  %v2051_v39 = vsel %vm140_vm13, %v5521_v0, %v5544_v55  ;;  %v6836_v42 = vld [vmem:[#allocation17_spill] sm:$0xff] }
0x1ded   :  { %v3051_v5 = vsel %vm214_vm12, %v3049_v13, %v3050_v9  ;;  %v3048_v7 = vsel %vm214_vm12, %v3046_v32, %v3047_v14  ;;  %v2010_v59 = vadd.f32 %v3874_v19, %v2006_v34  ;;  %v2127_v30 = vsel %vm264_vm14, %v5565_v53, %v5584_v20  ;;  %v6837_v13 = vld [vmem:[#allocation14_spill] sm:$0xff]  ;;  %v6840_v32 = vld [vmem:[#allocation13_spill] sm:$0xff] }
0x1dee   :  { %3058 = vrot.lane.b32.xlu1 %v3051_v5, %s4094_s10  ;;  %3056 = vrot.lane.b32.xlu0 %v3048_v7, %s4094_s10  ;;  %v3055_v51 = vsel %vm214_vm12, %v3050_v9, %v3054_v36  ;;  %v3053_v15 = vsel %vm214_vm12, %v3047_v14, %v3052_v1  ;;  %v2007_v1 = vsel %vm140_vm13, %v5542_v35, %v5519_v40  ;;  %v6838_v9 = vld [vmem:[#allocation22_spill] sm:$0xff]  ;;  %v6842_v5 = vld [vmem:[#allocation19_spill] sm:$0xff]  ;;  %v6843_v7 = vld [vmem:[#allocation24_spill] sm:$0xff] }
0x1def   :  { %v2052_v36 = vsel %vm140_vm13, %v5523_v2, %v5546_v47  ;;  %v2011_v49 = vadd.f32 %v3874_v19, %v2007_v1  ;;  %v2097_v55 = vsel %vm140_vm13, %v5550_v28, %v5563_v57  ;;  %v2172_v40 = vsel %vm264_vm14, %v5588_v41, %v5607_v4  ;;  %v6845_v19 = vld [vmem:[#allocation30_spill] sm:$0xff]  ;;  %v6847_v1 = vld [vmem:[#allocation20_spill] sm:$0xff] }
0x1df0   :  { %v2128_v2 = vsel %vm264_vm14, %v5567_v12, %v5586_v3  ;;  %v2217_v47 = vsel %vm264_vm14, %v5611_v50, %v5624_v58  ;;  %v2173_v28 = vsel %vm264_vm14, %v5590_v21, %v5609_v10  ;;  %v2248_v57 = vsel %vm386_vm15, %v5628_v63, %v5647_v25 }
0x1df1   :  { %v2056_v35 = vadd.f32 %v2052_v36, %v2011_v49  ;;  %v2218_v12 = vsel %vm264_vm14, %v5613_v23, %v5626_v17  ;;  %v2293_v3 = vsel %vm386_vm15, %v5651_v38, %v5670_v26  ;;  %v2249_v21 = vsel %vm386_vm15, %v5630_v45, %v5649_v31  ;;  %v6850_v36 = vld [vmem:[#allocation34_spill] sm:$0xff]  ;;  %vm6867_vm14 = vmmov %vm6858_vm9 }
0x1df2   :  { %3062 = vrot.lane.b32.xlu1 %v3055_v51, %s4094_s10  ;;  %3060 = vrot.lane.b32.xlu0 %v3053_v15, %s4094_s10  ;;  %v2096_v51 = vsel %vm140_vm13, %v5548_v33, %v5561_v52  ;;  %v2055_v15 = vadd.f32 %v2051_v39, %v2010_v59  ;;  %v2338_v10 = vsel %vm386_vm15, %v5674_v22, %v5687_v60  ;;  %v6834_v60 = vld [vmem:[#allocation18_spill] sm:$0xff]  ;;  %vm6864_vm13 = vmmov %vm6858_vm9 }
0x1df3   :  { %v2101_v52 = vadd.f32 %v2097_v55, %v2056_v35  ;;  %v2294_v23 = vsel %vm386_vm15, %v5653_v37, %v5672_v46  ;;  %v2369_v17 = vsel %vm508_vm1, %v5691_v43, %v5710_v48  ;;  %v2339_v45 = vsel %vm386_vm15, %v5676_v24, %v5689_v61  ;;  %v6835_v46 = vld [vmem:[#allocation25_spill] sm:$0xff]  ;;  %v6839_v61 = vld [vmem:[#allocation26_spill] sm:$0xff]  ;;  %v6854_v35 = vld [vmem:[#allocation28_spill] sm:$0xff] }
0x1df4   :  { %v2100_v0 = vadd.f32 %v2096_v51, %v2055_v15  ;;  %v2414_v31 = vsel %vm508_vm1, %v5714_v29, %v5733_v16  ;;  %v2370_v37 = vsel %vm508_vm1, %v6834_v60, %v5712_v27  ;;  %v2459_v43 = vsel %vm508_vm1, %v6836_v42, %v6835_v46  ;;  %v6848_v51 = vld [vmem:[#allocation16_spill] sm:$0xff]  ;;  %vm6870_vm15 = vmmov %vm6858_vm9  ;;  %v6874_v60 = vld [vmem:[#allocation50_spill] sm:$0xff] }
0x1df5   :  { %v2132_v20 = vadd.f32 %v2128_v2, %v2101_v52  ;;  %v2415_v24 = vsel %vm508_vm1, %v6838_v9, %v6837_v13  ;;  %v2490_v29 = vsel %vm6841_vm0, %v6840_v32, %v6839_v61  ;;  %v2460_v27 = vsel %vm508_vm1, %v6843_v7, %v6842_v5  ;;  %v6856_v2 = vld [vmem:[#allocation38_spill] sm:$0xff]  ;;  %vm6873_vm1 = vmmov %vm6858_vm9 }
0x1df6   :  { %3076 = vrot.lane.b32.xlu0 %v3902_v11, %s4095_s11  ;;  %v2131_v33 = vadd.f32 %v2127_v30, %v2100_v0  ;;  %v6844_v11 = vld [vmem:[#allocation15_spill] sm:$0xff]  ;;  %v2491_v15 = vsel %vm6849_vm5, %v6848_v51, %v6847_v1  ;;  %vm6876_vm0 = vcmask 990208   ;;  %v6880_v9 = vld [vmem:[#allocation54_spill] sm:$0xff] }
0x1df7   :  { %v2177_v4 = vadd.f32 %v2173_v28, %v2132_v20  ;;  %v2535_v34 = vsel %vm6846_vm2, %v6845_v19, %v6844_v11  ;;  %v6851_v30 = vld [vmem:[#allocation27_spill] sm:$0xff]  ;;  %v6860_v20 = vld [vmem:[#allocation21_spill] sm:$0xff]  ;;  %vm6879_vm2 = vmmov %vm6873_vm1 }
0x1df8   :  { %v2176_v53 = vadd.f32 %v2172_v40, %v2131_v33  ;;  %v2580_v49 = vsel %vm6852_vm7, %v6851_v30, %v6850_v36  ;;  %v6853_v40 = vld [vmem:[#allocation23_spill] sm:$0xff]  ;;  %vm6882_vm5 = vmmov %vm6876_vm0  ;;  %v6886_v7 = vld [vmem:[#allocation58_spill] sm:$0xff] }
0x1df9   :  { %v2222_v58 = vadd.f32 %v2218_v12, %v2177_v4  ;;  %v2536_v33 = vsel %vm6855_vm8, %v6854_v35, %v6853_v40  ;;  %v6862_v12 = vld [vmem:[#allocation42_spill] sm:$0xff]  ;;  %vm6885_vm7 = vmmov %vm6876_vm0  ;;  %v6896_v40 = vld [vmem:[#allocation49_spill] sm:$0xff] }
0x1dfa   :  { %v2221_v41 = vadd.f32 %v2217_v47, %v2176_v53  ;;  %v6857_v47 = vld [vmem:[#allocation31_spill] sm:$0xff]  ;;  %vm6888_vm8 = vmmov %vm6876_vm0  ;;  %v6892_v51 = vld [vmem:[#allocation62_spill] sm:$0xff] }
0x1dfb   :  { %v2253_v25 = vadd.f32 %v2249_v21, %v2222_v58  ;;  %v2611_v52 = vsel %vm6858_vm9, %v6857_v47, %v6856_v2  ;;  %v6866_v58 = vld [vmem:[#allocation29_spill] sm:$0xff]  ;;  %vm6891_vm9 = vmmov %vm6876_vm0  ;;  %v6899_v2 = vld [vmem:[#allocation59_spill] sm:$0xff] }
0x1dfc   :  { %v2252_v50 = vadd.f32 %v2248_v57, %v2221_v41  ;;  %v6859_v57 = vld [vmem:[#allocation32_spill] sm:$0xff] }
0x1dfd   :  { %v2298_v26 = vadd.f32 %v2294_v23, %v2253_v25  ;;  %v2581_v41 = vsel %vm6861_vm10, %v6860_v20, %v6859_v57  ;;  %v6868_v23 = vld [vmem:[#allocation46_spill] sm:$0xff]  ;;  %vm6894_vm10 = vcmask 982016   ;;  %v6902_v57 = vld [vmem:[#allocation53_spill] sm:$0xff] }
0x1dfe   :  { %v2297_v63 = vadd.f32 %v2293_v3, %v2252_v50  ;;  %v6863_v3 = vld [vmem:[#allocation35_spill] sm:$0xff] }
0x1dff   :  { %v2343_v48 = vadd.f32 %v2339_v45, %v2298_v26  ;;  %v2656_v4 = vsel %vm6864_vm13, %v6863_v3, %v6862_v12  ;;  %v6872_v26 = vld [vmem:[#allocation33_spill] sm:$0xff]  ;;  %vm6897_vm13 = vmmov %vm6876_vm0  ;;  %v6905_v12 = vld [vmem:[#allocation68_spill] sm:$0xff] }
0x1e00   :  { %v2342_v38 = vadd.f32 %v2338_v10, %v2297_v63  ;;  %v6865_v10 = vld [vmem:[#allocation36_spill] sm:$0xff] }
0x1e01   :  { %v2374_v16 = vadd.f32 %v2370_v37, %v2343_v48  ;;  %v2612_v63 = vsel %vm6867_vm14, %v6866_v58, %v6865_v10  ;;  %v6875_v37 = vld [vmem:[#allocation43_spill] sm:$0xff]  ;;  %v6877_v48 = vld [vmem:[#allocation44_spill] sm:$0xff]  ;;  %vm6900_vm14 = vmmov %vm6894_vm10 }
0x1e02   :  { %v2373_v22 = vadd.f32 %v2369_v17, %v2342_v38  ;;  %v6869_v17 = vld [vmem:[#allocation39_spill] sm:$0xff]  ;;  %v2732_v46 = vsel %vm6876_vm0, %v6875_v37, %v6874_v60  ;;  %v6908_v10 = vld [vmem:[#allocation57_spill] sm:$0xff] }
0x1e03   :  { %v2419_v39 = vadd.f32 %v2415_v24, %v2374_v16  ;;  %v2701_v25 = vsel %vm6870_vm15, %v6869_v17, %v6868_v23  ;;  %v6881_v24 = vld [vmem:[#allocation47_spill] sm:$0xff]  ;;  %v6883_v16 = vld [vmem:[#allocation48_spill] sm:$0xff]  ;;  %vm6903_vm15 = vmmov %vm6894_vm10 }
0x1e04   :  { %v2418_v62 = vadd.f32 %v2414_v31, %v2373_v22  ;;  %v6871_v31 = vld [vmem:[#allocation40_spill] sm:$0xff]  ;;  %v2777_v61 = vsel %vm6882_vm5, %v6881_v24, %v6880_v9 }
0x1e05   :  { %v2464_v0 = vadd.f32 %v2460_v27, %v2419_v39  ;;  %v2657_v22 = vsel %vm6873_vm1, %v6872_v26, %v6871_v31  ;;  %v6887_v27 = vld [vmem:[#allocation51_spill] sm:$0xff]  ;;  %v6889_v39 = vld [vmem:[#allocation52_spill] sm:$0xff]  ;;  %vm6906_vm1 = vmmov %vm6894_vm10 }
0x1e06   :  { %v2463_v14 = vadd.f32 %v2459_v43, %v2418_v62  ;;  %v6878_v62 = vld [vmem:[#allocation37_spill] sm:$0xff]  ;;  %v2822_v11 = vsel %vm6888_vm8, %v6887_v27, %v6886_v7  ;;  %vm6909_vm0 = vmmov %vm6906_vm1  ;;  %v6913_v31 = vld [vmem:[#allocation67_spill] sm:$0xff] }
0x1e07   :  { %v2495_v53 = vadd.f32 %v2491_v15, %v2464_v0  ;;  %v2702_v13 = vsel %vm6879_vm2, %v6878_v62, %v6877_v48  ;;  %v6893_v15 = vld [vmem:[#allocation55_spill] sm:$0xff]  ;;  %v3014_v0 = vpop.permute.xlu0 %3013  ;;  %vm6911_vm2 = vcmask 973824   ;;  %vm6914_vm5 = vmmov %vm6909_vm0  ;;  %v6922_v27 = vld [vmem:[#allocation66_spill] sm:$0xff] }
0x1e08   :  { %v2494_v59 = vadd.f32 %v2490_v29, %v2463_v14  ;;  %v6884_v14 = vld [vmem:[#allocation41_spill] sm:$0xff]  ;;  %v2853_v36 = vsel %vm6894_vm10, %v6893_v15, %v6892_v51  ;;  %vm6917_vm8 = vmmov %vm6911_vm2 }
0x1e09   :  { %v2540_v50 = vadd.f32 %v2536_v33, %v2495_v53  ;;  %v2733_v5 = vsel %vm6885_vm7, %v6884_v14, %v6883_v16  ;;  %v6898_v33 = vld [vmem:[#allocation61_spill] sm:$0xff]  ;;  %vm6915_vm7 = vmmov %vm6911_vm2 }
0x1e0a   :  { %v2539_v55 = vadd.f32 %v2535_v34, %v2494_v59  ;;  %v6890_v59 = vld [vmem:[#allocation45_spill] sm:$0xff]  ;;  %v2898_v47 = vsel %vm6900_vm14, %v6899_v2, %v6898_v33  ;;  %vm6920_vm10 = vmmov %vm6911_vm2  ;;  %vm6924_vm14 = vcmask 965632  }
0x1e0b   :  { %v2585_v38 = vadd.f32 %v2581_v41, %v2540_v50  ;;  %v2778_v1 = vsel %vm6891_vm9, %v6890_v59, %v6889_v39  ;;  %v6904_v41 = vld [vmem:[#allocation65_spill] sm:$0xff]  ;;  %vm6919_vm9 = vmmov %vm6911_vm2  ;;  %v3903_v59 = vld [vmem:[#allocation8 + $0x18] ss:$0 sm:$0xff] }
0x1e0c   :  { %v2584_v28 = vadd.f32 %v2580_v49, %v2539_v55  ;;  %v6895_v55 = vld [vmem:[#allocation56_spill] sm:$0xff]  ;;  %v2943_v3 = vsel %vm6906_vm1, %v6905_v12, %v6904_v41  ;;  %vm6927_vm1 = vmmov %vm6924_vm14 }
0x1e0d   :  { %v2616_v42 = vadd.f32 %v2612_v63, %v2585_v38  ;;  %v2823_v35 = vsel %vm6897_vm13, %v6896_v40, %v6895_v55  ;;  %v6910_v63 = vld [vmem:[#allocation72_spill] sm:$0xff]  ;;  %v3018_v38 = vpop.permute.xlu0 %3017  ;;  %vm6921_vm13 = vmmov %vm6911_vm2 }
0x1e0e   :  { %v2615_v21 = vadd.f32 %v2611_v52, %v2584_v28  ;;  %v6901_v28 = vld [vmem:[#allocation60_spill] sm:$0xff]  ;;  %v2974_v23 = vsel %vm6911_vm2, %v6910_v63, %v6037_v44 }
0x1e0f   :  { %v2661_v32 = vadd.f32 %v2657_v22, %v2616_v42  ;;  %v2854_v20 = vsel %vm6903_vm15, %v6902_v57, %v6901_v28  ;;  %v3019_v22 = vsel %vm6915_vm7, %v6041_v8, %v3014_v0  ;;  %vm6925_vm15 = vmmov %vm6924_vm14  ;;  %v3906_v63 = vld [vmem:[#allocation8 + $0x19] ss:$0 sm:$0xff] }
0x1e10   :  { %v2660_v45 = vadd.f32 %v2656_v4, %v2615_v21  ;;  %v6907_v21 = vld [vmem:[#allocation70_spill] sm:$0xff] }
0x1e11   :  { %v2706_v19 = vadd.f32 %v2702_v13, %v2661_v32  ;;  %v2899_v58 = vsel %vm6909_vm0, %v6908_v10, %v6907_v21  ;;  %v6918_v13 = vld [vmem:[#allocation69_spill] sm:$0xff]  ;;  %vm6928_vm0 = vmmov %vm6927_vm1 }
0x1e12   :  { %v2705_v43 = vadd.f32 %v2701_v25, %v2660_v45  ;;  %v6912_v45 = vld [vmem:[#allocation74_spill] sm:$0xff]  ;;  %v3020_v9 = vsel %vm6919_vm9, %v6918_v13, %v3018_v38  ;;  %v3904_v21 = vld [vmem:[#allocation8 + $0x27] ss:$0 sm:$0xff]  ;;  %vm6929_vm2 = vmmov %vm6928_vm0 }
0x1e13   :  { %v2737_v30 = vadd.f32 %v2733_v5, %v2706_v19  ;;  %v2944_v26 = vsel %vm6914_vm5, %v6913_v31, %v6912_v45  ;;  %v3908_v38 = vld [vmem:[#allocation8 + $0xb] ss:$0 sm:$0xff]  ;;  %v3909_v45 = vld [vmem:[#allocation8 + $0x1a] ss:$0 sm:$0xff]  ;;  %v3912_v31 = vld [vmem:[#allocation8 + $0x1b] ss:$0 sm:$0xff] }
0x1e14   :  { %v2736_v29 = vadd.f32 %v2732_v46, %v2705_v43  ;;  %v6916_v46 = vld [vmem:[#allocation71_spill] sm:$0xff]  ;;  %vm6930_vm5 = vmmov %vm6928_vm0 }
0x1e15   :  { %v2782_v52 = vadd.f32 %v2778_v1, %v2737_v30  ;;  %v2975_v42 = vsel %vm6917_vm8, %v6916_v46, %v6039_v56  ;;  %v3915_v46 = vld [vmem:[#allocation8 + $0x1c] ss:$0 sm:$0xff] }
0x1e16   :  { %v2781_v34 = vadd.f32 %v2777_v61, %v2736_v29 }
0x1e17   :  { %v2827_v4 = vadd.f32 %v2823_v35, %v2782_v52 }
0x1e18   :  { %v2826_v49 = vadd.f32 %v2822_v11, %v2781_v34  ;;  %v6923_v34 = vld [vmem:[#allocation64_spill] sm:$0xff] }
0x1e19   :  { %v2858_v17 = vadd.f32 %v2854_v20, %v2827_v4  ;;  %v6926_v4 = vld [vmem:[#allocation63_spill] sm:$0xff] }
0x1e1a   :  { %v2857_v53 = vadd.f32 %v2853_v36, %v2826_v49 }
0x1e1b   :  { %v2903_v60 = vadd.f32 %v2899_v58, %v2858_v17  ;;  %v3907_v17 = vld [vmem:[#allocation8 + $0x28] ss:$0 sm:$0xff] }
0x1e1c   :  { %v2902_v50 = vadd.f32 %v2898_v47, %v2857_v53 }
0x1e1d   :  { %v2948_v43 = vadd.f32 %v2944_v26, %v2903_v60  ;;  %v3910_v26 = vld [vmem:[#allocation8 + $0x29] ss:$0 sm:$0xff]  ;;  %v3911_v60 = vld [vmem:[#allocation8 + $0xc] ss:$0 sm:$0xff] }
0x1e1e   :  { %v2947_v25 = vadd.f32 %v2943_v3, %v2902_v50 }
0x1e1f   :  { %v2979_v61 = vadd.f32 %v2975_v42, %v2948_v43  ;;  %v3918_v42 = vld [vmem:[#allocation8 + $0x1d] ss:$0 sm:$0xff]  ;;  %v3916_v43 = vld [vmem:[#allocation8 + $0x2b] ss:$0 sm:$0xff] }
0x1e20   :  { %v2978_v37 = vadd.f32 %v2974_v23, %v2947_v25  ;;  %v3905_v25 = vld [vmem:[#allocation8 + $0xa] ss:$0 sm:$0xff] }
0x1e21   :  { %v3024_v29 = vadd.f32 %v3020_v9, %v2979_v61 }
0x1e22   :  { %v3023_v48 = vadd.f32 %v3019_v22, %v2978_v37  ;;  %v3913_v22 = vld [vmem:[#allocation8 + $0x2a] ss:$0 sm:$0xff]  ;;  %v3914_v37 = vld [vmem:[#allocation8 + $0xd] ss:$0 sm:$0xff] }
0x1e60   :  { %v3059_v62 = vpop.permute.xlu1 %3058  ;;  %v3057_v44 = vpop.permute.xlu0 %3056 }
0x1e61   :  { %v3064_v24 = vsel %vm6920_vm10, %v3057_v44, %v3059_v62  ;;  %v3917_v62 = vld [vmem:[#allocation8 + $0xe] ss:$0 sm:$0xff] }
0x1e62   :  { %v3068_v32 = vadd.f32 %v3064_v24, %v3023_v48  ;;  %v3919_v48 = vld [vmem:[#allocation8 + $0x2c] ss:$0 sm:$0xff] }
0x1e64   :  { %v3063_v16 = vpop.permute.xlu1 %3062  ;;  %v3061_v8 = vpop.permute.xlu0 %3060 }
0x1e65   :  { %v3065_v14 = vsel %vm6921_vm13, %v3061_v8, %v3063_v16  ;;  %vm6937_vm13 = vcmask 949248  }
0x1e66   :  { %v3069_v5 = vadd.f32 %v3065_v14, %v3024_v29 }
0x1e68   :  { %v3077_v7 = vpop.permute.xlu0 %3076 }
0x1e69   :  { %v3079_v56 = vmul.f32 %v5976_v54, %v3077_v7  ;;  %v3080_v11 = vmul.f32 %v6922_v27, %v3077_v7  ;;  %v3081_v19 = vmul.f32 %v5979_v6, %v3077_v7  ;;  %v3082_v39 = vmul.f32 %v6923_v34, %v3077_v7 }
0x1e6b   :  { %3089 = vrot.lane.b32.xlu0 %v3080_v11, %s4096_s12  ;;  %3087 = vrot.lane.b32.xlu1 %v3079_v56, %s4096_s12 }
0x1e6f   :  { %3093 = vrot.lane.b32.xlu0 %v3082_v39, %s4096_s12  ;;  %3091 = vrot.lane.b32.xlu1 %v3081_v19, %s4096_s12 }
0x1e73   :  { %3107 = vrot.lane.b32.xlu1 %v3903_v59, %s4095_s11 }
0x1edd   :  { %v3090_v1 = vpop.permute.xlu0 %3089  ;;  %v3088_v51 = vpop.permute.xlu1 %3087 }
0x1ede   :  { %v3095_v15 = vsel %vm6924_vm14, %v3088_v51, %v3090_v1  ;;  %vm6938_vm14 = vmmov %vm6937_vm13 }
0x1edf   :  { %v3099_v36 = vadd.f32 %v3095_v15, %v3068_v32 }
0x1ee1   :  { %v3094_v30 = vpop.permute.xlu0 %3093  ;;  %v3092_v49 = vpop.permute.xlu1 %3091 }
0x1ee2   :  { %v3096_v0 = vsel %vm6925_vm15, %v3092_v49, %v3094_v30  ;;  %vm6939_vm15 = vmmov %vm6937_vm13 }
0x1ee3   :  { %v6227_v55 = vadd.f32 %v3096_v0, %v3069_v5 }
0x1ee5   :  { %v3108_v40 = vpop.permute.xlu1 %3107 }
0x1ee6   :  { %v3111_v35 = vmul.f32 %v6922_v27, %v3108_v40  ;;  %v3113_v33 = vmul.f32 %v6923_v34, %v3108_v40  ;;  %v3110_v2 = vmul.f32 %v5976_v54, %v3108_v40  ;;  %v3112_v47 = vmul.f32 %v5979_v6, %v3108_v40 }
0x1ee7   :  { %v3114_v52 = vmul.f32 %v5985_v18, %v3108_v40  ;;  %v3115_v50 = vmul.f32 %v6926_v4, %v3108_v40 }
0x1ee8   :  { %v3125_v53 = vrot.slane %v3111_v35, 1  ;;  %v3126_v28 = vrot.slane %v3113_v33, 1  ;;  %v3122_v57 = vrot.slane %v3110_v2, 1  ;;  %v3123_v20 = vrot.slane %v3112_v47, 1 }
0x1ee9   :  { %v3128_v3 = vrot.slane %v3114_v52, 1  ;;  %v3130_v58 = vrot.slane %v3115_v50, 1 }
0x1eea   :  { %v3127_v41 = vsel %vm168_vm11, %v3125_v53, %v3126_v28  ;;  %v3124_v12 = vsel %vm168_vm11, %v3122_v57, %v3123_v20 }
0x1eeb   :  { %3134 = vrot.lane.b32.xlu1 %v3127_v41, %s4096_s12  ;;  %3132 = vrot.lane.b32.xlu0 %v3124_v12, %s4096_s12  ;;  %v3129_v10 = vsel %vm168_vm11, %v3123_v20, %v3128_v3  ;;  %v3131_v23 = vsel %vm168_vm11, %v3126_v28, %v3130_v58 }
0x1eef   :  { %3152 = vrot.lane.b32.xlu1 %v3904_v21, %s4095_s11  ;;  %3136 = vrot.lane.b32.xlu0 %v3129_v10, %s4096_s12 }
0x1ef3   :  { %3228 = vrot.lane.b32.xlu1 %v3906_v63, %s4097_s13  ;;  %3138 = vrot.lane.b32.xlu0 %v3131_v23, %s4096_s12 }
0x1ef7   :  { %3273 = vrot.lane.b32.xlu1 %v3907_v17, %s4097_s13  ;;  %3197 = vrot.lane.b32.xlu0 %v3905_v25, %s4097_s13 }
0x1efb   :  { %3318 = vrot.lane.b32.xlu1 %v3908_v38, %s4099_s16  ;;  %3349 = vrot.lane.b32.xlu0 %v3909_v45, %s4099_s16 }
0x1eff   :  { %3470 = vrot.lane.b32.xlu1 %v3912_v31, %s4101_s18  ;;  %3394 = vrot.lane.b32.xlu0 %v3910_v26, %s4099_s16 }
0x1f03   :  { %3515 = vrot.lane.b32.xlu1 %v3913_v22, %s4101_s18  ;;  %3439 = vrot.lane.b32.xlu0 %v3911_v60, %s4101_s18 }
0x1f07   :  { %3560 = vrot.lane.b32.xlu1 %v3914_v37, %s4103_s20  ;;  %3591 = vrot.lane.b32.xlu0 %v3915_v46, %s4103_s20 }
0x1f0b   :  { %3712 = vrot.lane.b32.xlu1 %v3918_v42, %s4105_s15  ;;  %3636 = vrot.lane.b32.xlu0 %v3916_v43, %s4103_s20 }
0x1f0f   :  { %3757 = vrot.lane.b32.xlu1 %v3919_v48, %s4105_s15  ;;  %3681 = vrot.lane.b32.xlu0 %v3917_v62, %s4105_s15 }
0x1f5d   :  { %v3135_v44 = vpop.permute.xlu1 %3134  ;;  %v3133_v13 = vpop.permute.xlu0 %3132 }
0x1f5e   :  { %v3140_v9 = vsel %vm6927_vm1, %v3133_v13, %v3135_v44  ;;  %vm6940_vm1 = vmmov %vm6937_vm13 }
0x1f5f   :  { %v6260_v24 = vadd.f32 %v3140_v9, %v3099_v36 }
0x1f61   :  { %v3153_v61 = vpop.permute.xlu1 %3152  ;;  %v3137_v32 = vpop.permute.xlu0 %3136 }
0x1f62   :  { %v3156_v29 = vmul.f32 %v6922_v27, %v3153_v61  ;;  %v3158_v16 = vmul.f32 %v6923_v34, %v3153_v61  ;;  %v3155_v8 = vmul.f32 %v5976_v54, %v3153_v61  ;;  %v3157_v14 = vmul.f32 %v5979_v6, %v3153_v61 }
0x1f63   :  { %v3160_v5 = vmul.f32 %v6926_v4, %v3153_v61  ;;  %v3159_v7 = vmul.f32 %v5985_v18, %v3153_v61 }
0x1f64   :  { %v3170_v56 = vrot.slane %v3156_v29, 2  ;;  %v3171_v11 = vrot.slane %v3158_v16, 2  ;;  %v3167_v19 = vrot.slane %v3155_v8, 2  ;;  %v3168_v39 = vrot.slane %v3157_v14, 2 }
0x1f65   :  { %v3139_v59 = vpop.permute.xlu0 %3138  ;;  %v3175_v1 = vrot.slane %v3160_v5, 2  ;;  %v3173_v30 = vrot.slane %v3159_v7, 2  ;;  %v3229_v33 = vpop.permute.xlu1 %3228 }
0x1f66   :  { %v3141_v51 = vsel %vm6928_vm0, %v3137_v32, %v3139_v59  ;;  %v3172_v15 = vsel %vm214_vm12, %v3170_v56, %v3171_v11  ;;  %v3169_v36 = vsel %vm214_vm12, %v3167_v19, %v3168_v39  ;;  %v3234_v52 = vmul.f32 %v6923_v34, %v3229_v33  ;;  %vm6941_vm0 = vmmov %vm6940_vm1 }
0x1f67   :  { %v6272_v49 = vadd.f32 %v3141_v51, %v6227_v55  ;;  %3179 = vrot.lane.b32.xlu1 %v3172_v15, %s4096_s12  ;;  %3177 = vrot.lane.b32.xlu0 %v3169_v36, %s4096_s12  ;;  %v3176_v40 = vsel %vm214_vm12, %v3171_v11, %v3175_v1  ;;  %v3174_v35 = vsel %vm214_vm12, %v3168_v39, %v3173_v30 }
0x1f68   :  { %v3232_v55 = vmul.f32 %v6922_v27, %v3229_v33  ;;  %v3231_v53 = vmul.f32 %v5976_v54, %v3229_v33  ;;  %v3233_v28 = vmul.f32 %v5979_v6, %v3229_v33  ;;  %v3236_v41 = vmul.f32 %v6926_v4, %v3229_v33 }
0x1f69   :  { %v3198_v0 = vpop.permute.xlu0 %3197  ;;  %v3235_v12 = vmul.f32 %v5985_v18, %v3229_v33  ;;  %v3274_v3 = vpop.permute.xlu1 %3273  ;;  %v3247_v21 = vrot.slane %v3234_v52, 1 }
0x1f6a   :  { %v3200_v2 = vmul.f32 %v5976_v54, %v3198_v0  ;;  %v3201_v47 = vmul.f32 %v6922_v27, %v3198_v0  ;;  %v3202_v57 = vmul.f32 %v5979_v6, %v3198_v0  ;;  %v3203_v20 = vmul.f32 %v6923_v34, %v3198_v0 }
0x1f6b   :  { %3183 = vrot.lane.b32.xlu1 %v3176_v40, %s4096_s12  ;;  %3181 = vrot.lane.b32.xlu0 %v3174_v35, %s4096_s12  ;;  %v3246_v50 = vrot.slane %v3232_v55, 1  ;;  %v3243_v10 = vrot.slane %v3231_v53, 1  ;;  %v3244_v58 = vrot.slane %v3233_v28, 1  ;;  %v3251_v63 = vrot.slane %v3236_v41, 1 }
0x1f6c   :  { %v3249_v23 = vrot.slane %v3235_v12, 1  ;;  %v3277_v17 = vmul.f32 %v6922_v27, %v3274_v3  ;;  %v3279_v25 = vmul.f32 %v6923_v34, %v3274_v3  ;;  %v3276_v31 = vmul.f32 %v5976_v54, %v3274_v3 }
0x1f6d   :  { %v3248_v38 = vsel %vm168_vm11, %v3246_v50, %v3247_v21  ;;  %v3245_v45 = vsel %vm168_vm11, %v3243_v10, %v3244_v58  ;;  %v3278_v26 = vmul.f32 %v5979_v6, %v3274_v3  ;;  %v3252_v22 = vsel %vm168_vm11, %v3247_v21, %v3251_v63  ;;  %v3319_v32 = vpop.permute.xlu1 %3318  ;;  %v3350_v29 = vpop.permute.xlu0 %3349 }
0x1f6e   :  { %v3250_v60 = vsel %vm168_vm11, %v3244_v58, %v3249_v23  ;;  %v3291_v37 = vrot.slane %v3277_v17, 2  ;;  %v3292_v46 = vrot.slane %v3279_v25, 2  ;;  %v3288_v42 = vrot.slane %v3276_v31, 2 }
0x1f6f   :  { %3210 = vrot.lane.b32.xlu1 %v3201_v47, %s4098_s14  ;;  %3208 = vrot.lane.b32.xlu0 %v3200_v2, %s4098_s14  ;;  %v3289_v43 = vrot.slane %v3278_v26, 2  ;;  %v3281_v48 = vmul.f32 %v6926_v4, %v3274_v3  ;;  %v3280_v62 = vmul.f32 %v5985_v18, %v3274_v3  ;;  %v3321_v14 = vmul.f32 %v5976_v54, %v3319_v32 }
0x1f70   :  { %v3293_v44 = vsel %vm214_vm12, %v3291_v37, %v3292_v46  ;;  %v3322_v5 = vmul.f32 %v6922_v27, %v3319_v32  ;;  %v3353_v7 = vmul.f32 %v6922_v27, %v3350_v29  ;;  %v3355_v56 = vmul.f32 %v6923_v34, %v3350_v29 }
0x1f71   :  { %v3290_v13 = vsel %vm214_vm12, %v3288_v42, %v3289_v43  ;;  %v3296_v9 = vrot.slane %v3281_v48, 2  ;;  %v3294_v61 = vrot.slane %v3280_v62, 2  ;;  %v3352_v11 = vmul.f32 %v5976_v54, %v3350_v29  ;;  %v3395_v36 = vpop.permute.xlu0 %3394  ;;  %v3471_v25 = vpop.permute.xlu1 %3470 }
0x1f72   :  { %v3354_v19 = vmul.f32 %v5979_v6, %v3350_v29  ;;  %v3323_v39 = vmul.f32 %v5979_v6, %v3319_v32  ;;  %v3324_v59 = vmul.f32 %v6923_v34, %v3319_v32  ;;  %v3367_v1 = vrot.slane %v3353_v7, 1 }
0x1f73   :  { %3214 = vrot.lane.b32.xlu1 %v3203_v20, %s4098_s14  ;;  %3212 = vrot.lane.b32.xlu0 %v3202_v57, %s4098_s14  ;;  %v3297_v16 = vsel %vm214_vm12, %v3292_v46, %v3296_v9  ;;  %v3295_v8 = vsel %vm214_vm12, %v3289_v43, %v3294_v61  ;;  %v3368_v51 = vrot.slane %v3355_v56, 1  ;;  %v3357_v15 = vmul.f32 %v6926_v4, %v3350_v29 }
0x1f74   :  { %v3364_v30 = vrot.slane %v3352_v11, 1  ;;  %v3365_v0 = vrot.slane %v3354_v19, 1  ;;  %v3356_v40 = vmul.f32 %v5985_v18, %v3350_v29  ;;  %v3398_v2 = vmul.f32 %v6922_v27, %v3395_v36 }
0x1f75   :  { %v3369_v35 = vsel %vm168_vm11, %v3367_v1, %v3368_v51  ;;  %v3372_v33 = vrot.slane %v3357_v15, 1  ;;  %v3400_v47 = vmul.f32 %v6923_v34, %v3395_v36  ;;  %v3397_v53 = vmul.f32 %v5976_v54, %v3395_v36  ;;  %v3516_v9 = vpop.permute.xlu1 %3515 }
0x1f76   :  { %v3366_v55 = vsel %vm168_vm11, %v3364_v30, %v3365_v0  ;;  %v3370_v52 = vrot.slane %v3356_v40, 1  ;;  %v3399_v28 = vmul.f32 %v5979_v6, %v3395_v36  ;;  %v3412_v20 = vrot.slane %v3398_v2, 2 }
0x1f77   :  { %3255 = vrot.lane.b32.xlu1 %v3248_v38, %s4098_s14  ;;  %3253 = vrot.lane.b32.xlu0 %v3245_v45, %s4098_s14  ;;  %v3373_v57 = vsel %vm168_vm11, %v3368_v51, %v3372_v33  ;;  %v3413_v41 = vrot.slane %v3400_v47, 2  ;;  %v3402_v12 = vmul.f32 %v6926_v4, %v3395_v36  ;;  %v3409_v50 = vrot.slane %v3397_v53, 2  ;;  %v3440_v38 = vpop.permute.xlu0 %3439 }
0x1f78   :  { %v3371_v3 = vsel %vm168_vm11, %v3365_v0, %v3370_v52  ;;  %v3410_v21 = vrot.slane %v3399_v28, 2  ;;  %v3401_v10 = vmul.f32 %v5985_v18, %v3395_v36  ;;  %v3442_v26 = vmul.f32 %v5976_v54, %v3440_v38 }
0x1f79   :  { %v3414_v58 = vsel %vm214_vm12, %v3412_v20, %v3413_v41  ;;  %v3417_v23 = vrot.slane %v3402_v12, 2  ;;  %v3476_v37 = vmul.f32 %v6923_v34, %v3471_v25  ;;  %v3473_v46 = vmul.f32 %v5976_v54, %v3471_v25  ;;  %v3561_v47 = vpop.permute.xlu1 %3560 }
0x1f7a   :  { %v3411_v63 = vsel %vm214_vm12, %v3409_v50, %v3410_v21  ;;  %v3415_v17 = vrot.slane %v3401_v10, 2  ;;  %v3475_v42 = vmul.f32 %v5979_v6, %v3471_v25  ;;  %v3444_v43 = vmul.f32 %v5979_v6, %v3440_v38 }
0x1f7b   :  { %3259 = vrot.lane.b32.xlu1 %v3252_v22, %s4098_s14  ;;  %3257 = vrot.lane.b32.xlu0 %v3250_v60, %s4098_s14  ;;  %v3418_v45 = vsel %vm214_vm12, %v3413_v41, %v3417_v23  ;;  %v3443_v22 = vmul.f32 %v6922_v27, %v3440_v38  ;;  %v3474_v60 = vmul.f32 %v6922_v27, %v3471_v25  ;;  %v3485_v61 = vrot.slane %v3473_v46, 1 }
0x1f7c   :  { %v3416_v31 = vsel %vm214_vm12, %v3410_v21, %v3415_v17  ;;  %v3445_v48 = vmul.f32 %v6923_v34, %v3440_v38  ;;  %v3486_v32 = vrot.slane %v3475_v42, 1  ;;  %v3477_v29 = vmul.f32 %v5985_v18, %v3471_v25 }
0x1f7d   :  { %v3488_v62 = vrot.slane %v3474_v60, 1  ;;  %v3518_v11 = vmul.f32 %v5976_v54, %v3516_v9  ;;  %v3520_v19 = vmul.f32 %v5979_v6, %v3516_v9  ;;  %v3523_v51 = vmul.f32 %v6926_v4, %v3516_v9 }
0x1f7e   :  { %v3487_v7 = vsel %vm168_vm11, %v3485_v61, %v3486_v32  ;;  %v3491_v56 = vrot.slane %v3477_v29, 1  ;;  %v3522_v0 = vmul.f32 %v5985_v18, %v3516_v9  ;;  %v3563_v28 = vmul.f32 %v5976_v54, %v3561_v47 }
0x1f7f   :  { %3300 = vrot.lane.b32.xlu1 %v3293_v44, %s4098_s14  ;;  %3298 = vrot.lane.b32.xlu0 %v3290_v13, %s4098_s14  ;;  %v3489_v44 = vrot.slane %v3476_v37, 1  ;;  %v3478_v13 = vmul.f32 %v6926_v4, %v3471_v25  ;;  %v3530_v36 = vrot.slane %v3518_v11, 2  ;;  %v3531_v30 = vrot.slane %v3520_v19, 2  ;;  %v3971_v11 = vld [vmem:[#allocation2 + $0x18] sm:$0xff] }
0x1f80   :  { %v3492_v15 = vsel %vm168_vm11, %v3486_v32, %v3491_v56  ;;  %v3538_v33 = vrot.slane %v3523_v51, 2  ;;  %v3536_v2 = vrot.slane %v3522_v0, 2  ;;  %v3565_v50 = vmul.f32 %v5979_v6, %v3561_v47 }
0x1f81   :  { %v3566_v21 = vmul.f32 %v6923_v34, %v3561_v47 }
0x1f82   :  { %v3537_v53 = vsel %vm214_vm12, %v3531_v30, %v3536_v2 }
0x1f83   :  { %3304 = vrot.lane.b32.xlu1 %v3297_v16, %s4098_s14  ;;  %3302 = vrot.lane.b32.xlu0 %v3295_v8, %s4098_s14  ;;  %v3490_v16 = vsel %vm168_vm11, %v3488_v62, %v3489_v44  ;;  %v3493_v8 = vrot.slane %v3478_v13, 1 }
0x1f87   :  { %3331 = vrot.lane.b32.xlu1 %v3322_v5, %s4100_s17  ;;  %3329 = vrot.lane.b32.xlu0 %v3321_v14, %s4100_s17  ;;  %v3519_v14 = vmul.f32 %v6922_v27, %v3516_v9  ;;  %v3521_v5 = vmul.f32 %v6923_v34, %v3516_v9 }
0x1f89   :  { %v3534_v1 = vrot.slane %v3521_v5, 2  ;;  %v3970_v5 = vld [vmem:[#allocation2 + $0x8] sm:$0xff] }
0x1f8b   :  { %3335 = vrot.lane.b32.xlu1 %v3324_v59, %s4100_s17  ;;  %3333 = vrot.lane.b32.xlu0 %v3323_v39, %s4100_s17  ;;  %v3494_v39 = vsel %vm168_vm11, %v3489_v44, %v3493_v8  ;;  %v3533_v59 = vrot.slane %v3519_v14, 2  ;;  %v3539_v52 = vsel %vm214_vm12, %v3534_v1, %v3538_v33 }
0x1f8d   :  { %v3535_v40 = vsel %vm214_vm12, %v3533_v59, %v3534_v1  ;;  %v3973_v1 = vld [vmem:[#allocation2 + $0x10] sm:$0xff] }
0x1f8f   :  { %3376 = vrot.lane.b32.xlu1 %v3369_v35, %s4100_s17  ;;  %3374 = vrot.lane.b32.xlu0 %v3366_v55, %s4100_s17  ;;  %v3532_v35 = vsel %vm214_vm12, %v3530_v36, %v3531_v30  ;;  %v3592_v55 = vpop.permute.xlu0 %3591 }
0x1f90   :  { %v3595_v20 = vmul.f32 %v6922_v27, %v3592_v55  ;;  %v3597_v41 = vmul.f32 %v6923_v34, %v3592_v55  ;;  %v3594_v12 = vmul.f32 %v5976_v54, %v3592_v55  ;;  %v3598_v38 = vmul.f32 %v5985_v18, %v3592_v55 }
0x1f92   :  { %v3609_v10 = vrot.slane %v3595_v20, 1  ;;  %v3610_v23 = vrot.slane %v3597_v41, 1  ;;  %v3606_v17 = vrot.slane %v3594_v12, 1  ;;  %v3612_v46 = vrot.slane %v3598_v38, 1 }
0x1f93   :  { %3380 = vrot.lane.b32.xlu1 %v3373_v57, %s4100_s17  ;;  %3378 = vrot.lane.b32.xlu0 %v3371_v3, %s4100_s17  ;;  %v3564_v57 = vmul.f32 %v6922_v27, %v3561_v47  ;;  %v3596_v3 = vmul.f32 %v5979_v6, %v3592_v55 }
0x1f94   :  { %v3611_v60 = vsel %vm168_vm11, %v3609_v10, %v3610_v23 }
0x1f95   :  { %v3607_v25 = vrot.slane %v3596_v3, 1 }
0x1f97   :  { %3421 = vrot.lane.b32.xlu1 %v3414_v58, %s4100_s17  ;;  %3419 = vrot.lane.b32.xlu0 %v3411_v63, %s4100_s17  ;;  %v3599_v58 = vmul.f32 %v6926_v4, %v3592_v55  ;;  %v3637_v63 = vpop.permute.xlu0 %3636  ;;  %v3608_v37 = vsel %vm168_vm11, %v3606_v17, %v3607_v25 }
0x1f98   :  { %v3641_v42 = vmul.f32 %v5979_v6, %v3637_v63  ;;  %v3644_v13 = vmul.f32 %v6926_v4, %v3637_v63  ;;  %v3643_v9 = vmul.f32 %v5985_v18, %v3637_v63  ;;  %v3713_v18 = vpop.permute.xlu1 %3712 }
0x1f99   :  { %v3716_v56 = vmul.f32 %v3970_v5, %v3713_v18  ;;  %v3718_v19 = vmul.f32 %v3971_v11, %v3713_v18  ;;  %v3717_v51 = vmul.f32 %v3973_v1, %v3713_v18 }
0x1f9a   :  { %v3652_v44 = vrot.slane %v3641_v42, 2  ;;  %v3659_v32 = vrot.slane %v3644_v13, 2  ;;  %v3657_v29 = vrot.slane %v3643_v9, 2 }
0x1f9b   :  { %3425 = vrot.lane.b32.xlu1 %v3418_v45, %s4100_s17  ;;  %3423 = vrot.lane.b32.xlu0 %v3416_v31, %s4100_s17  ;;  %v3614_v45 = vrot.slane %v3599_v58, 1  ;;  %v3640_v31 = vmul.f32 %v6922_v27, %v3637_v63  ;;  %v3730_v33 = vrot.slane %v3716_v56, 1  ;;  %v3731_v2 = vrot.slane %v3718_v19, 1 }
0x1f9c   :  { %v3658_v4 = vsel %vm214_vm12, %v3652_v44, %v3657_v29  ;;  %v3728_v55 = vrot.slane %v3717_v51, 1 }
0x1f9d   :  { %v3732_v20 = vsel %vm168_vm11, %v3730_v33, %v3731_v2 }
0x1f9f   :  { %3452 = vrot.lane.b32.xlu1 %v3443_v22, %s4102_s19  ;;  %3450 = vrot.lane.b32.xlu0 %v3442_v26, %s4102_s19  ;;  %v3642_v26 = vmul.f32 %v6923_v34, %v3637_v63  ;;  %v3639_v22 = vmul.f32 %v5976_v54, %v3637_v63  ;;  %v3613_v34 = vsel %vm168_vm11, %v3607_v25, %v3612_v46 }
0x1fa1   :  { %v3655_v62 = vrot.slane %v3642_v26, 2  ;;  %v3651_v27 = vrot.slane %v3639_v22, 2 }
0x1fa3   :  { %3456 = vrot.lane.b32.xlu1 %v3445_v48, %s4102_s19  ;;  %3454 = vrot.lane.b32.xlu0 %v3444_v43, %s4102_s19  ;;  %v3615_v43 = vsel %vm168_vm11, %v3610_v23, %v3614_v45  ;;  %v3654_v48 = vrot.slane %v3640_v31, 2  ;;  %v3653_v61 = vsel %vm214_vm12, %v3651_v27, %v3652_v44  ;;  %v3660_v8 = vsel %vm214_vm12, %v3655_v62, %v3659_v32 }
0x1fa5   :  { %v3656_v6 = vsel %vm214_vm12, %v3654_v48, %v3655_v62 }
0x1fa7   :  { %3497 = vrot.lane.b32.xlu1 %v3490_v16, %s4102_s19  ;;  %3495 = vrot.lane.b32.xlu0 %v3487_v7, %s4102_s19  ;;  %v3682_v16 = vpop.permute.xlu0 %3681 }
0x1fa8   :  { %v3684_v14 = vmul.f32 %v5976_v54, %v3682_v16  ;;  %v3685_v7 = vmul.f32 %v3970_v5, %v3682_v16  ;;  %v3686_v30 = vmul.f32 %v3973_v1, %v3682_v16  ;;  %v3687_v0 = vmul.f32 %v3971_v11, %v3682_v16  ;;  %v3758_v54 = vpop.permute.xlu1 %3757 }
0x1fa9   :  { %v3762_v3 = vmul.f32 %v3973_v1, %v3758_v54 }
0x1fab   :  { %3501 = vrot.lane.b32.xlu1 %v3494_v39, %s4102_s19  ;;  %3499 = vrot.lane.b32.xlu0 %v3492_v15, %s4102_s19  ;;  %v3972_v39 = vld [vmem:[#allocation2] sm:$0xff]  ;;  %v3974_v15 = vld [vmem:[#allocation2 + $0x28] sm:$0x3]  ;;  %v3773_v45 = vrot.slane %v3762_v3, 2 }
0x1fac   :  { %v3715_v59 = vmul.f32 %v3972_v39, %v3713_v18  ;;  %v3720_v36 = vmul.f32 %v3974_v15, %v3713_v18  ;;  %v3760_v12 = vmul.f32 %v3972_v39, %v3758_v54  ;;  %v3765_v17 = vmul.f32 %v3974_v15, %v3758_v54 }
0x1fae   :  { %v3727_v47 = vrot.slane %v3715_v59, 1  ;;  %v3772_v38 = vrot.slane %v3760_v12, 2 }
0x1faf   :  { %3542 = vrot.lane.b32.xlu1 %v3535_v40, %s4102_s19  ;;  %3540 = vrot.lane.b32.xlu0 %v3532_v35, %s4102_s19  ;;  %v3975_v40 = vld [vmem:[#allocation2 + $0x20] sm:$0x3] }
0x1fb0   :  { %v3719_v35 = vmul.f32 %v3975_v40, %v3713_v18  ;;  %v3729_v41 = vsel %vm168_vm11, %v3727_v47, %v3728_v55  ;;  %v3764_v31 = vmul.f32 %v3975_v40, %v3758_v54  ;;  %v3774_v42 = vsel %vm214_vm12, %v3772_v38, %v3773_v45 }
0x1fb2   :  { %v3778_v48 = vrot.slane %v3764_v31, 2 }
0x1fb3   :  { %3546 = vrot.lane.b32.xlu1 %v3539_v52, %s4102_s19  ;;  %3544 = vrot.lane.b32.xlu0 %v3537_v53, %s4102_s19  ;;  %v3735_v52 = vrot.slane %v3720_v36, 1  ;;  %v3733_v53 = vrot.slane %v3719_v35, 1 }
0x1fb4   :  { %v3779_v13 = vsel %vm214_vm12, %v3773_v45, %v3778_v48 }
0x1fb5   :  { %v3734_v58 = vsel %vm168_vm11, %v3728_v55, %v3733_v53 }
0x1fb7   :  { %3573 = vrot.lane.b32.xlu1 %v3564_v57, %s4104_s0  ;;  %3571 = vrot.lane.b32.xlu0 %v3563_v28, %s4104_s0  ;;  %v3761_v28 = vmul.f32 %v3970_v5, %v3758_v54  ;;  %v3763_v57 = vmul.f32 %v3971_v11, %v3758_v54 }
0x1fb9   :  { %v3775_v63 = vrot.slane %v3761_v28, 2  ;;  %v3776_v23 = vrot.slane %v3763_v57, 2 }
0x1fbb   :  { %3577 = vrot.lane.b32.xlu1 %v3566_v21, %s4104_s0  ;;  %3575 = vrot.lane.b32.xlu0 %v3565_v50, %s4104_s0  ;;  %v3736_v50 = vsel %vm168_vm11, %v3731_v2, %v3735_v52  ;;  %vm6931_vm11 = vcmask 957440  }
0x1fbc   :  { %vm6932_vm7 = vmmov %vm6931_vm11 }
0x1fbd   :  { %vm6933_vm8 = vmmov %vm6932_vm7 }
0x1fbe   :  { %vm6934_vm9 = vmmov %vm6932_vm7 }
0x1fbf   :  { %3618 = vrot.lane.b32.xlu1 %v3611_v60, %s4104_s0  ;;  %3616 = vrot.lane.b32.xlu0 %v3608_v37, %s4104_s0  ;;  %v3777_v37 = vsel %vm214_vm12, %v3775_v63, %v3776_v23  ;;  %vm6936_vm10 = vmmov %vm6932_vm7 }
0x1fc3   :  { %3622 = vrot.lane.b32.xlu1 %v3615_v43, %s4104_s0  ;;  %3620 = vrot.lane.b32.xlu0 %v3613_v34, %s4104_s0  ;;  %v3780_v43 = vrot.slane %v3765_v17, 2 }
0x1fc5   :  { %v3781_v44 = vsel %vm214_vm12, %v3776_v23, %v3780_v43  ;;  %vm6935_vm12 = vmmov %vm6932_vm7 }
0x1fc7   :  { %3663 = vrot.lane.b32.xlu1 %v3656_v6, %s4104_s0  ;;  %3661 = vrot.lane.b32.xlu0 %v3653_v61, %s4104_s0 }
0x1fcb   :  { %3667 = vrot.lane.b32.xlu1 %v3660_v8, %s4104_s0  ;;  %3665 = vrot.lane.b32.xlu0 %v3658_v4, %s4104_s0 }
0x1fcf   :  { %3694 = vrot.lane.b32.xlu1 %v3685_v7, %s4106_s24  ;;  %3692 = vrot.lane.b32.xlu0 %v3684_v14, %s4106_s24 }
0x1fd3   :  { %3698 = vrot.lane.b32.xlu1 %v3687_v0, %s4106_s24  ;;  %3696 = vrot.lane.b32.xlu0 %v3686_v30, %s4106_s24 }
0x1fd7   :  { %3739 = vrot.lane.b32.xlu1 %v3732_v20, %s4106_s24  ;;  %3737 = vrot.lane.b32.xlu0 %v3729_v41, %s4106_s24 }
0x1fd9   :  { %v3180_v21 = vpop.permute.xlu1 %3179  ;;  %v3178_v10 = vpop.permute.xlu0 %3177 }
0x1fda   :  { %v3185_v25 = vsel %vm6929_vm2, %v3178_v10, %v3180_v21  ;;  %vm6942_vm2 = vmmov %vm6941_vm0 }
0x1fdb   :  { %v3189_v26 = vadd.f32 %v3185_v25, %v6260_v24  ;;  %3743 = vrot.lane.b32.xlu1 %v3736_v50, %s4106_s24  ;;  %3741 = vrot.lane.b32.xlu0 %v3734_v58, %s4106_s24 }
0x1fdd   :  { %v3184_v22 = vpop.permute.xlu1 %3183  ;;  %v3182_v60 = vpop.permute.xlu0 %3181 }
0x1fde   :  { %v3186_v46 = vsel %vm6930_vm5, %v3182_v60, %v3184_v22 }
0x1fdf   :  { %v3190_v62 = vadd.f32 %v3186_v46, %v6272_v49  ;;  %3784 = vrot.lane.b32.xlu1 %v3777_v37, %s4106_s24  ;;  %3782 = vrot.lane.b32.xlu0 %v3774_v42, %s4106_s24 }
0x1fe1   :  { %v3211_v24 = vpop.permute.xlu1 %3210  ;;  %v3209_v27 = vpop.permute.xlu0 %3208 }
0x1fe2   :  { %v3216_v34 = vsel %vm6931_vm11, %v3209_v27, %v3211_v24 }
0x1fe3   :  { %v3220_v9 = vadd.f32 %v3216_v34, %v3189_v26  ;;  %3788 = vrot.lane.b32.xlu1 %v3781_v44, %s4106_s24  ;;  %3786 = vrot.lane.b32.xlu0 %v3779_v13, %s4106_s24  ;;  %s4107_s24 = smov [#allocation9]  }
0x1fe4   :  { %s3815_s2 = sshll.u32 %s4107_s24, 4  ;;  %s3816_s2 = int_to_ptr.vmem [resolvable:$true] %s3815_s2 }
0x1fe5   :  { %v3215_v6 = vpop.permute.xlu1 %3214  ;;  %v3213_v61 = vpop.permute.xlu0 %3212  ;;  %s4044_s21 = scalar_lea.vmem %s3816_s2, 256  ;;  %p4049_p11 = scmp.lt.s32.totalorder %s3816_s2, %s3816_s2 }
0x1fe6   :  { %v3217_v49 = vsel %vm6932_vm7, %v3213_v61, %v3215_v6  ;;  %p4045_p10 = scmp.ne.s32.totalorder %s3816_s2, %s4044_s21  ;;  %p4050_p12 = scmp.lt.s32.totalorder %s4044_s21, %s4044_s21 }
0x1fe7   :  { %v3221_v32 = vadd.f32 %v3217_v49, %v3190_v62 }
0x1fe8   :  { %p4051_p13 = por %p4050_p12, %p4049_p11 }
0x1fe9   :  { %v3256_v29 = vpop.permute.xlu1 %3255  ;;  %v3254_v16 = vpop.permute.xlu0 %3253 }
0x1fea   :  { %v3261_v8 = vsel %vm6933_vm8, %v3254_v16, %v3256_v29  ;;  %p4052_p0 = pnand %p4051_p13, %p4045_p10 }
0x1feb   :  { %v3265_v4 = vadd.f32 %v3261_v8, %v3220_v9 }
0x1fed   :  { %v3260_v18 = vpop.permute.xlu1 %3259  ;;  %v3258_v14 = vpop.permute.xlu0 %3257 }
0x1fee   :  { %v3262_v5 = vsel %vm6934_vm9, %v3258_v14, %v3260_v18 }
0x1fef   :  { %v3266_v7 = vadd.f32 %v3262_v5, %v3221_v32 }
0x1ff1   :  { %v3301_v56 = vpop.permute.xlu1 %3300  ;;  %v3299_v11 = vpop.permute.xlu0 %3298 }
0x1ff2   :  { %v3306_v19 = vsel %vm6935_vm12, %v3299_v11, %v3301_v56 }
0x1ff3   :  { %v3310_v39 = vadd.f32 %v3306_v19, %v3265_v4 }
0x1ff5   :  { %v3305_v59 = vpop.permute.xlu1 %3304  ;;  %v3303_v1 = vpop.permute.xlu0 %3302 }
0x1ff6   :  { %v3307_v51 = vsel %vm6936_vm10, %v3303_v1, %v3305_v59 }
0x1ff7   :  { %v3311_v15 = vadd.f32 %v3307_v51, %v3266_v7 }
0x1ff9   :  { %v3332_v36 = vpop.permute.xlu1 %3331  ;;  %v3330_v30 = vpop.permute.xlu0 %3329 }
0x1ffa   :  { %v3337_v0 = vsel %vm6937_vm13, %v3330_v30, %v3332_v36 }
0x1ffb   :  { %v3341_v40 = vadd.f32 %v3337_v0, %v3310_v39 }
0x1ffd   :  { %v3336_v35 = vpop.permute.xlu1 %3335  ;;  %v3334_v54 = vpop.permute.xlu0 %3333 }
0x1ffe   :  { %v3338_v33 = vsel %vm6938_vm14, %v3334_v54, %v3336_v35 }
0x1fff   :  { %v3342_v2 = vadd.f32 %v3338_v33, %v3311_v15 }
0x2001   :  { %v3377_v47 = vpop.permute.xlu1 %3376  ;;  %v3375_v55 = vpop.permute.xlu0 %3374 }
0x2002   :  { %v3382_v24 = vsel %vm6939_vm15, %v3375_v55, %v3377_v47 }
0x2003   :  { %v3386_v13 = vadd.f32 %v3382_v24, %v3341_v40 }
0x2005   :  { %v3381_v52 = vpop.permute.xlu1 %3380  ;;  %v3379_v53 = vpop.permute.xlu0 %3378 }
0x2006   :  { %v3383_v9 = vsel %vm6941_vm0, %v3379_v53, %v3381_v52 }
0x2007   :  { %v3387_v8 = vadd.f32 %v3383_v9, %v3342_v2 }
0x2009   :  { %v3422_v28 = vpop.permute.xlu1 %3421  ;;  %v3420_v57 = vpop.permute.xlu0 %3419 }
0x200a   :  { %v3427_v44 = vsel %vm6940_vm1, %v3420_v57, %v3422_v28 }
0x200b   :  { %v3431_v61 = vadd.f32 %v3427_v44, %v3386_v13 }
0x200d   :  { %v3426_v20 = vpop.permute.xlu1 %3425  ;;  %v3424_v41 = vpop.permute.xlu0 %3423 }
0x200e   :  { %v3428_v29 = vsel %vm6942_vm2, %v3424_v41, %v3426_v20 }
0x200f   :  { %v3432_v5 = vadd.f32 %v3428_v29, %v3387_v8 }
0x2011   :  { %v3453_v12 = vpop.permute.xlu1 %3452  ;;  %v3451_v3 = vpop.permute.xlu0 %3450 }
0x2012   :  { %v3458_v6 = vsel %vm1606_vm6, %v3451_v3, %v3453_v12 }
0x2013   :  { %v3462_v4 = vadd.f32 %v3458_v6, %v3431_v61 }
0x2015   :  { %v3457_v50 = vpop.permute.xlu1 %3456  ;;  %v3455_v21 = vpop.permute.xlu0 %3454 }
0x2016   :  { %v3459_v18 = vsel %vm1606_vm6, %v3455_v21, %v3457_v50 }
0x2017   :  { %v3463_v59 = vadd.f32 %v3459_v18, %v3432_v5 }
0x2019   :  { %v3498_v10 = vpop.permute.xlu1 %3497  ;;  %v3496_v58 = vpop.permute.xlu0 %3495 }
0x201a   :  { %v3503_v16 = vsel %vm1606_vm6, %v3496_v58, %v3498_v10 }
0x201b   :  { %v3507_v7 = vadd.f32 %v3503_v16, %v3462_v4 }
0x201d   :  { %v3502_v63 = vpop.permute.xlu1 %3501  ;;  %v3500_v23 = vpop.permute.xlu0 %3499 }
0x201e   :  { %v3504_v19 = vsel %vm1606_vm6, %v3500_v23, %v3502_v63 }
0x201f   :  { %v3508_v36 = vadd.f32 %v3504_v19, %v3463_v59 }
0x2021   :  { %v3543_v17 = vpop.permute.xlu1 %3542  ;;  %v3541_v25 = vpop.permute.xlu0 %3540 }
0x2022   :  { %v3548_v14 = vsel %vm1606_vm6, %v3541_v25, %v3543_v17 }
0x2023   :  { %v3552_v1 = vadd.f32 %v3548_v14, %v3507_v7 }
0x2025   :  { %v3547_v38 = vpop.permute.xlu1 %3546  ;;  %v3545_v45 = vpop.permute.xlu0 %3544 }
0x2026   :  { %v3549_v51 = vsel %vm1606_vm6, %v3545_v45, %v3547_v38 }
0x2027   :  { %v3553_v33 = vadd.f32 %v3549_v51, %v3508_v36 }
0x2029   :  { %v3574_v31 = vpop.permute.xlu1 %3573  ;;  %v3572_v26 = vpop.permute.xlu0 %3571 }
0x202a   :  { %v3579_v39 = vsel %vm1728_vm3, %v3572_v26, %v3574_v31  ;;  %v3976_v31 = vld [vmem:[#allocation3] sm:$0xff] }
0x202b   :  { %v3583_v30 = vadd.f32 %v3579_v39, %v3552_v1 }
0x202d   :  { %v3578_v22 = vpop.permute.xlu1 %3577  ;;  %v3576_v60 = vpop.permute.xlu0 %3575 }
0x202e   :  { %v3580_v35 = vsel %vm1728_vm3, %v3576_v60, %v3578_v22 }
0x202f   :  { %v3584_v52 = vadd.f32 %v3580_v35, %v3553_v33 }
0x2031   :  { %v3619_v37 = vpop.permute.xlu1 %3618  ;;  %v3617_v46 = vpop.permute.xlu0 %3616 }
0x2032   :  { %v3624_v15 = vsel %vm1728_vm3, %v3617_v46, %v3619_v37 }
0x2033   :  { %v3628_v2 = vadd.f32 %v3624_v15, %v3583_v30 }
0x2035   :  { %v3623_v42 = vpop.permute.xlu1 %3622  ;;  %v3621_v43 = vpop.permute.xlu0 %3620 }
0x2036   :  { %v3625_v47 = vsel %vm1728_vm3, %v3621_v43, %v3623_v42 }
0x2037   :  { %v3629_v12 = vadd.f32 %v3625_v47, %v3584_v52 }
0x2039   :  { %v3664_v48 = vpop.permute.xlu1 %3663  ;;  %v3662_v62 = vpop.permute.xlu0 %3661 }
0x203a   :  { %v3669_v54 = vsel %vm1728_vm3, %v3662_v62, %v3664_v48  ;;  %v3977_v48 = vld [vmem:[#allocation3 + $0x8] sm:$0xff] }
0x203b   :  { %v3673_v53 = vadd.f32 %v3669_v54, %v3628_v2 }
0x203d   :  { %v3668_v27 = vpop.permute.xlu1 %3667  ;;  %v3666_v34 = vpop.permute.xlu0 %3665 }
0x203e   :  { %v3670_v20 = vsel %vm1728_vm3, %v3666_v34, %v3668_v27 }
0x203f   :  { %v3674_v21 = vadd.f32 %v3670_v20, %v3629_v12 }
0x2041   :  { %v3695_v49 = vpop.permute.xlu1 %3694  ;;  %v3693_v32 = vpop.permute.xlu0 %3692 }
0x2042   :  { %v3700_v55 = vsel %vm1850_vm4, %v3693_v32, %v3695_v49 }
0x2043   :  { %v3704_v3 = vadd.f32 %v3700_v55, %v3673_v53 }
0x2045   :  { %v3699_v56 = vpop.permute.xlu1 %3698  ;;  %v3697_v11 = vpop.permute.xlu0 %3696 }
0x2046   :  { %v3701_v50 = vsel %vm1850_vm4, %v3697_v11, %v3699_v56 }
0x2047   :  { %v3705_v25 = vadd.f32 %v3701_v50, %v3674_v21 }
0x2049   :  { %v3740_v0 = vpop.permute.xlu1 %3739  ;;  %v3738_v40 = vpop.permute.xlu0 %3737 }
0x204a   :  { %v3745_v41 = vsel %vm1850_vm4, %v3738_v40, %v3740_v0 }
0x204b   :  { %v3749_v10 = vadd.f32 %v3745_v41, %v3704_v3 }
0x204d   :  { %v3744_v28 = vpop.permute.xlu1 %3743  ;;  %v3742_v57 = vpop.permute.xlu0 %3741 }
0x204e   :  { %v3746_v23 = vsel %vm1850_vm4, %v3742_v57, %v3744_v28 }
0x204f   :  { %v3750_v45 = vadd.f32 %v3746_v23, %v3705_v25 }
0x2051   :  { %v3785_v58 = vpop.permute.xlu1 %3784  ;;  %v3783_v63 = vpop.permute.xlu0 %3782 }
0x2052   :  { %v3790_v17 = vsel %vm1850_vm4, %v3783_v63, %v3785_v58 }
0x2053   :  { %v3794_v38 = vadd.f32 %v3790_v17, %v3749_v10 }
0x2055   :  { %v3796_v26 = vadd.f32 %v3976_v31, %v3794_v38  ;;  %v3789_v22 = vpop.permute.xlu1 %3788  ;;  %v3787_v60 = vpop.permute.xlu0 %3786 }
0x2056   :  { %v3791_v37 = vsel %vm1850_vm4, %v3787_v60, %v3789_v22 }
0x2057   :  { %v3798_v46 = vmax.f32 %v3796_v26, 0.0  ;;  %v3795_v42 = vadd.f32 %v3791_v37, %v3750_v45 }
0x2059   :  { %v3920_v43 = vclamps-f32 %v3798_v46, 100.0  ;;  %v3797_v62 = vadd.f32 %v3977_v48, %v3795_v42 }
0x205b   :  { %v3799_v24 = vmax.f32 %v3797_v62, 0.0  ;;  %vm3804_vm3 = vcmp.ne.f32.partialorder %v3920_v43, %v3920_v43 }
0x205c   :  { %v3806_v27 = vsel %vm3804_vm3, 0.0, %v3920_v43 }
0x205d   :  { %v3921_v34 = vclamps-f32 %v3799_v24, 100.0  ;;  %3808 = vst [vmem:[#allocation9] sm:$0xff] %v3806_v27 }
0x205f   :  { %vm3805_vm6 = vcmp.ne.f32.partialorder %v3921_v34, %v3921_v34 }
0x2060   :  { %v3807_v44 = vsel %vm3805_vm6, 0.0, %v3921_v34 }
0x2061   :  { %3809 = vst [vmem:[#allocation9 + $0x8] sm:$0xff] %v3807_v44 }
0x2062   :  { %4055 = shalt.err (!%p4052_p0)
}
0x2063   :  { %s4056_s26 = scalar_lea.hbm %s6497_s3, 256 }
0x2064   :  { %p4057_p1 = scmp.ne.s32.totalorder %s6497_s3, %s4056_s26  ;;  %p4060_p2 = scmp.lt.u32.totalorder %s4056_s26, %s6497_s3 }
0x2066   :  { %p4062_p3 = pnand %p4060_p2, %p4057_p1 }
0x2068   :  { %4065 = shalt.err (!%p4062_p3)
}
0x2069   :  { %s6943_s4 = smov 128  }
0x206a   :  { %3821 = dma.vmem_to_hbm [thread:$0]  %s3816_s2, 256, %s6497_s3, [#allocation5], %s6943_s4, %s6943_s4, %s4075_s25  }
0x206b   :  { %4070 = dma.done.wait [#allocation5], 256  }
0x206c   :  { %4071 = vsyncadd [#allocation5], 4294967040 }
0x206d   :  { %3825 = vsyncpa [#allocation4], 1 }
0x206e   :  { %3826 = vsyncpa [#allocation7], 1 }
0x206f   :  { %3827 = vsyncpa [#allocation5], 1 }

</bundles_post_ra>
